<compile_context>
chip_gen: v5e
topology: v5e:2x2
jax: 0.10.0
libtpu: 0.0.40
codegen_flags: <defaults>
</compile_context>

<pallas_src>
import functools

import jax
import jax.numpy as jnp
from jax.experimental import pallas as pl
from jax.experimental.pallas import tpu as pltpu

NEG_SLOPE = 0.2   # LeakyReLU slope used by the assumed ResidualBlock
BN_EPS = 1e-5     # PyTorch BatchNorm1d default eps


def _leaky_relu(h):
    return jnp.where(h > 0, h, NEG_SLOPE * h)


def encoder_kernel(
    x_ref,
    w1_ref, b1_ref,                 # block 1 (normalize=False): Linear + bias
    w2_ref, g2_ref, be2_ref,        # block 2 (normalize=True):  Linear (bias cancels) + BN
    w3_ref, g3_ref, be3_ref,        # block 3
    w4_ref, g4_ref, be4_ref,        # block 4
    w5_ref, b5_ref,                 # final Linear(128, 128)
    o_ref,
):
    x = x_ref[...]

    # --- ResidualBlock(text_shape, 1024, normalize=False) ---
    h = jnp.dot(x.astype(jnp.bfloat16), w1_ref[...],
                preferred_element_type=jnp.float32) + b1_ref[...]
    h = _leaky_relu(h)

    def norm_block(h, w_ref, g_ref, be_ref):
        # Linear bias omitted: training-mode BN subtracts the batch mean, so
        # any bias added before it cancels exactly.
        h = jnp.dot(h.astype(jnp.bfloat16), w_ref[...],
                    preferred_element_type=jnp.float32)
        inv_b = 1.0 / h.shape[0]
        mu = jnp.sum(h, axis=0, keepdims=True) * inv_b
        ex2 = jnp.sum(h * h, axis=0, keepdims=True) * inv_b
        var = ex2 - mu * mu                         # biased (training-mode) variance
        scale = g_ref[...] * jax.lax.rsqrt(var + BN_EPS)
        shift = be_ref[...] - mu * scale            # fold (h - mu)*scale + beta
        h = h * scale + shift
        return _leaky_relu(h)

    # --- ResidualBlock(1024, 512), (512, 256), (256, 128), all normalize=True ---
    h = norm_block(h, w2_ref, g2_ref, be2_ref)
    h = norm_block(h, w3_ref, g3_ref, be3_ref)
    h = norm_block(h, w4_ref, g4_ref, be4_ref)

    # --- final nn.Linear(128, 128) ---
    o_ref[...] = (
        jnp.dot(h.astype(jnp.bfloat16), w5_ref[...],
                preferred_element_type=jnp.float32) + b5_ref[...]
    )


def _cost_estimate(batch, text_shape):
    dims = [text_shape, 1024, 512, 256, 128, 128]
    mm = sum(dims[i] * dims[i + 1] for i in range(5))
    flops = 2 * batch * mm
    weight_bytes = mm * 2                              # bf16 weights
    small_bytes = (1024 + 3 * 2 * 512 + 128) * 4       # biases / gamma / beta (upper bound)
    act_bytes = batch * (text_shape + 128) * 4         # input + output, f32
    return pl.CostEstimate(
        flops=flops,
        transcendentals=0,
        bytes_accessed=weight_bytes + small_bytes + act_bytes,
    )


@functools.partial(jax.jit, static_argnames=())
def encoder_forward(x, params):
    """params: flat tuple of arrays in the kernel argument order."""
    batch, text_shape = x.shape
    n_in = 1 + len(params)
    vmem_spec = pl.BlockSpec(memory_space=pltpu.MemorySpace.VMEM)
    return pl.pallas_call(
        encoder_kernel,
        out_shape=jax.ShapeDtypeStruct((batch, 128), jnp.float32),
        in_specs=[vmem_spec] * n_in,
        out_specs=vmem_spec,
        cost_estimate=_cost_estimate(batch, text_shape),
        compiler_params=pltpu.CompilerParams(vmem_limit_bytes=64 << 20),
    )(x, *params)


def init_params(key, text_shape):
    """Deterministic synthetic parameters (PyTorch-Linear-like uniform init).

    Weights are stored in bfloat16 (HBM-bandwidth is the bottleneck); biases,
    gamma and beta stay float32.  Linear biases of the BN blocks are not
    materialized because training-mode BatchNorm cancels them exactly.
    """
    dims = [text_shape, 1024, 512, 256, 128, 128]
    params = []
    for i in range(5):
        fan_in, fan_out = dims[i], dims[i + 1]
        key, kw, kb = jax.random.split(key, 3)
        bound = 1.0 / (fan_in ** 0.5)
        w = jax.random.uniform(kw, (fan_in, fan_out), jnp.float32, -bound, bound)
        params.append(w.astype(jnp.bfloat16))
        if i in (0, 4):
            # Only the un-normalized first block and the final Linear keep a bias.
            b = jax.random.uniform(kb, (1, fan_out), jnp.float32, -bound, bound)
            params.append(b)
        else:
            # Blocks 2..4 carry BatchNorm gamma/beta instead.
            params.append(jnp.ones((1, fan_out), jnp.float32))   # gamma
            params.append(jnp.zeros((1, fan_out), jnp.float32))  # beta
    return tuple(params)


if __name__ == "__main__":
    key = jax.random.PRNGKey(0)
    key, kx = jax.random.split(key)

    batch = 8
    text_shape = 256   # args.text_shape

    x = jax.random.normal(kx, (batch, text_shape), jnp.float32)
    params = init_params(key, text_shape)

    out = encoder_forward(x, params)
    out = jax.block_until_ready(out)
    assert out.shape == (batch, 128) and out.dtype == jnp.float32
    assert bool(jnp.all(jnp.isfinite(out)))
    print("KERNEL_OK")
</pallas_src>

<mosaic_0001>
module attributes {stable_mosaic.version = 11 : i64} {
  func.func @encoder_kernel(%arg0: memref<8x256xf32, #tpu.memory_space<vmem>>, %arg1: memref<256x1024xbf16, #tpu.memory_space<vmem>>, %arg2: memref<1x1024xf32, #tpu.memory_space<vmem>>, %arg3: memref<1024x512xbf16, #tpu.memory_space<vmem>>, %arg4: memref<1x512xf32, #tpu.memory_space<vmem>>, %arg5: memref<1x512xf32, #tpu.memory_space<vmem>>, %arg6: memref<512x256xbf16, #tpu.memory_space<vmem>>, %arg7: memref<1x256xf32, #tpu.memory_space<vmem>>, %arg8: memref<1x256xf32, #tpu.memory_space<vmem>>, %arg9: memref<256x128xbf16, #tpu.memory_space<vmem>>, %arg10: memref<1x128xf32, #tpu.memory_space<vmem>>, %arg11: memref<1x128xf32, #tpu.memory_space<vmem>>, %arg12: memref<128x128xbf16, #tpu.memory_space<vmem>>, %arg13: memref<1x128xf32, #tpu.memory_space<vmem>>, %arg14: memref<8x128xf32, #tpu.memory_space<vmem>>) attributes {dimension_semantics = [], scalar_prefetch = 0 : i64, scratch_operands = 0 : i64, tpu.core_type = #tpu.core_type<tc>} {
    %c0 = arith.constant 0 : index
    %c0_0 = arith.constant 0 : index
    %0 = vector.load %arg0[%c0, %c0_0] : memref<8x256xf32, #tpu.memory_space<vmem>>, vector<8x256xf32>
    %1 = arith.truncf %0 : vector<8x256xf32> to vector<8x256xbf16>
    %c0_1 = arith.constant 0 : index
    %c0_2 = arith.constant 0 : index
    %2 = vector.load %arg1[%c0_1, %c0_2] : memref<256x1024xbf16, #tpu.memory_space<vmem>>, vector<256x1024xbf16>
    %cst = arith.constant dense<0.000000e+00> : vector<8x1024xf32>
    %3 = tpu.matmul %1, %2, %cst {dimension_numbers = #tpu.dot_dimension_numbers<[1], [0], [0], [1], [0, 0, 1, 1], [], []>} : vector<8x256xbf16>, vector<256x1024xbf16>, vector<8x1024xf32> -> vector<8x1024xf32>
    %c0_3 = arith.constant 0 : index
    %c0_4 = arith.constant 0 : index
    %4 = vector.load %arg2[%c0_3, %c0_4] : memref<1x1024xf32, #tpu.memory_space<vmem>>, vector<1x1024xf32>
    %5 = vector.broadcast %4 : vector<1x1024xf32> to vector<8x1024xf32>
    %6 = arith.addf %3, %5 : vector<8x1024xf32>
    %cst_5 = arith.constant 0.000000e+00 : f32
    %7 = vector.broadcast %cst_5 : f32 to vector<8x1024xf32>
    %8 = arith.cmpf ogt, %6, %7 : vector<8x1024xf32>
    %cst_6 = arith.constant 2.000000e-01 : f32
    %9 = vector.broadcast %cst_6 : f32 to vector<8x1024xf32>
    %10 = arith.mulf %9, %6 : vector<8x1024xf32>
    %11 = arith.select %8, %6, %10 : vector<8x1024xi1>, vector<8x1024xf32>
    %12 = arith.truncf %11 : vector<8x1024xf32> to vector<8x1024xbf16>
    %c0_7 = arith.constant 0 : index
    %c0_8 = arith.constant 0 : index
    %13 = vector.load %arg3[%c0_7, %c0_8] : memref<1024x512xbf16, #tpu.memory_space<vmem>>, vector<1024x512xbf16>
    %cst_9 = arith.constant dense<0.000000e+00> : vector<8x512xf32>
    %14 = tpu.matmul %12, %13, %cst_9 {dimension_numbers = #tpu.dot_dimension_numbers<[1], [0], [0], [1], [0, 0, 1, 1], [], []>} : vector<8x1024xbf16>, vector<1024x512xbf16>, vector<8x512xf32> -> vector<8x512xf32>
    %cst_10 = arith.constant dense<0.000000e+00> : vector<512xf32>
    %15 = vector.multi_reduction <add>, %14, %cst_10 [0] : vector<8x512xf32> to vector<512xf32>
    %16 = vector.shape_cast %15 : vector<512xf32> to vector<1x512xf32>
    %cst_11 = arith.constant 1.250000e-01 : f32
    %17 = vector.broadcast %cst_11 : f32 to vector<1x512xf32>
    %18 = arith.mulf %16, %17 : vector<1x512xf32>
    %19 = arith.mulf %14, %14 : vector<8x512xf32>
    %cst_12 = arith.constant dense<0.000000e+00> : vector<512xf32>
    %20 = vector.multi_reduction <add>, %19, %cst_12 [0] : vector<8x512xf32> to vector<512xf32>
    %21 = vector.shape_cast %20 : vector<512xf32> to vector<1x512xf32>
    %cst_13 = arith.constant 1.250000e-01 : f32
    %22 = vector.broadcast %cst_13 : f32 to vector<1x512xf32>
    %23 = arith.mulf %21, %22 : vector<1x512xf32>
    %24 = arith.mulf %18, %18 : vector<1x512xf32>
    %25 = arith.subf %23, %24 : vector<1x512xf32>
    %c0_14 = arith.constant 0 : index
    %c0_15 = arith.constant 0 : index
    %26 = vector.load %arg4[%c0_14, %c0_15] : memref<1x512xf32, #tpu.memory_space<vmem>>, vector<1x512xf32>
    %cst_16 = arith.constant 9.99999974E-6 : f32
    %27 = vector.broadcast %cst_16 : f32 to vector<1x512xf32>
    %28 = arith.addf %25, %27 : vector<1x512xf32>
    %29 = math.rsqrt %28 : vector<1x512xf32>
    %30 = arith.mulf %26, %29 : vector<1x512xf32>
    %c0_17 = arith.constant 0 : index
    %c0_18 = arith.constant 0 : index
    %31 = vector.load %arg5[%c0_17, %c0_18] : memref<1x512xf32, #tpu.memory_space<vmem>>, vector<1x512xf32>
    %32 = arith.mulf %18, %30 : vector<1x512xf32>
    %33 = arith.subf %31, %32 : vector<1x512xf32>
    %34 = vector.broadcast %30 : vector<1x512xf32> to vector<8x512xf32>
    %35 = arith.mulf %14, %34 : vector<8x512xf32>
    %36 = vector.broadcast %33 : vector<1x512xf32> to vector<8x512xf32>
    %37 = arith.addf %35, %36 : vector<8x512xf32>
    %cst_19 = arith.constant 0.000000e+00 : f32
    %38 = vector.broadcast %cst_19 : f32 to vector<8x512xf32>
    %39 = arith.cmpf ogt, %37, %38 : vector<8x512xf32>
    %cst_20 = arith.constant 2.000000e-01 : f32
    %40 = vector.broadcast %cst_20 : f32 to vector<8x512xf32>
    %41 = arith.mulf %40, %37 : vector<8x512xf32>
    %42 = arith.select %39, %37, %41 : vector<8x512xi1>, vector<8x512xf32>
    %43 = arith.truncf %42 : vector<8x512xf32> to vector<8x512xbf16>
    %c0_21 = arith.constant 0 : index
    %c0_22 = arith.constant 0 : index
    %44 = vector.load %arg6[%c0_21, %c0_22] : memref<512x256xbf16, #tpu.memory_space<vmem>>, vector<512x256xbf16>
    %cst_23 = arith.constant dense<0.000000e+00> : vector<8x256xf32>
    %45 = tpu.matmul %43, %44, %cst_23 {dimension_numbers = #tpu.dot_dimension_numbers<[1], [0], [0], [1], [0, 0, 1, 1], [], []>} : vector<8x512xbf16>, vector<512x256xbf16>, vector<8x256xf32> -> vector<8x256xf32>
    %cst_24 = arith.constant dense<0.000000e+00> : vector<256xf32>
    %46 = vector.multi_reduction <add>, %45, %cst_24 [0] : vector<8x256xf32> to vector<256xf32>
    %47 = vector.shape_cast %46 : vector<256xf32> to vector<1x256xf32>
    %cst_25 = arith.constant 1.250000e-01 : f32
    %48 = vector.broadcast %cst_25 : f32 to vector<1x256xf32>
    %49 = arith.mulf %47, %48 : vector<1x256xf32>
    %50 = arith.mulf %45, %45 : vector<8x256xf32>
    %cst_26 = arith.constant dense<0.000000e+00> : vector<256xf32>
    %51 = vector.multi_reduction <add>, %50, %cst_26 [0] : vector<8x256xf32> to vector<256xf32>
    %52 = vector.shape_cast %51 : vector<256xf32> to vector<1x256xf32>
    %cst_27 = arith.constant 1.250000e-01 : f32
    %53 = vector.broadcast %cst_27 : f32 to vector<1x256xf32>
    %54 = arith.mulf %52, %53 : vector<1x256xf32>
    %55 = arith.mulf %49, %49 : vector<1x256xf32>
    %56 = arith.subf %54, %55 : vector<1x256xf32>
    %c0_28 = arith.constant 0 : index
    %c0_29 = arith.constant 0 : index
    %57 = vector.load %arg7[%c0_28, %c0_29] : memref<1x256xf32, #tpu.memory_space<vmem>>, vector<1x256xf32>
    %cst_30 = arith.constant 9.99999974E-6 : f32
    %58 = vector.broadcast %cst_30 : f32 to vector<1x256xf32>
    %59 = arith.addf %56, %58 : vector<1x256xf32>
    %60 = math.rsqrt %59 : vector<1x256xf32>
    %61 = arith.mulf %57, %60 : vector<1x256xf32>
    %c0_31 = arith.constant 0 : index
    %c0_32 = arith.constant 0 : index
    %62 = vector.load %arg8[%c0_31, %c0_32] : memref<1x256xf32, #tpu.memory_space<vmem>>, vector<1x256xf32>
    %63 = arith.mulf %49, %61 : vector<1x256xf32>
    %64 = arith.subf %62, %63 : vector<1x256xf32>
    %65 = vector.broadcast %61 : vector<1x256xf32> to vector<8x256xf32>
    %66 = arith.mulf %45, %65 : vector<8x256xf32>
    %67 = vector.broadcast %64 : vector<1x256xf32> to vector<8x256xf32>
    %68 = arith.addf %66, %67 : vector<8x256xf32>
    %cst_33 = arith.constant 0.000000e+00 : f32
    %69 = vector.broadcast %cst_33 : f32 to vector<8x256xf32>
    %70 = arith.cmpf ogt, %68, %69 : vector<8x256xf32>
    %cst_34 = arith.constant 2.000000e-01 : f32
    %71 = vector.broadcast %cst_34 : f32 to vector<8x256xf32>
    %72 = arith.mulf %71, %68 : vector<8x256xf32>
    %73 = arith.select %70, %68, %72 : vector<8x256xi1>, vector<8x256xf32>
    %74 = arith.truncf %73 : vector<8x256xf32> to vector<8x256xbf16>
    %c0_35 = arith.constant 0 : index
    %c0_36 = arith.constant 0 : index
    %75 = vector.load %arg9[%c0_35, %c0_36] : memref<256x128xbf16, #tpu.memory_space<vmem>>, vector<256x128xbf16>
    %cst_37 = arith.constant dense<0.000000e+00> : vector<8x128xf32>
    %76 = tpu.matmul %74, %75, %cst_37 {dimension_numbers = #tpu.dot_dimension_numbers<[1], [0], [0], [1], [0, 0, 1, 1], [], []>} : vector<8x256xbf16>, vector<256x128xbf16>, vector<8x128xf32> -> vector<8x128xf32>
    %cst_38 = arith.constant dense<0.000000e+00> : vector<128xf32>
    %77 = vector.multi_reduction <add>, %76, %cst_38 [0] : vector<8x128xf32> to vector<128xf32>
    %78 = vector.shape_cast %77 : vector<128xf32> to vector<1x128xf32>
    %cst_39 = arith.constant 1.250000e-01 : f32
    %79 = vector.broadcast %cst_39 : f32 to vector<1x128xf32>
    %80 = arith.mulf %78, %79 : vector<1x128xf32>
    %81 = arith.mulf %76, %76 : vector<8x128xf32>
    %cst_40 = arith.constant dense<0.000000e+00> : vector<128xf32>
    %82 = vector.multi_reduction <add>, %81, %cst_40 [0] : vector<8x128xf32> to vector<128xf32>
    %83 = vector.shape_cast %82 : vector<128xf32> to vector<1x128xf32>
    %cst_41 = arith.constant 1.250000e-01 : f32
    %84 = vector.broadcast %cst_41 : f32 to vector<1x128xf32>
    %85 = arith.mulf %83, %84 : vector<1x128xf32>
    %86 = arith.mulf %80, %80 : vector<1x128xf32>
    %87 = arith.subf %85, %86 : vector<1x128xf32>
    %c0_42 = arith.constant 0 : index
    %c0_43 = arith.constant 0 : index
    %88 = vector.load %arg10[%c0_42, %c0_43] : memref<1x128xf32, #tpu.memory_space<vmem>>, vector<1x128xf32>
    %cst_44 = arith.constant 9.99999974E-6 : f32
    %89 = vector.broadcast %cst_44 : f32 to vector<1x128xf32>
    %90 = arith.addf %87, %89 : vector<1x128xf32>
    %91 = math.rsqrt %90 : vector<1x128xf32>
    %92 = arith.mulf %88, %91 : vector<1x128xf32>
    %c0_45 = arith.constant 0 : index
    %c0_46 = arith.constant 0 : index
    %93 = vector.load %arg11[%c0_45, %c0_46] : memref<1x128xf32, #tpu.memory_space<vmem>>, vector<1x128xf32>
    %94 = arith.mulf %80, %92 : vector<1x128xf32>
    %95 = arith.subf %93, %94 : vector<1x128xf32>
    %96 = vector.broadcast %92 : vector<1x128xf32> to vector<8x128xf32>
    %97 = arith.mulf %76, %96 : vector<8x128xf32>
    %98 = vector.broadcast %95 : vector<1x128xf32> to vector<8x128xf32>
    %99 = arith.addf %97, %98 : vector<8x128xf32>
    %cst_47 = arith.constant 0.000000e+00 : f32
    %100 = vector.broadcast %cst_47 : f32 to vector<8x128xf32>
    %101 = arith.cmpf ogt, %99, %100 : vector<8x128xf32>
    %cst_48 = arith.constant 2.000000e-01 : f32
    %102 = vector.broadcast %cst_48 : f32 to vector<8x128xf32>
    %103 = arith.mulf %102, %99 : vector<8x128xf32>
    %104 = arith.select %101, %99, %103 : vector<8x128xi1>, vector<8x128xf32>
    %105 = arith.truncf %104 : vector<8x128xf32> to vector<8x128xbf16>
    %c0_49 = arith.constant 0 : index
    %c0_50 = arith.constant 0 : index
    %106 = vector.load %arg12[%c0_49, %c0_50] : memref<128x128xbf16, #tpu.memory_space<vmem>>, vector<128x128xbf16>
    %cst_51 = arith.constant dense<0.000000e+00> : vector<8x128xf32>
    %107 = tpu.matmul %105, %106, %cst_51 {dimension_numbers = #tpu.dot_dimension_numbers<[1], [0], [0], [1], [0, 0, 1, 1], [], []>} : vector<8x128xbf16>, vector<128x128xbf16>, vector<8x128xf32> -> vector<8x128xf32>
    %c0_52 = arith.constant 0 : index
    %c0_53 = arith.constant 0 : index
    %108 = vector.load %arg13[%c0_52, %c0_53] : memref<1x128xf32, #tpu.memory_space<vmem>>, vector<1x128xf32>
    %109 = vector.broadcast %108 : vector<1x128xf32> to vector<8x128xf32>
    %110 = arith.addf %107, %109 : vector<8x128xf32>
    %c0_54 = arith.constant 0 : index
    %c0_55 = arith.constant 0 : index
    %111 = vector.load %arg14[%c0_54, %c0_55] : memref<8x128xf32, #tpu.memory_space<vmem>>, vector<8x128xf32>
    tpu.vector_store %arg14[%c0_54, %c0_55], %110 {strides = array<i32>} : memref<8x128xf32, #tpu.memory_space<vmem>>, vector<8x128xf32>,
    return
  }
}

</mosaic_0001>

<bundles_post_ra>
// kernel: encoder_forward.1
= control target key start
LH: loop header
LB: loop body
LE: loop exit
PB: predicated region body
PF: predicated region fallthrough
CT: control target
= control target key end

     0   :  { %19 = vsyncpa [#allocation3], 0  ;;  %s7236_s0 = inlined_call_operand.hbm [shape: f32[8,256], index: 0, kind: input, shape index: {}]   ;;  %s7237_s1 = inlined_call_operand.hbm [shape: bf16[256,1024], index: 1, kind: input, shape index: {}]   ;;  %s7238_s2 = inlined_call_operand.hbm [shape: f32[1,1024], index: 2, kind: input, shape index: {}]   ;;  %s7239_s3 = inlined_call_operand.hbm [shape: bf16[1024,512], index: 3, kind: input, shape index: {}]   ;;  %s7240_s4 = inlined_call_operand.hbm [shape: f32[1,512], index: 4, kind: input, shape index: {}]   ;;  %s7241_s5 = inlined_call_operand.vmem [shape: f32[1,512], index: 5, kind: input, shape index: {}]   ;;  %s7242_s6 = inlined_call_operand.hbm [shape: bf16[512,256], index: 6, kind: input, shape index: {}]   ;;  %s7243_s7 = inlined_call_operand.vmem [shape: f32[1,256], index: 7, kind: input, shape index: {}]   ;;  %s7244_s8 = inlined_call_operand.hbm [shape: f32[1,256], index: 8, kind: input, shape index: {}]   ;;  %s7245_s9 = inlined_call_operand.hbm [shape: bf16[256,128], index: 9, kind: input, shape index: {}]   ;;  %s7246_s10 = inlined_call_operand.vmem [shape: f32[1,128], index: 10, kind: input, shape index: {}]   ;;  %s7247_s11 = inlined_call_operand.vmem [shape: f32[1,128], index: 11, kind: input, shape index: {}]   ;;  %s7248_s12 = inlined_call_operand.hbm [shape: bf16[128,128], index: 12, kind: input, shape index: {}]   ;;  %s7249_s13 = inlined_call_operand.vmem [shape: f32[1,128], index: 13, kind: input, shape index: {}]   ;;  %s7250_s14 = inlined_call_operand.hbm [shape: f32[8,128], index: 14, kind: output, shape index: {}]  }
   0x1   :  { %20 = vsyncpa [#allocation6], 0 }
   0x2   :  { %21 = vsyncpa [#allocation9], 0 }
   0x3   :  { %22 = vsyncpa [#allocation12], 0 }
   0x4   :  { %23 = vsyncpa [#allocation15], 0  ;;  %s40_s15 = sshll.u32 %s7237_s1, 4  ;;  %s41_s15 = int_to_ptr.hbm [resolvable:$true] %s40_s15 }
   0x5   :  { %24 = vsyncpa [#allocation4], 0  ;;  %s6878_s16 = smov [#allocation5]   ;;  %s64_s20 = sshll.u32 %s7239_s3, 4  ;;  %s65_s20 = int_to_ptr.hbm [resolvable:$true] %s64_s20 }
   0x6   :  { %s42_s17 = sshll.u32 %s6878_s16, 4  ;;  %s6879_s21 = smov 512   ;;  %s43_s17 = int_to_ptr.vmem [resolvable:$true] %s42_s17 }
   0x7   :  { %s6880_s22 = smov 32   ;;  %s6881_s23 = smov [#allocation8]  }
   0x8   :  { %48 = dma.hbm_to_vmem [thread:$0]  %s41_s15, 16384, %s43_s17, [#allocation6], %s6879_s21, %s6879_s21, %s6880_s22  }
   0x9   :  { %s66_s24 = sshll.u32 %s6881_s23, 4  ;;  %s6882_s25 = smov 256   ;;  %s67_s24 = int_to_ptr.vmem [resolvable:$true] %s66_s24 }
   0xa   :  { %s6883_s26 = smov 16   ;;  %s90_s28 = sshll.u32 %s7242_s6, 4  ;;  %s91_s28 = int_to_ptr.hbm [resolvable:$true] %s90_s28 }
   0xb   :  { %72 = dma.hbm_to_vmem [thread:$0]  %s65_s20, 32768, %s67_s24, [#allocation9], %s6882_s25, %s6882_s25, %s6883_s26  }
   0xc   :  { %s6884_s29 = smov [#allocation11]   ;;  %s116_s18 = sshll.u32 %s7245_s9, 4  ;;  %s117_s18 = int_to_ptr.hbm [resolvable:$true] %s116_s18 }
   0xd   :  { %s92_s30 = sshll.u32 %s6884_s29, 4  ;;  %s6885_s15 = smov 128   ;;  %s93_s30 = int_to_ptr.vmem [resolvable:$true] %s92_s30 }
   0xe   :  { %s6886_s17 = smov 8   ;;  %s6887_s19 = smov [#allocation14]  }
   0xf   :  { %98 = dma.hbm_to_vmem [thread:$0]  %s91_s28, 8192, %s93_s30, [#allocation12], %s6885_s15, %s6885_s15, %s6886_s17  }
  0x10   :  { %s118_s21 = sshll.u32 %s6887_s19, 4  ;;  %s6888_s20 = smov 64   ;;  %s119_s21 = int_to_ptr.vmem [resolvable:$true] %s118_s21 }
  0x11   :  { %s6889_s22 = smov 4   ;;  %s30_s24 = sshll.u32 %s7236_s0, 4  ;;  %s31_s24 = int_to_ptr.hbm [resolvable:$true] %s30_s24 }
  0x12   :  { %124 = dma.hbm_to_vmem [thread:$0]  %s117_s18, 2048, %s119_s21, [#allocation15], %s6888_s20, %s6888_s20, %s6889_s22  }
  0x13   :  { %s6890_s25 = smov [#allocation2]   ;;  %s54_s27 = sshll.u32 %s7238_s2, 4  ;;  %s55_s27 = int_to_ptr.hbm [resolvable:$true] %s54_s27 }
  0x14   :  { %s32_s9 = sshll.u32 %s6890_s25, 4  ;;  %s6891_s28 = smov [#allocation7]   ;;  %s33_s9 = int_to_ptr.vmem [resolvable:$true] %s32_s9 }
  0x15   :  { %35 = dma.hbm_to_vmem [thread:$0]  %s31_s24, 256, %s33_s9, [#allocation3]  }
  0x16   :  { %s56_s29 = sshll.u32 %s6891_s28, 4  ;;  %s78_s3 = sshll.u32 %s7240_s4, 4  ;;  %s57_s29 = int_to_ptr.vmem [resolvable:$true] %s56_s29  ;;  %s79_s3 = int_to_ptr.hbm [resolvable:$true] %s78_s3 }
  0x17   :  { %59 = dma.hbm_to_vmem [thread:$0]  %s55_s27, 128, %s57_s29, [#allocation6]  }
  0x18   :  { %s106_s15 = sshll.u32 %s7244_s8, 4  ;;  %s6892_s17 = smov [#allocation10]   ;;  %s107_s15 = int_to_ptr.hbm [resolvable:$true] %s106_s15 }
  0x19   :  { %s80_s19 = sshll.u32 %s6892_s17, 4  ;;  %s6893_s2 = smov [#allocation13]   ;;  %s81_s19 = int_to_ptr.vmem [resolvable:$true] %s80_s19 }
  0x1a   :  { %83 = dma.hbm_to_vmem [thread:$0]  %s79_s3, 64, %s81_s19, [#allocation9]  }
  0x1b   :  { %s108_s21 = sshll.u32 %s6893_s2, 4  ;;  %s133_s24 = sshll.u32 %s7248_s12, 4  ;;  %s109_s21 = int_to_ptr.vmem [resolvable:$true] %s108_s21  ;;  %s134_s24 = int_to_ptr.hbm [resolvable:$true] %s133_s24 }
  0x1c   :  { %111 = dma.hbm_to_vmem [thread:$0]  %s107_s15, 32, %s109_s21, [#allocation12]  }
  0x1d   :  { %s6894_s4 = smov [#allocation16]  }
  0x1e   :  { %s135_s25 = sshll.u32 %s6894_s4, 4  ;;  %s136_s25 = int_to_ptr.vmem [resolvable:$true] %s135_s25 }
  0x1f   :  { %141 = dma.hbm_to_vmem [thread:$0]  %s134_s24, 1024, %s136_s25, [#allocation15], %s6888_s20, %s6888_s20, %s6889_s22  }
  0x20   :  { %6866 = dma.done.wait [#allocation3], 256  }
  0x21   :  { %6867 = vsyncadd [#allocation3], 4294967040 }
  0x22   :  { %6868 = dma.done.wait [#allocation6], 16512  }
  0x23   :  { %6869 = vsyncadd [#allocation6], 4294950784 }
  0x24   :  { %6870 = dma.done.wait [#allocation9], 32832  }
  0x25   :  { %6871 = vsyncadd [#allocation9], 4294934464 }
  0x26   :  { %6872 = dma.done.wait [#allocation12], 8224  }
  0x27   :  { %6873 = vsyncadd [#allocation12], 4294959072 }
  0x28   :  { %6874 = dma.done.wait [#allocation15], 3072  }
  0x29   :  { %6875 = vsyncadd [#allocation15], 4294964224  ;;  %v4459_v0 = vld [vmem:[#allocation5 + $0x1c0] sm:$0xf]  ;;  %v6177_v5 = vld [vmem:[#allocation5 + $0x1c4] sm:$0xf] }
  0x2a   :  { %v6181_v1 = vld [vmem:[#allocation5 + $0x1dc] sm:$0xf0]  ;;  %v4461_v6 = vld [vmem:[#allocation5 + $0x1e0] sm:$0xf0]  ;;  %vm3282_vm13 = vcmask 1040384   ;;  %s6895_s27 = smov [#allocation17]  }
  0x2b   :  { %v4715_v2 = vld [vmem:[#allocation5 + $0x3c0] sm:$0xf]  ;;  %v4460_v3 = vor.u32 %v6181_v1, %v4459_v0  ;;  %v4464_v8 = vor.u32 %v6177_v5, %v4461_v6  ;;  %v6241_v9 = vld [vmem:[#allocation5 + $0x3c4] sm:$0xf]  ;;  %s4217_s28 = sshll.u32 %s6895_s27, 4  ;;  %s4218_s28 = int_to_ptr.vmem [resolvable:$true] %s4217_s28 }
  0x2c   :  { %v6245_v4 = vld [vmem:[#allocation5 + $0x3dc] sm:$0xf0]  ;;  %v4717_v10 = vld [vmem:[#allocation5 + $0x3e0] sm:$0xf0] }
  0x2d   :  { %v4716_v7 = vor.u32 %v6245_v4, %v4715_v2  ;;  %v4427_v11 = vld [vmem:[#allocation5 + $0x180] sm:$0xf]  ;;  %970 = vmatpush.bf16.msra.mxu0 %v4460_v3  ;;  %v4720_v12 = vor.u32 %v6241_v9, %v4717_v10  ;;  %996 = vmatpush.bf16.msra.mxu2 %v4464_v8  ;;  %v6169_v18 = vld [vmem:[#allocation5 + $0x184] sm:$0xf] }
  0x2e   :  { %v6173_v13 = vld [vmem:[#allocation5 + $0x19c] sm:$0xf0]  ;;  %v4429_v19 = vld [vmem:[#allocation5 + $0x1a0] sm:$0xf0] }
  0x2f   :  { %v4683_v14 = vld [vmem:[#allocation5 + $0x380] sm:$0xf]  ;;  %983 = vmatpush.bf16.msra.mxu1 %v4716_v7  ;;  %v4428_v16 = vor.u32 %v6173_v13, %v4427_v11  ;;  %v6233_v20 = vld [vmem:[#allocation5 + $0x384] sm:$0xf]  ;;  %1009 = vmatpush.bf16.msra.mxu3 %v4720_v12  ;;  %v4432_v21 = vor.u32 %v6169_v18, %v4429_v19 }
  0x30   :  { %v6237_v15 = vld [vmem:[#allocation5 + $0x39c] sm:$0xf0]  ;;  %v4685_v22 = vld [vmem:[#allocation5 + $0x3a0] sm:$0xf0] }
  0x31   :  { %v4684_v17 = vor.u32 %v6237_v15, %v4683_v14  ;;  %v4395_v23 = vld [vmem:[#allocation5 + $0x140] sm:$0xf]  ;;  %v4688_v25 = vor.u32 %v6233_v20, %v4685_v22  ;;  %v6161_v28 = vld [vmem:[#allocation5 + $0x144] sm:$0xf]  ;;  %971 = vmatpush.bf16.msra.mxu0 %v4428_v16  ;;  %997 = vmatpush.bf16.msra.mxu2 %v4432_v21 }
  0x32   :  { %v6165_v24 = vld [vmem:[#allocation5 + $0x15c] sm:$0xf0]  ;;  %v4397_v30 = vld [vmem:[#allocation5 + $0x160] sm:$0xf0] }
  0x33   :  { %v4651_v26 = vld [vmem:[#allocation5 + $0x340] sm:$0xf]  ;;  %v4396_v29 = vor.u32 %v6165_v24, %v4395_v23  ;;  %v6225_v31 = vld [vmem:[#allocation5 + $0x344] sm:$0xf]  ;;  %984 = vmatpush.bf16.msra.mxu1 %v4684_v17  ;;  %v4400_v34 = vor.u32 %v6161_v28, %v4397_v30  ;;  %1010 = vmatpush.bf16.msra.mxu3 %v4688_v25  ;;  %v4467_v28 = vld [vmem:[#allocation5 + $0x1c8] sm:$0xf] }
  0x34   :  { %v6229_v27 = vld [vmem:[#allocation5 + $0x35c] sm:$0xf0]  ;;  %v4653_v32 = vld [vmem:[#allocation5 + $0x360] sm:$0xf0]  ;;  %v4723_v30 = vld [vmem:[#allocation5 + $0x3c8] sm:$0xf] }
  0x35   :  { %v4652_v33 = vor.u32 %v6229_v27, %v4651_v26  ;;  %v4363_v35 = vld [vmem:[#allocation5 + $0x100] sm:$0xf]  ;;  %v4656_v38 = vor.u32 %v6225_v31, %v4653_v32  ;;  %v6153_v40 = vld [vmem:[#allocation5 + $0x104] sm:$0xf]  ;;  %972 = vmatpush.bf16.msra.mxu0 %v4396_v29  ;;  %998 = vmatpush.bf16.msra.mxu2 %v4400_v34  ;;  %v6182_v29 = vld [vmem:[#allocation5 + $0x1e4] sm:$0xf0] }
  0x36   :  { %v6157_v36 = vld [vmem:[#allocation5 + $0x11c] sm:$0xf0]  ;;  %v4365_v41 = vld [vmem:[#allocation5 + $0x120] sm:$0xf0]  ;;  %v6246_v32 = vld [vmem:[#allocation5 + $0x3e4] sm:$0xf0] }
  0x37   :  { %v4619_v37 = vld [vmem:[#allocation5 + $0x300] sm:$0xf]  ;;  %v6217_v42 = vld [vmem:[#allocation5 + $0x304] sm:$0xf]  ;;  %v4364_v44 = vor.u32 %v6157_v36, %v4363_v35  ;;  %985 = vmatpush.bf16.msra.mxu1 %v4652_v33  ;;  %v4368_v46 = vor.u32 %v6153_v40, %v4365_v41  ;;  %1011 = vmatpush.bf16.msra.mxu3 %v4656_v38  ;;  %v6178_v33 = vld [vmem:[#allocation5 + $0x1cc] sm:$0xf]  ;;  %v4468_v40 = vor.u32 %v6182_v29, %v4467_v28 }
  0x38   :  { %v6221_v39 = vld [vmem:[#allocation5 + $0x31c] sm:$0xf0]  ;;  %v4621_v43 = vld [vmem:[#allocation5 + $0x320] sm:$0xf0]  ;;  %v4469_v34 = vld [vmem:[#allocation5 + $0x1e8] sm:$0xf0]  ;;  %v4724_v41 = vor.u32 %v6246_v32, %v4723_v30 }
  0x39   :  { %v4620_v45 = vor.u32 %v6221_v39, %v4619_v37  ;;  %v4331_v47 = vld [vmem:[#allocation5 + $0xc0] sm:$0xf]  ;;  %v4624_v50 = vor.u32 %v6217_v42, %v4621_v43  ;;  %v6145_v52 = vld [vmem:[#allocation5 + $0xc4] sm:$0xf]  ;;  %973 = vmatpush.bf16.msra.mxu0 %v4364_v44  ;;  %999 = vmatpush.bf16.msra.mxu2 %v4368_v46  ;;  %v6242_v37 = vld [vmem:[#allocation5 + $0x3cc] sm:$0xf]  ;;  %v4472_v42 = vor.u32 %v6178_v33, %v4469_v34 }
  0x3a   :  { %v6149_v48 = vld [vmem:[#allocation5 + $0xdc] sm:$0xf0]  ;;  %v4333_v53 = vld [vmem:[#allocation5 + $0xe0] sm:$0xf0]  ;;  %v4725_v38 = vld [vmem:[#allocation5 + $0x3e8] sm:$0xf0] }
  0x3b   :  { %v4587_v49 = vld [vmem:[#allocation5 + $0x2c0] sm:$0xf]  ;;  %v6209_v54 = vld [vmem:[#allocation5 + $0x2c4] sm:$0xf]  ;;  %v4332_v56 = vor.u32 %v6149_v48, %v4331_v47  ;;  %986 = vmatpush.bf16.msra.mxu1 %v4620_v45  ;;  %v4336_v58 = vor.u32 %v6145_v52, %v4333_v53  ;;  %1012 = vmatpush.bf16.msra.mxu3 %v4624_v50  ;;  %v4435_v43 = vld [vmem:[#allocation5 + $0x188] sm:$0xf]  ;;  %v4728_v46 = vor.u32 %v6242_v37, %v4725_v38 }
  0x3c   :  { %v6213_v51 = vld [vmem:[#allocation5 + $0x2dc] sm:$0xf0]  ;;  %v4589_v55 = vld [vmem:[#allocation5 + $0x2e0] sm:$0xf0]  ;;  %v6174_v44 = vld [vmem:[#allocation5 + $0x1a4] sm:$0xf0] }
  0x3d   :  { %v4588_v57 = vor.u32 %v6213_v51, %v4587_v49  ;;  %v4299_v59 = vld [vmem:[#allocation5 + $0x80] sm:$0xf]  ;;  %v4592_v62 = vor.u32 %v6209_v54, %v4589_v55  ;;  %v6137_v0 = vld [vmem:[#allocation5 + $0x84] sm:$0xf]  ;;  %974 = vmatpush.bf16.msra.mxu0 %v4332_v56  ;;  %1000 = vmatpush.bf16.msra.mxu2 %v4336_v58  ;;  %v4691_v45 = vld [vmem:[#allocation5 + $0x388] sm:$0xf]  ;;  %v4436_v53 = vor.u32 %v6174_v44, %v4435_v43 }
  0x3e   :  { %v6141_v60 = vld [vmem:[#allocation5 + $0x9c] sm:$0xf0]  ;;  %v4301_v1 = vld [vmem:[#allocation5 + $0xa0] sm:$0xf0]  ;;  %v6238_v47 = vld [vmem:[#allocation5 + $0x3a4] sm:$0xf0] }
  0x3f   :  { %v4555_v61 = vld [vmem:[#allocation5 + $0x280] sm:$0xf]  ;;  %v6201_v2 = vld [vmem:[#allocation5 + $0x284] sm:$0xf]  ;;  %v4300_v4 = vor.u32 %v6141_v60, %v4299_v59  ;;  %987 = vmatpush.bf16.msra.mxu1 %v4588_v57  ;;  %v4304_v6 = vor.u32 %v6137_v0, %v4301_v1  ;;  %1013 = vmatpush.bf16.msra.mxu3 %v4592_v62  ;;  %v6170_v48 = vld [vmem:[#allocation5 + $0x18c] sm:$0xf]  ;;  %v4692_v56 = vor.u32 %v6238_v47, %v4691_v45 }
  0x40   :  { %v6205_v63 = vld [vmem:[#allocation5 + $0x29c] sm:$0xf0]  ;;  %v4557_v3 = vld [vmem:[#allocation5 + $0x2a0] sm:$0xf0]  ;;  %v4437_v49 = vld [vmem:[#allocation5 + $0x1a8] sm:$0xf0] }
  0x41   :  { %v4556_v5 = vor.u32 %v6205_v63, %v4555_v61  ;;  %v4267_v7 = vld [vmem:[#allocation5 + $0x40] sm:$0xf]  ;;  %v4560_v10 = vor.u32 %v6201_v2, %v4557_v3  ;;  %v6129_v12 = vld [vmem:[#allocation5 + $0x44] sm:$0xf]  ;;  %975 = vmatpush.bf16.msra.mxu0 %v4300_v4  ;;  %1001 = vmatpush.bf16.msra.mxu2 %v4304_v6  ;;  %v6234_v50 = vld [vmem:[#allocation5 + $0x38c] sm:$0xf]  ;;  %v4440_v57 = vor.u32 %v6170_v48, %v4437_v49 }
  0x42   :  { %v6133_v8 = vld [vmem:[#allocation5 + $0x5c] sm:$0xf0]  ;;  %v4269_v13 = vld [vmem:[#allocation5 + $0x60] sm:$0xf0]  ;;  %v4693_v51 = vld [vmem:[#allocation5 + $0x3a8] sm:$0xf0] }
  0x43   :  { %v4523_v9 = vld [vmem:[#allocation5 + $0x240] sm:$0xf]  ;;  %v6193_v14 = vld [vmem:[#allocation5 + $0x244] sm:$0xf]  ;;  %v4268_v16 = vor.u32 %v6133_v8, %v4267_v7  ;;  %988 = vmatpush.bf16.msra.mxu1 %v4556_v5  ;;  %v4272_v20 = vor.u32 %v6129_v12, %v4269_v13  ;;  %1014 = vmatpush.bf16.msra.mxu3 %v4560_v10  ;;  %v180_v52 = vld [vmem:[#allocation2] sm:$0xff]  ;;  %v4696_v61 = vor.u32 %v6234_v50, %v4693_v51 }
  0x44   :  { %v6197_v11 = vld [vmem:[#allocation5 + $0x25c] sm:$0xf0]  ;;  %v4525_v15 = vld [vmem:[#allocation5 + $0x260] sm:$0xf0]  ;;  %v4403_v54 = vld [vmem:[#allocation5 + $0x148] sm:$0xf]  ;;  %v7004_v55 = vpack.c.bf16 %v180_v52, %v180_v52 }
  0x45   :  { %v4235_v17 = vld [vmem:[#allocation5] sm:$0xf]  ;;  %v4524_v19 = vor.u32 %v6197_v11, %v4523_v9  ;;  %v6121_v23 = vld [vmem:[#allocation5 + $0x4] sm:$0xf]  ;;  %v4528_v24 = vor.u32 %v6193_v14, %v4525_v15  ;;  %976 = vmatpush.bf16.msra.mxu0 %v4268_v16  ;;  %1002 = vmatpush.bf16.msra.mxu2 %v4272_v20  ;;  %v6166_v58 = vld [vmem:[#allocation5 + $0x164] sm:$0xf0] }
  0x46   :  { %v6125_v18 = vld [vmem:[#allocation5 + $0x1c] sm:$0xf0]  ;;  %v4237_v25 = vld [vmem:[#allocation5 + $0x20] sm:$0xf0]  ;;  %v4659_v59 = vld [vmem:[#allocation5 + $0x348] sm:$0xf]  ;;  %v4404_v4 = vor.u32 %v6166_v58, %v4403_v54 }
  0x47   :  { %v4491_v21 = vld [vmem:[#allocation5 + $0x200] sm:$0xf]  ;;  %v6185_v26 = vld [vmem:[#allocation5 + $0x204] sm:$0xf]  ;;  %v4236_v31 = vor.u32 %v6125_v18, %v4235_v17  ;;  %989 = vmatpush.bf16.msra.mxu1 %v4524_v19  ;;  %v4240_v36 = vor.u32 %v6121_v23, %v4237_v25  ;;  %1015 = vmatpush.bf16.msra.mxu3 %v4528_v24  ;;  %v6230_v60 = vld [vmem:[#allocation5 + $0x364] sm:$0xf0] }
  0x48   :  { %v6189_v22 = vld [vmem:[#allocation5 + $0x21c] sm:$0xf0]  ;;  %v4493_v27 = vld [vmem:[#allocation5 + $0x220] sm:$0xf0]  ;;  %v6162_v62 = vld [vmem:[#allocation5 + $0x14c] sm:$0xf]  ;;  %v4660_v5 = vor.u32 %v6230_v60, %v4659_v59 }
  0x49   :  { %v4492_v35 = vor.u32 %v6189_v22, %v4491_v21  ;;  %v4496_v39 = vor.u32 %v6185_v26, %v4493_v27  ;;  %977 = vmatpush.bf16.msra.mxu0 %v4236_v31  ;;  %1003 = vmatpush.bf16.msra.mxu2 %v4240_v36  ;;  %v4405_v63 = vld [vmem:[#allocation5 + $0x168] sm:$0xf0]  ;;  %v181_v0 = vld [vmem:[#allocation2 + $0x8] sm:$0xff]  ;;  %v4371_v7 = vld [vmem:[#allocation5 + $0x108] sm:$0xf] }
  0x4a   :  { %v6226_v1 = vld [vmem:[#allocation5 + $0x34c] sm:$0xf]  ;;  %v7008_v3 = vpack.c.bf16 %v181_v0, %v181_v0  ;;  %v4408_v6 = vor.u32 %v6162_v62, %v4405_v63  ;;  %v6158_v8 = vld [vmem:[#allocation5 + $0x124] sm:$0xf0] }
  0x4b   :  { %990 = vmatpush.bf16.msra.mxu1 %v4492_v35  ;;  %1016 = vmatpush.bf16.msra.mxu3 %v4496_v39  ;;  %v4661_v2 = vld [vmem:[#allocation5 + $0x368] sm:$0xf0]  ;;  %v4627_v9 = vld [vmem:[#allocation5 + $0x308] sm:$0xf]  ;;  %v4372_v16 = vor.u32 %v6158_v8, %v4371_v7  ;;  %v6179_v7 = vld [vmem:[#allocation5 + $0x1d4] sm:$0xf] }
  0x4c   :  { %978 = vmatmul.bf16.vlgmr.msra.gmra.mxu0 %v7004_v55  ;;  %1004 = vmatmul.bf16.vlgmr.msra.gmra.mxu2 %v7004_v55  ;;  %v4664_v10 = vor.u32 %v6226_v1, %v4661_v2  ;;  %v6222_v11 = vld [vmem:[#allocation5 + $0x324] sm:$0xf0]  ;;  %v6154_v12 = vld [vmem:[#allocation5 + $0x10c] sm:$0xf]  ;;  %v4475_v1 = vld [vmem:[#allocation5 + $0x1d0] sm:$0xf] }
  0x4d   :  { %1022 = vmatpush.bf16.msrb.mxu0 %v4468_v40  ;;  %1048 = vmatpush.bf16.msrb.mxu2 %v4472_v42  ;;  %v4373_v13 = vld [vmem:[#allocation5 + $0x128] sm:$0xf0]  ;;  %v4628_v17 = vor.u32 %v6222_v11, %v4627_v9  ;;  %v4339_v19 = vld [vmem:[#allocation5 + $0xc8] sm:$0xf]  ;;  %v6183_v2 = vld [vmem:[#allocation5 + $0x1ec] sm:$0xf0] }
  0x4e   :  { %991 = vmatmul.bf16.vlgmr.msra.gmra.mxu1 %v7008_v3  ;;  %v6218_v14 = vld [vmem:[#allocation5 + $0x30c] sm:$0xf]  ;;  %1017 = vmatmul.bf16.vlgmr.msra.gmra.mxu3 %v7008_v3  ;;  %v4376_v18 = vor.u32 %v6154_v12, %v4373_v13  ;;  %v6150_v20 = vld [vmem:[#allocation5 + $0xe4] sm:$0xf0]  ;;  %v4477_v8 = vld [vmem:[#allocation5 + $0x1f0] sm:$0xf0] }
  0x4f   :  { %1035 = vmatpush.bf16.msrb.mxu1 %v4724_v41  ;;  %1061 = vmatpush.bf16.msrb.mxu3 %v4728_v46  ;;  %v4629_v15 = vld [vmem:[#allocation5 + $0x328] sm:$0xf0]  ;;  %v4595_v21 = vld [vmem:[#allocation5 + $0x2c8] sm:$0xf]  ;;  %v4340_v28 = vor.u32 %v6150_v20, %v4339_v19  ;;  %v6243_v11 = vld [vmem:[#allocation5 + $0x3d4] sm:$0xf] }
  0x50   :  { %v4632_v22 = vor.u32 %v6218_v14, %v4629_v15  ;;  %v6214_v23 = vld [vmem:[#allocation5 + $0x2e4] sm:$0xf0]  ;;  %v6146_v24 = vld [vmem:[#allocation5 + $0xcc] sm:$0xf]  ;;  %v4733_v12 = vld [vmem:[#allocation5 + $0x3f0] sm:$0xf0]  ;;  %v4476_v14 = vor.u32 %v6183_v2, %v4475_v1 }
  0x51   :  { %1023 = vmatpush.bf16.msrb.mxu0 %v4436_v53  ;;  %1049 = vmatpush.bf16.msrb.mxu2 %v4440_v57  ;;  %v4341_v25 = vld [vmem:[#allocation5 + $0xe8] sm:$0xf0]  ;;  %v4596_v29 = vor.u32 %v6214_v23, %v4595_v21  ;;  %v4307_v31 = vld [vmem:[#allocation5 + $0x88] sm:$0xf]  ;;  %v4699_v19 = vld [vmem:[#allocation5 + $0x390] sm:$0xf]  ;;  %v4736_v20 = vor.u32 %v6243_v11, %v4733_v12 }
  0x52   :  { %v6210_v26 = vld [vmem:[#allocation5 + $0x2cc] sm:$0xf]  ;;  %v4344_v30 = vor.u32 %v6146_v24, %v4341_v25  ;;  %v6142_v32 = vld [vmem:[#allocation5 + $0xa4] sm:$0xf0]  ;;  %v6239_v21 = vld [vmem:[#allocation5 + $0x3ac] sm:$0xf0] }
  0x53   :  { %1036 = vmatpush.bf16.msrb.mxu1 %v4692_v56  ;;  %1062 = vmatpush.bf16.msrb.mxu3 %v4696_v61  ;;  %v4597_v27 = vld [vmem:[#allocation5 + $0x2e8] sm:$0xf0]  ;;  %v4563_v33 = vld [vmem:[#allocation5 + $0x288] sm:$0xf]  ;;  %v4308_v40 = vor.u32 %v6142_v32, %v4307_v31  ;;  %v4445_v23 = vld [vmem:[#allocation5 + $0x1b0] sm:$0xf0] }
  0x54   :  { %v4600_v34 = vor.u32 %v6210_v26, %v4597_v27  ;;  %v6206_v35 = vld [vmem:[#allocation5 + $0x2a4] sm:$0xf0]  ;;  %v6138_v36 = vld [vmem:[#allocation5 + $0x8c] sm:$0xf]  ;;  %v6235_v24 = vld [vmem:[#allocation5 + $0x394] sm:$0xf]  ;;  %v4700_v27 = vor.u32 %v6239_v21, %v4699_v19 }
  0x55   :  { %1024 = vmatpush.bf16.msrb.mxu0 %v4404_v4  ;;  %1050 = vmatpush.bf16.msrb.mxu2 %v4408_v6  ;;  %v4309_v37 = vld [vmem:[#allocation5 + $0xa8] sm:$0xf0]  ;;  %v4564_v41 = vor.u32 %v6206_v35, %v4563_v33  ;;  %v4275_v43 = vld [vmem:[#allocation5 + $0x48] sm:$0xf]  ;;  %v4731_v4 = vld [vmem:[#allocation5 + $0x3d0] sm:$0xf] }
  0x56   :  { %v6202_v38 = vld [vmem:[#allocation5 + $0x28c] sm:$0xf]  ;;  %v4312_v42 = vor.u32 %v6138_v36, %v4309_v37  ;;  %v6134_v44 = vld [vmem:[#allocation5 + $0x64] sm:$0xf0]  ;;  %v6247_v6 = vld [vmem:[#allocation5 + $0x3ec] sm:$0xf0] }
  0x57   :  { %1037 = vmatpush.bf16.msrb.mxu1 %v4660_v5  ;;  %1063 = vmatpush.bf16.msrb.mxu3 %v4664_v10  ;;  %v4565_v39 = vld [vmem:[#allocation5 + $0x2a8] sm:$0xf0]  ;;  %v4531_v45 = vld [vmem:[#allocation5 + $0x248] sm:$0xf]  ;;  %v4276_v52 = vor.u32 %v6134_v44, %v4275_v43  ;;  %v4732_v15 = vor.u32 %v6247_v6, %v4731_v4  ;;  %v4701_v25 = vld [vmem:[#allocation5 + $0x3b0] sm:$0xf0] }
  0x58   :  { %v4568_v46 = vor.u32 %v6202_v38, %v4565_v39  ;;  %v6198_v47 = vld [vmem:[#allocation5 + $0x264] sm:$0xf0]  ;;  %v6130_v48 = vld [vmem:[#allocation5 + $0x4c] sm:$0xf]  ;;  %v4667_v31 = vld [vmem:[#allocation5 + $0x350] sm:$0xf]  ;;  %v4704_v32 = vor.u32 %v6235_v24, %v4701_v25 }
  0x59   :  { %1025 = vmatpush.bf16.msrb.mxu0 %v4372_v16  ;;  %1051 = vmatpush.bf16.msrb.mxu2 %v4376_v18  ;;  %v4277_v49 = vld [vmem:[#allocation5 + $0x68] sm:$0xf0]  ;;  %v4243_v53 = vld [vmem:[#allocation5 + $0x8] sm:$0xf]  ;;  %v4532_v56 = vor.u32 %v6198_v47, %v4531_v45  ;;  %v4480_v16 = vor.u32 %v6179_v7, %v4477_v8  ;;  %v6175_v18 = vld [vmem:[#allocation5 + $0x1ac] sm:$0xf0] }
  0x5a   :  { %v6194_v50 = vld [vmem:[#allocation5 + $0x24c] sm:$0xf]  ;;  %v6126_v54 = vld [vmem:[#allocation5 + $0x24] sm:$0xf0]  ;;  %v4280_v57 = vor.u32 %v6130_v48, %v4277_v49  ;;  %v6231_v33 = vld [vmem:[#allocation5 + $0x36c] sm:$0xf0] }
  0x5b   :  { %1038 = vmatpush.bf16.msrb.mxu1 %v4628_v17  ;;  %1064 = vmatpush.bf16.msrb.mxu3 %v4632_v22  ;;  %v4533_v51 = vld [vmem:[#allocation5 + $0x268] sm:$0xf0]  ;;  %v4499_v58 = vld [vmem:[#allocation5 + $0x208] sm:$0xf]  ;;  %v4244_v5 = vor.u32 %v6126_v54, %v4243_v53  ;;  %v4443_v17 = vld [vmem:[#allocation5 + $0x190] sm:$0xf]  ;;  %v4668_v39 = vor.u32 %v6231_v33, %v4667_v31 }
  0x5c   :  { %v6190_v59 = vld [vmem:[#allocation5 + $0x224] sm:$0xf0]  ;;  %v6122_v60 = vld [vmem:[#allocation5 + $0xc] sm:$0xf]  ;;  %v4536_v61 = vor.u32 %v6194_v50, %v4533_v51  ;;  %v6171_v22 = vld [vmem:[#allocation5 + $0x194] sm:$0xf]  ;;  %v4444_v26 = vor.u32 %v6175_v18, %v4443_v17 }
  0x5d   :  { %1026 = vmatpush.bf16.msrb.mxu0 %v4340_v28  ;;  %1052 = vmatpush.bf16.msrb.mxu2 %v4344_v30  ;;  %v4245_v62 = vld [vmem:[#allocation5 + $0x28] sm:$0xf0]  ;;  %v4500_v9 = vor.u32 %v6190_v59, %v4499_v58  ;;  %v4448_v28 = vor.u32 %v6171_v22, %v4445_v23  ;;  %v6167_v30 = vld [vmem:[#allocation5 + $0x16c] sm:$0xf0]  ;;  %v4413_v35 = vld [vmem:[#allocation5 + $0x170] sm:$0xf0] }
  0x5e   :  { %v6186_v63 = vld [vmem:[#allocation5 + $0x20c] sm:$0xf]  ;;  %v4248_v10 = vor.u32 %v6122_v60, %v4245_v62  ;;  %v6227_v36 = vld [vmem:[#allocation5 + $0x354] sm:$0xf]  ;;  %v4635_v43 = vld [vmem:[#allocation5 + $0x310] sm:$0xf] }
  0x5f   :  { %1039 = vmatpush.bf16.msrb.mxu1 %v4596_v29  ;;  %1065 = vmatpush.bf16.msrb.mxu3 %v4600_v34  ;;  %v4501_v0 = vld [vmem:[#allocation5 + $0x228] sm:$0xf0]  ;;  %v4411_v29 = vld [vmem:[#allocation5 + $0x150] sm:$0xf]  ;;  %v6163_v34 = vld [vmem:[#allocation5 + $0x154] sm:$0xf] }
  0x60   :  { %v4504_v13 = vor.u32 %v6186_v63, %v4501_v0  ;;  %v4669_v37 = vld [vmem:[#allocation5 + $0x370] sm:$0xf0]  ;;  %v4412_v38 = vor.u32 %v6167_v30, %v4411_v29  ;;  %v6223_v45 = vld [vmem:[#allocation5 + $0x32c] sm:$0xf0] }
  0x61   :  { %1027 = vmatpush.bf16.msrb.mxu0 %v4308_v40  ;;  %1053 = vmatpush.bf16.msrb.mxu2 %v4312_v42  ;;  %v4416_v40 = vor.u32 %v6163_v34, %v4413_v35  ;;  %v6159_v42 = vld [vmem:[#allocation5 + $0x12c] sm:$0xf0]  ;;  %v4672_v44 = vor.u32 %v6227_v36, %v4669_v37  ;;  %v4381_v47 = vld [vmem:[#allocation5 + $0x130] sm:$0xf0]  ;;  %v4636_v51 = vor.u32 %v6223_v45, %v4635_v43  ;;  %v4483_v36 = vld [vmem:[#allocation5 + $0x1d8] sm:$0xf] }
  0x62   :  { %v6219_v48 = vld [vmem:[#allocation5 + $0x314] sm:$0xf]  ;;  %v4347_v53 = vld [vmem:[#allocation5 + $0xd0] sm:$0xf]  ;;  %v6184_v37 = vld [vmem:[#allocation5 + $0x1f4] sm:$0xf0] }
  0x63   :  { %1040 = vmatpush.bf16.msrb.mxu1 %v4564_v41  ;;  %1066 = vmatpush.bf16.msrb.mxu3 %v4568_v46  ;;  %v4379_v41 = vld [vmem:[#allocation5 + $0x110] sm:$0xf]  ;;  %v6155_v46 = vld [vmem:[#allocation5 + $0x114] sm:$0xf]  ;;  %v6244_v45 = vld [vmem:[#allocation5 + $0x3dc] sm:$0xf] }
  0x64   :  { %v4637_v49 = vld [vmem:[#allocation5 + $0x330] sm:$0xf0]  ;;  %v4380_v50 = vor.u32 %v6159_v42, %v4379_v41  ;;  %v6151_v54 = vld [vmem:[#allocation5 + $0xec] sm:$0xf0]  ;;  %v6180_v41 = vld [vmem:[#allocation5 + $0x1dc] sm:$0xf] }
  0x65   :  { %1028 = vmatpush.bf16.msrb.mxu0 %v4276_v52  ;;  %1054 = vmatpush.bf16.msrb.mxu2 %v4280_v57  ;;  %v4384_v52 = vor.u32 %v6155_v46, %v4381_v47  ;;  %v4640_v57 = vor.u32 %v6219_v48, %v4637_v49  ;;  %v6215_v58 = vld [vmem:[#allocation5 + $0x2ec] sm:$0xf0]  ;;  %v6147_v59 = vld [vmem:[#allocation5 + $0xd4] sm:$0xf]  ;;  %v4348_v63 = vor.u32 %v6151_v54, %v4347_v53  ;;  %v4485_v42 = vld [vmem:[#allocation5 + $0x1f8] sm:$0xf0] }
  0x66   :  { %v4349_v60 = vld [vmem:[#allocation5 + $0xf0] sm:$0xf0]  ;;  %v4315_v2 = vld [vmem:[#allocation5 + $0x90] sm:$0xf]  ;;  %v4741_v46 = vld [vmem:[#allocation5 + $0x3f8] sm:$0xf0]  ;;  %v4484_v48 = vor.u32 %v6184_v37, %v4483_v36 }
  0x67   :  { %1041 = vmatpush.bf16.msrb.mxu1 %v4532_v56  ;;  %1067 = vmatpush.bf16.msrb.mxu3 %v4536_v61  ;;  %v4603_v56 = vld [vmem:[#allocation5 + $0x2d0] sm:$0xf]  ;;  %v6211_v61 = vld [vmem:[#allocation5 + $0x2d4] sm:$0xf]  ;;  %v4352_v1 = vor.u32 %v6147_v59, %v4349_v60  ;;  %v4707_v53 = vld [vmem:[#allocation5 + $0x398] sm:$0xf]  ;;  %v4744_v54 = vor.u32 %v6244_v45, %v4741_v46 }
  0x68   :  { %v4605_v62 = vld [vmem:[#allocation5 + $0x2f0] sm:$0xf0]  ;;  %v4604_v0 = vor.u32 %v6215_v58, %v4603_v56  ;;  %v6143_v4 = vld [vmem:[#allocation5 + $0xac] sm:$0xf0]  ;;  %v6240_v56 = vld [vmem:[#allocation5 + $0x3b4] sm:$0xf0] }
  0x69   :  { %1029 = vmatpush.bf16.msrb.mxu0 %v4244_v5  ;;  %1055 = vmatpush.bf16.msrb.mxu2 %v4248_v10  ;;  %v4571_v5 = vld [vmem:[#allocation5 + $0x290] sm:$0xf]  ;;  %v4608_v6 = vor.u32 %v6211_v61, %v4605_v62  ;;  %v6139_v8 = vld [vmem:[#allocation5 + $0x94] sm:$0xf]  ;;  %v4316_v12 = vor.u32 %v6143_v4, %v4315_v2  ;;  %v4453_v58 = vld [vmem:[#allocation5 + $0x1b8] sm:$0xf0]  ;;  %v4708_v62 = vor.u32 %v6240_v56, %v4707_v53 }
  0x6a   :  { %v6207_v7 = vld [vmem:[#allocation5 + $0x2ac] sm:$0xf0]  ;;  %v6203_v10 = vld [vmem:[#allocation5 + $0x294] sm:$0xf]  ;;  %v6236_v59 = vld [vmem:[#allocation5 + $0x39c] sm:$0xf] }
  0x6b   :  { %1042 = vmatpush.bf16.msrb.mxu1 %v4500_v9  ;;  %1068 = vmatpush.bf16.msrb.mxu3 %v4504_v13  ;;  %v4317_v9 = vld [vmem:[#allocation5 + $0xb0] sm:$0xf0]  ;;  %v4572_v13 = vor.u32 %v6207_v7, %v4571_v5  ;;  %v4539_v17 = vld [vmem:[#allocation5 + $0x250] sm:$0xf]  ;;  %v4709_v60 = vld [vmem:[#allocation5 + $0x3b8] sm:$0xf0] }
  0x6c   :  { %1030 = vmatmul.bf16.vlgmr.msrb.gmra.mxu0 %v7004_v55  ;;  %1056 = vmatmul.bf16.vlgmr.msrb.gmra.mxu2 %v7004_v55  ;;  %v4573_v11 = vld [vmem:[#allocation5 + $0x2b0] sm:$0xf0]  ;;  %v6199_v19 = vld [vmem:[#allocation5 + $0x26c] sm:$0xf0]  ;;  %v4675_v2 = vld [vmem:[#allocation5 + $0x358] sm:$0xf]  ;;  %v4712_v4 = vor.u32 %v6236_v59, %v4709_v60 }
  0x6d   :  { %1074 = vmatpush.bf16.msra.mxu0 %v4476_v14  ;;  %1100 = vmatpush.bf16.msra.mxu2 %v4480_v16  ;;  %v4320_v14 = vor.u32 %v6139_v8, %v4317_v9  ;;  %v6135_v16 = vld [vmem:[#allocation5 + $0x6c] sm:$0xf0]  ;;  %v4576_v18 = vor.u32 %v6203_v10, %v4573_v11  ;;  %v4285_v21 = vld [vmem:[#allocation5 + $0x70] sm:$0xf0]  ;;  %v6232_v5 = vld [vmem:[#allocation5 + $0x374] sm:$0xf0] }
  0x6e   :  { %1043 = vmatmul.bf16.vlgmr.msrb.gmra.mxu1 %v7008_v3  ;;  %1069 = vmatmul.bf16.vlgmr.msrb.gmra.mxu3 %v7008_v3  ;;  %v6195_v22 = vld [vmem:[#allocation5 + $0x254] sm:$0xf]  ;;  %v4251_v25 = vld [vmem:[#allocation5 + $0x10] sm:$0xf]  ;;  %v4421_v7 = vld [vmem:[#allocation5 + $0x178] sm:$0xf0]  ;;  %v4676_v11 = vor.u32 %v6232_v5, %v4675_v2 }
  0x6f   :  { %1087 = vmatpush.bf16.msra.mxu1 %v4732_v15  ;;  %1113 = vmatpush.bf16.msra.mxu3 %v4736_v20  ;;  %v4283_v15 = vld [vmem:[#allocation5 + $0x50] sm:$0xf]  ;;  %v6131_v20 = vld [vmem:[#allocation5 + $0x54] sm:$0xf]  ;;  %v6228_v8 = vld [vmem:[#allocation5 + $0x35c] sm:$0xf] }
  0x70   :  { %v4541_v23 = vld [vmem:[#allocation5 + $0x270] sm:$0xf0]  ;;  %v4284_v24 = vor.u32 %v6135_v16, %v4283_v15  ;;  %v4507_v29 = vld [vmem:[#allocation5 + $0x210] sm:$0xf]  ;;  %v4677_v9 = vld [vmem:[#allocation5 + $0x378] sm:$0xf0] }
  0x71   :  { %1075 = vmatpush.bf16.msra.mxu0 %v4444_v26  ;;  %1101 = vmatpush.bf16.msra.mxu2 %v4448_v28  ;;  %v6127_v26 = vld [vmem:[#allocation5 + $0x2c] sm:$0xf0]  ;;  %v4288_v28 = vor.u32 %v6131_v20, %v4285_v21  ;;  %v6123_v31 = vld [vmem:[#allocation5 + $0x14] sm:$0xf]  ;;  %v4643_v15 = vld [vmem:[#allocation5 + $0x318] sm:$0xf]  ;;  %v4680_v16 = vor.u32 %v6228_v8, %v4677_v9 }
  0x72   :  { %v6191_v30 = vld [vmem:[#allocation5 + $0x22c] sm:$0xf0]  ;;  %v4253_v33 = vld [vmem:[#allocation5 + $0x30] sm:$0xf0]  ;;  %v6220_v20 = vld [vmem:[#allocation5 + $0x31c] sm:$0xf] }
  0x73   :  { %1088 = vmatpush.bf16.msra.mxu1 %v4700_v27  ;;  %1114 = vmatpush.bf16.msra.mxu3 %v4704_v32  ;;  %v4540_v27 = vor.u32 %v6199_v19, %v4539_v17  ;;  %v4544_v32 = vor.u32 %v6195_v22, %v4541_v23  ;;  %v6187_v34 = vld [vmem:[#allocation5 + $0x214] sm:$0xf]  ;;  %v4508_v43 = vor.u32 %v6191_v30, %v4507_v29  ;;  %v6224_v17 = vld [vmem:[#allocation5 + $0x334] sm:$0xf0]  ;;  %v4389_v19 = vld [vmem:[#allocation5 + $0x138] sm:$0xf0] }
  0x74   :  { %v4509_v35 = vld [vmem:[#allocation5 + $0x230] sm:$0xf0]  ;;  %v4645_v21 = vld [vmem:[#allocation5 + $0x338] sm:$0xf0]  ;;  %v4644_v23 = vor.u32 %v6224_v17, %v4643_v15  ;;  %v6216_v29 = vld [vmem:[#allocation5 + $0x2f4] sm:$0xf0] }
  0x75   :  { %1076 = vmatpush.bf16.msra.mxu0 %v4412_v38  ;;  %1102 = vmatpush.bf16.msra.mxu2 %v4416_v40  ;;  %v4739_v38 = vld [vmem:[#allocation5 + $0x3d8] sm:$0xf]  ;;  %v4512_v47 = vor.u32 %v6187_v34, %v4509_v35  ;;  %v6148_v30 = vld [vmem:[#allocation5 + $0xdc] sm:$0xf]  ;;  %v4859_v8 = vld [vmem:[#allocation8 + $0xe0] sm:$0xf] }
  0x76   :  { %v6248_v40 = vld [vmem:[#allocation5 + $0x3f4] sm:$0xf0]  ;;  %v4581_v45 = vld [vmem:[#allocation5 + $0x2b8] sm:$0xf0]  ;;  %v5115_v17 = vld [vmem:[#allocation8 + $0x2e0] sm:$0xf] }
  0x77   :  { %1089 = vmatpush.bf16.msra.mxu1 %v4668_v39  ;;  %1115 = vmatpush.bf16.msra.mxu3 %v4672_v44  ;;  %v4252_v39 = vor.u32 %v6127_v26, %v4251_v25  ;;  %v4256_v44 = vor.u32 %v6123_v31, %v4253_v33  ;;  %v4740_v49 = vor.u32 %v6248_v40, %v4739_v38  ;;  %v4355_v25 = vld [vmem:[#allocation5 + $0xd8] sm:$0xf]  ;;  %v4357_v31 = vld [vmem:[#allocation5 + $0xf8] sm:$0xf0] }
  0x78   :  { %v6152_v26 = vld [vmem:[#allocation5 + $0xf4] sm:$0xf0]  ;;  %v4613_v33 = vld [vmem:[#allocation5 + $0x2f8] sm:$0xf0]  ;;  %v4360_v36 = vor.u32 %v6148_v30, %v4357_v31  ;;  %v4955_v31 = vld [vmem:[#allocation8 + $0x1a0] sm:$0xf] }
  0x79   :  { %1077 = vmatpush.bf16.msra.mxu0 %v4380_v50  ;;  %1103 = vmatpush.bf16.msra.mxu2 %v4384_v52  ;;  %v4488_v50 = vor.u32 %v6180_v41, %v4485_v42  ;;  %v6176_v52 = vld [vmem:[#allocation5 + $0x1b4] sm:$0xf0]  ;;  %v4356_v34 = vor.u32 %v6152_v26, %v4355_v25  ;;  %v6140_v42 = vld [vmem:[#allocation5 + $0x9c] sm:$0xf]  ;;  %v5099_v26 = vld [vmem:[#allocation8 + $0x2c0] sm:$0xf] }
  0x7a   :  { %v4323_v37 = vld [vmem:[#allocation5 + $0x98] sm:$0xf]  ;;  %v4293_v56 = vld [vmem:[#allocation5 + $0x78] sm:$0xf0] }
  0x7b   :  { %1090 = vmatpush.bf16.msra.mxu1 %v4636_v51  ;;  %1116 = vmatpush.bf16.msra.mxu3 %v4640_v57  ;;  %v4451_v51 = vld [vmem:[#allocation5 + $0x198] sm:$0xf]  ;;  %v6172_v57 = vld [vmem:[#allocation5 + $0x19c] sm:$0xf] }
  0x7c   :  { %v4452_v61 = vor.u32 %v6176_v52, %v4451_v51  ;;  %v6144_v38 = vld [vmem:[#allocation5 + $0xb4] sm:$0xf0]  ;;  %v4261_v5 = vld [vmem:[#allocation5 + $0x38] sm:$0xf0] }
  0x7d   :  { %1078 = vmatpush.bf16.msra.mxu0 %v4348_v63  ;;  %1104 = vmatpush.bf16.msra.mxu2 %v4352_v1  ;;  %v4456_v63 = vor.u32 %v6172_v57, %v4453_v58  ;;  %v6168_v1 = vld [vmem:[#allocation5 + $0x174] sm:$0xf0]  ;;  %v4324_v46 = vor.u32 %v6144_v38, %v4323_v37  ;;  %v6196_v57 = vld [vmem:[#allocation5 + $0x25c] sm:$0xf]  ;;  %v4939_v38 = vld [vmem:[#allocation8 + $0x180] sm:$0xf] }
  0x7e   :  { %v6208_v41 = vld [vmem:[#allocation5 + $0x2b4] sm:$0xf0]  ;;  %v4549_v58 = vld [vmem:[#allocation5 + $0x278] sm:$0xf0] }
  0x7f   :  { %1091 = vmatpush.bf16.msra.mxu1 %v4604_v0  ;;  %1117 = vmatpush.bf16.msra.mxu3 %v4608_v6  ;;  %v4419_v0 = vld [vmem:[#allocation5 + $0x158] sm:$0xf]  ;;  %v6164_v6 = vld [vmem:[#allocation5 + $0x15c] sm:$0xf]  ;;  %v4552_v2 = vor.u32 %v6196_v57, %v4549_v58 }
  0x80   :  { %v4420_v10 = vor.u32 %v6168_v1, %v4419_v0  ;;  %v4547_v51 = vld [vmem:[#allocation5 + $0x258] sm:$0xf] }
  0x81   :  { %1079 = vmatpush.bf16.msra.mxu0 %v4316_v12  ;;  %1105 = vmatpush.bf16.msra.mxu2 %v4320_v14  ;;  %v4424_v12 = vor.u32 %v6164_v6, %v4421_v7  ;;  %v6160_v14 = vld [vmem:[#allocation5 + $0x134] sm:$0xf0]  ;;  %v6188_v6 = vld [vmem:[#allocation5 + $0x21c] sm:$0xf] }
  0x82   :  { %v6200_v53 = vld [vmem:[#allocation5 + $0x274] sm:$0xf0]  ;;  %v4517_v7 = vld [vmem:[#allocation5 + $0x238] sm:$0xf0] }
  0x83   :  { %1092 = vmatpush.bf16.msra.mxu1 %v4572_v13  ;;  %1118 = vmatpush.bf16.msra.mxu3 %v4576_v18  ;;  %v4387_v13 = vld [vmem:[#allocation5 + $0x118] sm:$0xf]  ;;  %v6156_v18 = vld [vmem:[#allocation5 + $0x11c] sm:$0xf]  ;;  %v4520_v15 = vor.u32 %v6188_v6, %v4517_v7  ;;  %v4747_v6 = vld [vmem:[#allocation8] sm:$0xf] }
  0x84   :  { %v4388_v22 = vor.u32 %v6160_v14, %v4387_v13  ;;  %v4259_v60 = vld [vmem:[#allocation5 + $0x18] sm:$0xf] }
  0x85   :  { %1080 = vmatpush.bf16.msra.mxu0 %v4284_v24  ;;  %1106 = vmatpush.bf16.msra.mxu2 %v4288_v28  ;;  %v4392_v24 = vor.u32 %v6156_v18, %v4389_v19  ;;  %v4648_v28 = vor.u32 %v6220_v20, %v4645_v21  ;;  %v4515_v0 = vld [vmem:[#allocation5 + $0x218] sm:$0xf]  ;;  %v4843_v19 = vld [vmem:[#allocation8 + $0xc0] sm:$0xf] }
  0x86   :  { %v6192_v1 = vld [vmem:[#allocation5 + $0x234] sm:$0xf0] }
  0x87   :  { %1093 = vmatpush.bf16.msra.mxu1 %v4540_v27  ;;  %1119 = vmatpush.bf16.msra.mxu3 %v4544_v32  ;;  %v4611_v27 = vld [vmem:[#allocation5 + $0x2d8] sm:$0xf]  ;;  %v6212_v32 = vld [vmem:[#allocation5 + $0x2dc] sm:$0xf]  ;;  %v4516_v13 = vor.u32 %v6192_v1, %v4515_v0 }
  0x88   :  { %v4612_v35 = vor.u32 %v6216_v29, %v4611_v27  ;;  %v4616_v40 = vor.u32 %v6212_v32, %v4613_v33  ;;  %v6279_v9 = vld [vmem:[#allocation8 + $0xec] sm:$0xf0] }
  0x89   :  { %1081 = vmatpush.bf16.msra.mxu0 %v4252_v39  ;;  %1107 = vmatpush.bf16.msra.mxu2 %v4256_v44  ;;  %v4579_v39 = vld [vmem:[#allocation5 + $0x298] sm:$0xf]  ;;  %v6204_v44 = vld [vmem:[#allocation5 + $0x29c] sm:$0xf] }
  0x8a   :  { %v4584_v52 = vor.u32 %v6204_v44, %v4581_v45  ;;  %v6343_v18 = vld [vmem:[#allocation8 + $0x2ec] sm:$0xf0]  ;;  %v4923_v45 = vld [vmem:[#allocation8 + $0x160] sm:$0xf] }
  0x8b   :  { %1094 = vmatpush.bf16.msra.mxu1 %v4508_v43  ;;  %1120 = vmatpush.bf16.msra.mxu3 %v4512_v47  ;;  %v4325_v43 = vld [vmem:[#allocation5 + $0xb8] sm:$0xf0]  ;;  %v4580_v47 = vor.u32 %v6208_v41, %v4579_v39  ;;  %v6275_v20 = vld [vmem:[#allocation8 + $0xcc] sm:$0xf0] }
  0x8c   :  { %1082 = vmatmul.bf16.vlgmr.msra.gmra.mxu0 %v7004_v55  ;;  %1108 = vmatmul.bf16.vlgmr.msra.gmra.mxu2 %v7004_v55  ;;  %v4844_v25 = vor.u32 %v6275_v20, %v4843_v19  ;;  %v6339_v27 = vld [vmem:[#allocation8 + $0x2cc] sm:$0xf0]  ;;  %v5051_v19 = vld [vmem:[#allocation8 + $0x260] sm:$0xf] }
  0x8d   :  { %1126 = vmatpush.bf16.msrb.mxu0 %v4484_v48  ;;  %1152 = vmatpush.bf16.msrb.mxu2 %v4488_v50  ;;  %v4328_v48 = vor.u32 %v6140_v42, %v4325_v43  ;;  %v6136_v50 = vld [vmem:[#allocation5 + $0x74] sm:$0xf0]  ;;  %v5100_v33 = vor.u32 %v6339_v27, %v5099_v26  ;;  %v4795_v43 = vld [vmem:[#allocation8 + $0x60] sm:$0xf] }
  0x8e   :  { %1095 = vmatmul.bf16.vlgmr.msra.gmra.mxu1 %v7008_v3  ;;  %1121 = vmatmul.bf16.vlgmr.msra.gmra.mxu3 %v7008_v3  ;;  %v6271_v29 = vld [vmem:[#allocation8 + $0xac] sm:$0xf0] }
  0x8f   :  { %1139 = vmatpush.bf16.msrb.mxu1 %v4740_v49  ;;  %1165 = vmatpush.bf16.msrb.mxu3 %v4744_v54  ;;  %v4291_v49 = vld [vmem:[#allocation5 + $0x58] sm:$0xf]  ;;  %v6132_v54 = vld [vmem:[#allocation5 + $0x5c] sm:$0xf] }
  0x90   :  { %v4292_v59 = vor.u32 %v6136_v50, %v4291_v49  ;;  %v6303_v32 = vld [vmem:[#allocation8 + $0x1ac] sm:$0xf0] }
  0x91   :  { %1127 = vmatpush.bf16.msrb.mxu0 %v4452_v61  ;;  %1153 = vmatpush.bf16.msrb.mxu2 %v4456_v63  ;;  %v4548_v61 = vor.u32 %v6200_v53, %v4547_v51  ;;  %v6128_v63 = vld [vmem:[#allocation5 + $0x34] sm:$0xf0]  ;;  %v4956_v37 = vor.u32 %v6303_v32, %v4955_v31  ;;  %v4907_v51 = vld [vmem:[#allocation8 + $0x140] sm:$0xf] }
  0x92   :  { %v6299_v39 = vld [vmem:[#allocation8 + $0x18c] sm:$0xf0]  ;;  %v5083_v53 = vld [vmem:[#allocation8 + $0x2a0] sm:$0xf] }
  0x93   :  { %1140 = vmatpush.bf16.msrb.mxu1 %v4708_v62  ;;  %1166 = vmatpush.bf16.msrb.mxu3 %v4712_v4  ;;  %v4296_v62 = vor.u32 %v6132_v54, %v4293_v56  ;;  %v6124_v4 = vld [vmem:[#allocation5 + $0x1c] sm:$0xf]  ;;  %v6375_v41 = vld [vmem:[#allocation8 + $0x3ec] sm:$0xf0]  ;;  %v4763_v56 = vld [vmem:[#allocation8 + $0x20] sm:$0xf] }
  0x94   :  { %v4264_v14 = vor.u32 %v6124_v4, %v4261_v5  ;;  %v6263_v44 = vld [vmem:[#allocation8 + $0x6c] sm:$0xf0]  ;;  %v5035_v31 = vld [vmem:[#allocation8 + $0x240] sm:$0xf] }
  0x95   :  { %1128 = vmatpush.bf16.msrb.mxu0 %v4420_v10  ;;  %1154 = vmatpush.bf16.msrb.mxu2 %v4424_v12  ;;  %v4260_v10 = vor.u32 %v6128_v63, %v4259_v60  ;;  %v6311_v12 = vld [vmem:[#allocation8 + $0x1ec] sm:$0xf0]  ;;  %v4891_v63 = vld [vmem:[#allocation8 + $0x120] sm:$0xf] }
  0x96   :  { %v6259_v49 = vld [vmem:[#allocation8 + $0x4c] sm:$0xf0] }
  0x97   :  { %1141 = vmatpush.bf16.msrb.mxu1 %v4676_v11  ;;  %1167 = vmatpush.bf16.msrb.mxu3 %v4680_v16  ;;  %v4987_v11 = vld [vmem:[#allocation8 + $0x1e0] sm:$0xf]  ;;  %v4860_v16 = vor.u32 %v6279_v9, %v4859_v8  ;;  %v6335_v57 = vld [vmem:[#allocation8 + $0x2ac] sm:$0xf0] }
  0x98   :  { %v4988_v21 = vor.u32 %v6311_v12, %v4987_v11  ;;  %v6255_v58 = vld [vmem:[#allocation8 + $0x2c] sm:$0xf0]  ;;  %v5084_v60 = vor.u32 %v6335_v57, %v5083_v53  ;;  %v5371_v8 = vld [vmem:[#allocation8 + $0x4e0] sm:$0xf] }
  0x99   :  { %1129 = vmatpush.bf16.msrb.mxu0 %v4388_v22  ;;  %1155 = vmatpush.bf16.msrb.mxu2 %v4392_v24  ;;  %v4971_v22 = vld [vmem:[#allocation8 + $0x1c0] sm:$0xf]  ;;  %v5116_v24 = vor.u32 %v6343_v18, %v5115_v17  ;;  %v6287_v0 = vld [vmem:[#allocation8 + $0x12c] sm:$0xf0]  ;;  %v4764_v5 = vor.u32 %v6255_v58, %v4763_v56 }
  0x9a   :  { %v6331_v4 = vld [vmem:[#allocation8 + $0x28c] sm:$0xf0]  ;;  %v4892_v11 = vor.u32 %v6287_v0, %v4891_v63  ;;  %v4875_v12 = vld [vmem:[#allocation8 + $0x100] sm:$0xf] }
  0x9b   :  { %1142 = vmatpush.bf16.msrb.mxu1 %v4644_v23  ;;  %1168 = vmatpush.bf16.msrb.mxu3 %v4648_v28  ;;  %v6307_v23 = vld [vmem:[#allocation8 + $0x1cc] sm:$0xf0]  ;;  %v4827_v28 = vld [vmem:[#allocation8 + $0xa0] sm:$0xf] }
  0x9c   :  { %v4972_v30 = vor.u32 %v6307_v23, %v4971_v22  ;;  %v6251_v7 = vld [vmem:[#allocation8 + $0xc] sm:$0xf0]  ;;  %v5195_v23 = vld [vmem:[#allocation8 + $0x380] sm:$0xf] }
  0x9d   :  { %1130 = vmatpush.bf16.msrb.mxu0 %v4356_v34  ;;  %1156 = vmatpush.bf16.msrb.mxu2 %v4360_v36  ;;  %v4828_v34 = vor.u32 %v6271_v29, %v4827_v28  ;;  %v6267_v36 = vld [vmem:[#allocation8 + $0x8c] sm:$0xf0]  ;;  %v5019_v58 = vld [vmem:[#allocation8 + $0x220] sm:$0xf] }
  0x9e   :  { %v6439_v17 = vld [vmem:[#allocation8 + $0x5ec] sm:$0xf0]  ;;  %v5163_v63 = vld [vmem:[#allocation8 + $0x340] sm:$0xf] }
  0x9f   :  { %1143 = vmatpush.bf16.msrb.mxu1 %v4612_v35  ;;  %1169 = vmatpush.bf16.msrb.mxu3 %v4616_v40  ;;  %v4811_v35 = vld [vmem:[#allocation8 + $0x80] sm:$0xf]  ;;  %v6327_v20 = vld [vmem:[#allocation8 + $0x26c] sm:$0xf0] }
  0xa0   :  { %v5243_v40 = vld [vmem:[#allocation8 + $0x3e0] sm:$0xf]  ;;  %v5052_v22 = vor.u32 %v6327_v20, %v5051_v19  ;;  %v6363_v27 = vld [vmem:[#allocation8 + $0x38c] sm:$0xf0] }
  0xa1   :  { %1131 = vmatpush.bf16.msrb.mxu0 %v4324_v46  ;;  %1157 = vmatpush.bf16.msrb.mxu2 %v4328_v48  ;;  %v5244_v42 = vor.u32 %v6375_v41, %v5243_v40  ;;  %v6295_v46 = vld [vmem:[#allocation8 + $0x16c] sm:$0xf0]  ;;  %v4779_v48 = vld [vmem:[#allocation8 + $0x40] sm:$0xf]  ;;  %v7024_v40 = vld [vmem:[#allocation7] sm:$0xff] }
  0xa2   :  { %v4924_v50 = vor.u32 %v6295_v46, %v4923_v45  ;;  %v4780_v54 = vor.u32 %v6259_v49, %v4779_v48  ;;  %v6403_v28 = vld [vmem:[#allocation8 + $0x4cc] sm:$0xf0]  ;;  %v5467_v41 = vld [vmem:[#allocation8 + $0x5a0] sm:$0xf] }
  0xa3   :  { %1144 = vmatpush.bf16.msrb.mxu1 %v4580_v47  ;;  %1170 = vmatpush.bf16.msrb.mxu3 %v4584_v52  ;;  %v4796_v47 = vor.u32 %v6263_v44, %v4795_v43  ;;  %v6291_v52 = vld [vmem:[#allocation8 + $0x14c] sm:$0xf0]  ;;  %v314_v43 = vperm.slane %v7024_v40, 0  ;;  %v5323_v44 = vld [vmem:[#allocation8 + $0x480] sm:$0xf] }
  0xa4   :  { %v6323_v32 = vld [vmem:[#allocation8 + $0x24c] sm:$0xf0]  ;;  %v5451_v46 = vld [vmem:[#allocation8 + $0x580] sm:$0xf] }
  0xa5   :  { %1132 = vmatpush.bf16.msrb.mxu0 %v4292_v59  ;;  %1158 = vmatpush.bf16.msrb.mxu2 %v4296_v62  ;;  %v4908_v59 = vor.u32 %v6291_v52, %v4907_v51  ;;  %v6371_v62 = vld [vmem:[#allocation8 + $0x3cc] sm:$0xf0]  ;;  %v5179_v48 = vld [vmem:[#allocation8 + $0x360] sm:$0xf] }
  0xa6   :  { %v6359_v49 = vld [vmem:[#allocation8 + $0x36c] sm:$0xf0]  ;;  %v5307_v52 = vld [vmem:[#allocation8 + $0x460] sm:$0xf] }
  0xa7   :  { %1145 = vmatpush.bf16.msrb.mxu1 %v4548_v61  ;;  %1171 = vmatpush.bf16.msrb.mxu3 %v4552_v2  ;;  %v5227_v61 = vld [vmem:[#allocation8 + $0x3c0] sm:$0xf]  ;;  %v5180_v53 = vor.u32 %v6359_v49, %v5179_v48  ;;  %v6391_v56 = vld [vmem:[#allocation8 + $0x46c] sm:$0xf0] }
  0xa8   :  { %v5228_v1 = vor.u32 %v6371_v62, %v5227_v61  ;;  %v5067_v2 = vld [vmem:[#allocation8 + $0x280] sm:$0xf]  ;;  %v6423_v62 = vld [vmem:[#allocation8 + $0x56c] sm:$0xf0] }
  0xa9   :  { %1133 = vmatpush.bf16.msrb.mxu0 %v4260_v10  ;;  %1159 = vmatpush.bf16.msrb.mxu2 %v4264_v14  ;;  %v5068_v9 = vor.u32 %v6331_v4, %v5067_v2  ;;  %v6407_v10 = vld [vmem:[#allocation8 + $0x4ec] sm:$0xf0]  ;;  %v5499_v14 = vld [vmem:[#allocation8 + $0x5e0] sm:$0xf]  ;;  %v315_v2 = vperm.slane %v7024_v40, 1  ;;  %v5308_v4 = vor.u32 %v6391_v56, %v5307_v52 }
  0xaa   :  { %v5500_v29 = vor.u32 %v6439_v17, %v5499_v14  ;;  %v5435_v61 = vld [vmem:[#allocation8 + $0x560] sm:$0xf]  ;;  %v6355_v0 = vld [vmem:[#allocation8 + $0x34c] sm:$0xf0] }
  0xab   :  { %1146 = vmatpush.bf16.msrb.mxu1 %v4516_v13  ;;  %1172 = vmatpush.bf16.msrb.mxu3 %v4520_v15  ;;  %v6283_v13 = vld [vmem:[#allocation8 + $0x10c] sm:$0xf0]  ;;  %v5211_v15 = vld [vmem:[#allocation8 + $0x3a0] sm:$0xf] }
  0xac   :  { %1134 = vmatmul.bf16.vlgmr.msrb.gmra.mxu0 %v7004_v55  ;;  %1160 = vmatmul.bf16.vlgmr.msrb.gmra.mxu2 %v7004_v55  ;;  %v4812_v55 = vor.u32 %v6267_v36, %v4811_v35  ;;  %v4876_v26 = vor.u32 %v6283_v13, %v4875_v12  ;;  %v5036_v35 = vor.u32 %v6323_v32, %v5035_v31  ;;  %v5419_v13 = vld [vmem:[#allocation8 + $0x540] sm:$0xf]  ;;  %v6419_v14 = vld [vmem:[#allocation8 + $0x54c] sm:$0xf0] }
  0xad   :  { %2746 = vmatpush.bf16.msra.mxu0 %v4860_v16  ;;  %2772 = vmatpush.bf16.msra.mxu2 %v5116_v24  ;;  %v6367_v16 = vld [vmem:[#allocation8 + $0x3ac] sm:$0xf0]  ;;  %v5372_v24 = vor.u32 %v6407_v10, %v5371_v8  ;;  %v5003_v10 = vld [vmem:[#allocation8 + $0x200] sm:$0xf] }
  0xae   :  { %1147 = vmatmul.bf16.vlgmr.msrb.gmra.mxu1 %v7008_v3  ;;  %1173 = vmatmul.bf16.vlgmr.msrb.gmra.mxu3 %v7008_v3  ;;  %v4940_v3 = vor.u32 %v6299_v39, %v4939_v38  ;;  %v5212_v18 = vor.u32 %v6367_v16, %v5211_v15  ;;  %v6399_v38 = vld [vmem:[#allocation8 + $0x4ac] sm:$0xf0]  ;;  %v5147_v17 = vld [vmem:[#allocation8 + $0x320] sm:$0xf] }
  0xaf   :  { %2759 = vmatpush.bf16.msra.mxu1 %v4988_v21  ;;  %2785 = vmatpush.bf16.msra.mxu3 %v5244_v42  ;;  %v4748_v21 = vor.u32 %v6251_v7, %v4747_v6  ;;  %v6431_v42 = vld [vmem:[#allocation8 + $0x5ac] sm:$0xf0]  ;;  %v5164_v6 = vor.u32 %v6355_v0, %v5163_v63  ;;  %v5403_v31 = vld [vmem:[#allocation8 + $0x520] sm:$0xf] }
  0xb0   :  { %v5468_v45 = vor.u32 %v6431_v42, %v5467_v41  ;;  %v6387_v8 = vld [vmem:[#allocation8 + $0x44c] sm:$0xf0]  ;;  %v6277_v42 = vld [vmem:[#allocation8 + $0xe4] sm:$0xf] }
  0xb1   :  { %2747 = vmatpush.bf16.msra.mxu0 %v4844_v25  ;;  %2773 = vmatpush.bf16.msra.mxu2 %v5100_v33  ;;  %v5355_v25 = vld [vmem:[#allocation8 + $0x4c0] sm:$0xf]  ;;  %v6415_v32 = vld [vmem:[#allocation8 + $0x52c] sm:$0xf0] }
  0xb2   :  { %v5483_v33 = vld [vmem:[#allocation8 + $0x5c0] sm:$0xf]  ;;  %v5356_v36 = vor.u32 %v6403_v28, %v5355_v25  ;;  %v5420_v25 = vor.u32 %v6419_v14, %v5419_v13  ;;  %v6471_v28 = vld [vmem:[#allocation8 + $0x6ec] sm:$0xf0] }
  0xb3   :  { %2760 = vmatpush.bf16.msra.mxu1 %v4972_v30  ;;  %2786 = vmatpush.bf16.msra.mxu3 %v5228_v1  ;;  %v5196_v30 = vor.u32 %v6363_v27, %v5195_v23  ;;  %v5627_v27 = vld [vmem:[#allocation8 + $0x6e0] sm:$0xf]  ;;  %v6411_v48 = vld [vmem:[#allocation8 + $0x50c] sm:$0xf0] }
  0xb4   :  { %v6503_v52 = vld [vmem:[#allocation8 + $0x7ec] sm:$0xf0]  ;;  %v5723_v14 = vld [vmem:[#allocation8 + $0x7a0] sm:$0xf] }
  0xb5   :  { %2748 = vmatpush.bf16.msra.mxu0 %v4828_v34  ;;  %2774 = vmatpush.bf16.msra.mxu2 %v5084_v60  ;;  %v6435_v34 = vld [vmem:[#allocation8 + $0x5cc] sm:$0xf0] }
  0xb6   :  { %v5484_v39 = vor.u32 %v6435_v34, %v5483_v33  ;;  %v5259_v34 = vld [vmem:[#allocation8 + $0x400] sm:$0xf] }
  0xb7   :  { %2761 = vmatpush.bf16.msra.mxu1 %v4956_v37  ;;  %2787 = vmatpush.bf16.msra.mxu3 %v5212_v18  ;;  %v5339_v37 = vld [vmem:[#allocation8 + $0x4a0] sm:$0xf] }
  0xb9   :  { %2749 = vmatpush.bf16.msra.mxu0 %v4812_v55  ;;  %2775 = vmatpush.bf16.msra.mxu2 %v5068_v9  ;;  %v5340_v55 = vor.u32 %v6399_v38, %v5339_v37  ;;  %v5436_v9 = vor.u32 %v6423_v62, %v5435_v61  ;;  %v6347_v37 = vld [vmem:[#allocation8 + $0x30c] sm:$0xf0] }
  0xbb   :  { %2762 = vmatpush.bf16.msra.mxu1 %v4940_v3  ;;  %2788 = vmatpush.bf16.msra.mxu3 %v5196_v30  ;;  %v6395_v3 = vld [vmem:[#allocation8 + $0x48c] sm:$0xf0]  ;;  %v5628_v30 = vor.u32 %v6471_v28, %v5627_v27 }
  0xbc   :  { %v5324_v51 = vor.u32 %v6395_v3, %v5323_v44  ;;  %v6467_v44 = vld [vmem:[#allocation8 + $0x6cc] sm:$0xf0]  ;;  %v4861_v3 = vld [vmem:[#allocation8 + $0xf0] sm:$0xf0] }
  0xbd   :  { %2750 = vmatpush.bf16.msra.mxu0 %v4796_v47  ;;  %2776 = vmatpush.bf16.msra.mxu2 %v5052_v22  ;;  %v6427_v47 = vld [vmem:[#allocation8 + $0x58c] sm:$0xf0]  ;;  %v4864_v62 = vor.u32 %v6277_v42, %v4861_v3  ;;  %v5691_v3 = vld [vmem:[#allocation8 + $0x760] sm:$0xf] }
  0xbe   :  { %v5452_v57 = vor.u32 %v6427_v47, %v5451_v46  ;;  %v6351_v22 = vld [vmem:[#allocation8 + $0x32c] sm:$0xf0]  ;;  %v5387_v47 = vld [vmem:[#allocation8 + $0x500] sm:$0xf] }
  0xbf   :  { %2763 = vmatpush.bf16.msra.mxu1 %v4924_v50  ;;  %2789 = vmatpush.bf16.msra.mxu3 %v5180_v53  ;;  %v6309_v53 = vld [vmem:[#allocation8 + $0x1e4] sm:$0xf]  ;;  %v5388_v63 = vor.u32 %v6411_v48, %v5387_v47 }
  0xc1   :  { %2751 = vmatpush.bf16.msra.mxu0 %v4780_v54  ;;  %2777 = vmatpush.bf16.msra.mxu2 %v5036_v35  ;;  %v6379_v35 = vld [vmem:[#allocation8 + $0x40c] sm:$0xf0] }
  0xc3   :  { %2764 = vmatpush.bf16.msra.mxu1 %v4908_v59  ;;  %v6319_v59 = vld [vmem:[#allocation8 + $0x22c] sm:$0xf0]  ;;  %2790 = vmatpush.bf16.msra.mxu3 %v5164_v6 }
  0xc4   :  { %v5020_v60 = vor.u32 %v6319_v59, %v5019_v58  ;;  %v5595_v59 = vld [vmem:[#allocation8 + $0x6a0] sm:$0xf] }
  0xc5   :  { %2752 = vmatpush.bf16.msra.mxu0 %v4764_v5  ;;  %v5291_v5 = vld [vmem:[#allocation8 + $0x440] sm:$0xf] }
  0xc6   :  { %2778 = vmatpush.bf16.msra.mxu2 %v5020_v60  ;;  %v5292_v20 = vor.u32 %v6387_v8, %v5291_v5  ;;  %v6463_v60 = vld [vmem:[#allocation8 + $0x6ac] sm:$0xf0]  ;;  %v4845_v5 = vld [vmem:[#allocation8 + $0xd0] sm:$0xf0]  ;;  %v5579_v8 = vld [vmem:[#allocation8 + $0x680] sm:$0xf] }
  0xc7   :  { %2765 = vmatpush.bf16.msra.mxu1 %v4892_v11  ;;  %v6315_v11 = vld [vmem:[#allocation8 + $0x20c] sm:$0xf0]  ;;  %v5596_v0 = vor.u32 %v6463_v60, %v5595_v59 }
  0xc8   :  { %v5004_v12 = vor.u32 %v6315_v11, %v5003_v10  ;;  %v6305_v10 = vld [vmem:[#allocation8 + $0x1c4] sm:$0xf]  ;;  %v4973_v11 = vld [vmem:[#allocation8 + $0x1d0] sm:$0xf0] }
  0xc9   :  { %2753 = vmatpush.bf16.msra.mxu0 %v4748_v21  ;;  %v979_v50 = vpop.f32.mrf.mxu0  ;;  %v5275_v21 = vld [vmem:[#allocation8 + $0x420] sm:$0xf] }
  0xca   :  { %v980_v54 = vadd.f32 %v979_v50, %v314_v43  ;;  %2779 = vmatpush.bf16.msra.mxu2 %v5004_v12  ;;  %v5611_v43 = vld [vmem:[#allocation8 + $0x6c0] sm:$0xf]  ;;  %v6459_v12 = vld [vmem:[#allocation8 + $0x68c] sm:$0xf0] }
  0xcb   :  { %2766 = vmatpush.bf16.msra.mxu1 %v4876_v26  ;;  %v992_v1 = vpop.f32.mrf.mxu1  ;;  %v5148_v26 = vor.u32 %v6351_v22, %v5147_v17  ;;  %v5612_v46 = vor.u32 %v6467_v44, %v5611_v43  ;;  %v5755_v50 = vld [vmem:[#allocation8 + $0x7e0] sm:$0xf]  ;;  %v5580_v13 = vor.u32 %v6459_v12, %v5579_v8  ;;  %v4797_v43 = vld [vmem:[#allocation8 + $0x70] sm:$0xf0] }
  0xcc   :  { %v993_v7 = vadd.f32 %v992_v1, %v980_v54  ;;  %v4989_v54 = vld [vmem:[#allocation8 + $0x1f0] sm:$0xf0]  ;;  %v5756_v58 = vor.u32 %v6503_v52, %v5755_v50  ;;  %v5739_v1 = vld [vmem:[#allocation8 + $0x7c0] sm:$0xf]  ;;  %v6447_v52 = vld [vmem:[#allocation8 + $0x62c] sm:$0xf0] }
  0xcd   :  { %2798 = vmatpush.bf16.msrb.mxu0 %v5372_v24  ;;  %v6383_v24 = vld [vmem:[#allocation8 + $0x42c] sm:$0xf0]  ;;  %2791 = vmatpush.bf16.msra.mxu3 %v5148_v26  ;;  %v4992_v6 = vor.u32 %v6309_v53, %v4989_v54  ;;  %v5563_v17 = vld [vmem:[#allocation8 + $0x660] sm:$0xf]  ;;  %v4925_v50 = vld [vmem:[#allocation8 + $0x170] sm:$0xf0] }
  0xce   :  { %vm1178_vm0 = vcmp.gt.f32.partialorder %v993_v7, 0.0  ;;  %v1186_v15 = vmul.f32 0.2, %v993_v7  ;;  %v5276_v41 = vor.u32 %v6383_v24, %v5275_v21  ;;  %2824 = vmatpush.bf16.msrb.mxu2 %v5628_v30  ;;  %v4976_v21 = vor.u32 %v6305_v10, %v4973_v11  ;;  %v4957_v24 = vld [vmem:[#allocation8 + $0x1b0] sm:$0xf0] }
  0xcf   :  { %2811 = vmatpush.bf16.msrb.mxu1 %v5500_v29  ;;  %v1005_v16 = vpop.f32.mrf.mxu2  ;;  %v6491_v26 = vld [vmem:[#allocation8 + $0x78c] sm:$0xf0]  ;;  %v6265_v30 = vld [vmem:[#allocation8 + $0x84] sm:$0xf]  ;;  %v317_v54 = vperm.slane %v7024_v40, 3 }
  0xd0   :  { %v1006_v18 = vadd.f32 %v1005_v16, %v315_v2  ;;  %v1194_v23 = vsel %vm1178_vm0, %v993_v7, %v1186_v15  ;;  %v6499_v2 = vld [vmem:[#allocation8 + $0x7cc] sm:$0xf0]  ;;  %v6341_v11 = vld [vmem:[#allocation8 + $0x2e4] sm:$0xf]  ;;  %v5117_v12 = vld [vmem:[#allocation8 + $0x2f0] sm:$0xf0] }
  0xd1   :  { %2799 = vmatpush.bf16.msrb.mxu0 %v5356_v36  ;;  %v981_v19 = vpop.f32.mrf.mxu0  ;;  %v7028_v29 = vpack.c.bf16 %v1194_v23, %v1194_v23  ;;  %v1018_v33 = vpop.f32.mrf.mxu3  ;;  %v5131_v36 = vld [vmem:[#allocation8 + $0x300] sm:$0xf]  ;;  %v5740_v7 = vor.u32 %v6499_v2, %v5739_v1  ;;  %v6495_v15 = vld [vmem:[#allocation8 + $0x7ac] sm:$0xf0]  ;;  %v6301_v23 = vld [vmem:[#allocation8 + $0x1a4] sm:$0xf] }
  0xd2   :  { %v1019_v38 = vadd.f32 %v1018_v33, %v1006_v18  ;;  %2825 = vmatpush.bf16.msrb.mxu2 %v5612_v46  ;;  %v6455_v18 = vld [vmem:[#allocation8 + $0x66c] sm:$0xf0]  ;;  %v6269_v19 = vld [vmem:[#allocation8 + $0xa4] sm:$0xf]  ;;  %v5724_v22 = vor.u32 %v6495_v15, %v5723_v14 }
  0xd3   :  { %2812 = vmatpush.bf16.msrb.mxu1 %v5484_v39  ;;  %v994_v39 = vpop.f32.mrf.mxu1  ;;  %2754 = vmatmul.bf16.vlgmr.msra.gmra.mxu0 %v7028_v29  ;;  %v5564_v27 = vor.u32 %v6455_v18, %v5563_v17  ;;  %v6253_v17 = vld [vmem:[#allocation8 + $0x24] sm:$0xf]  ;;  %v4765_v18 = vld [vmem:[#allocation8 + $0x30] sm:$0xf0] }
  0xd4   :  { %vm1179_vm1 = vcmp.gt.f32.partialorder %v1019_v38, 0.0  ;;  %v1187_v49 = vmul.f32 0.2, %v1019_v38 }
  0xd5   :  { %2800 = vmatpush.bf16.msrb.mxu0 %v5340_v55  ;;  %v5132_v55 = vor.u32 %v6347_v37, %v5131_v36  ;;  %v4941_v36 = vld [vmem:[#allocation8 + $0x190] sm:$0xf0]  ;;  %v5547_v37 = vld [vmem:[#allocation8 + $0x640] sm:$0xf] }
  0xd6   :  { %v1195_v56 = vsel %vm1179_vm1, %v1019_v38, %v1187_v49  ;;  %2826 = vmatpush.bf16.msrb.mxu2 %v5596_v0  ;;  %v6451_v38 = vld [vmem:[#allocation8 + $0x64c] sm:$0xf0]  ;;  %v6293_v49 = vld [vmem:[#allocation8 + $0x164] sm:$0xf] }
  0xd7   :  { %2813 = vmatpush.bf16.msrb.mxu1 %v5468_v45  ;;  %v5404_v45 = vor.u32 %v6415_v32, %v5403_v31  ;;  %2792 = vmatpush.bf16.msra.mxu3 %v5132_v55  ;;  %v7031_v61 = vpack.c.bf16 %v1195_v56, %v1195_v56  ;;  %v4813_v31 = vld [vmem:[#allocation8 + $0x90] sm:$0xf0]  ;;  %v4960_v32 = vor.u32 %v6301_v23, %v4957_v24  ;;  %v6289_v0 = vld [vmem:[#allocation8 + $0x144] sm:$0xf]  ;;  %v6479_v23 = vld [vmem:[#allocation8 + $0x72c] sm:$0xf0] }
  0xd8   :  { %v4816_v39 = vor.u32 %v6265_v30, %v4813_v31  ;;  %v5548_v42 = vor.u32 %v6451_v38, %v5547_v37  ;;  %v4928_v60 = vor.u32 %v6293_v49, %v4925_v50  ;;  %v6285_v24 = vld [vmem:[#allocation8 + $0x124] sm:$0xf]  ;;  %v5643_v37 = vld [vmem:[#allocation8 + $0x700] sm:$0xf]  ;;  %v6475_v38 = vld [vmem:[#allocation8 + $0x70c] sm:$0xf0] }
  0xd9   :  { %2801 = vmatpush.bf16.msrb.mxu0 %v5324_v51  ;;  %v1007_v51 = vpop.f32.mrf.mxu2  ;;  %2767 = vmatmul.bf16.vlgmr.msra.gmra.mxu1 %v7031_v61  ;;  %v6249_v30 = vld [vmem:[#allocation8 + $0x4] sm:$0xf] }
  0xda   :  { %2827 = vmatpush.bf16.msrb.mxu2 %v5580_v13  ;;  %v5531_v51 = vld [vmem:[#allocation8 + $0x620] sm:$0xf]  ;;  %v6337_v31 = vld [vmem:[#allocation8 + $0x2c4] sm:$0xf] }
  0xdb   :  { %2814 = vmatpush.bf16.msrb.mxu1 %v5452_v57  ;;  %v5260_v57 = vor.u32 %v6379_v35, %v5259_v34  ;;  %2837 = vmatpush.bf16.msrb.mxu3 %v5756_v58  ;;  %v316_v34 = vperm.slane %v7024_v40, 2  ;;  %v6297_v35 = vld [vmem:[#allocation8 + $0x184] sm:$0xf]  ;;  %v4781_v58 = vld [vmem:[#allocation8 + $0x50] sm:$0xf0]  ;;  %v5532_v59 = vor.u32 %v6447_v52, %v5531_v51 }
  0xdc   :  { %v4944_v44 = vor.u32 %v6297_v35, %v4941_v36  ;;  %v5085_v51 = vld [vmem:[#allocation8 + $0x2b0] sm:$0xf0] }
  0xdd   :  { %2802 = vmatpush.bf16.msrb.mxu0 %v5308_v4  ;;  %v6273_v4 = vld [vmem:[#allocation8 + $0xc4] sm:$0xf] }
  0xde   :  { %v4848_v16 = vor.u32 %v6273_v4, %v4845_v5  ;;  %2828 = vmatpush.bf16.msrb.mxu2 %v5564_v27  ;;  %v4909_v4 = vld [vmem:[#allocation8 + $0x150] sm:$0xf0]  ;;  %v5515_v5 = vld [vmem:[#allocation8 + $0x600] sm:$0xf] }
  0xdf   :  { %2815 = vmatpush.bf16.msrb.mxu1 %v5436_v9  ;;  %v1020_v9 = vpop.f32.mrf.mxu3  ;;  %2838 = vmatpush.bf16.msrb.mxu3 %v5740_v7 }
  0xe1   :  { %2803 = vmatpush.bf16.msrb.mxu0 %v5292_v20  ;;  %v4829_v20 = vld [vmem:[#allocation8 + $0xb0] sm:$0xf0] }
  0xe2   :  { %v4832_v28 = vor.u32 %v6269_v19, %v4829_v20  ;;  %2829 = vmatpush.bf16.msrb.mxu2 %v5548_v42  ;;  %v4912_v19 = vor.u32 %v6289_v0, %v4909_v4  ;;  %v5659_v20 = vld [vmem:[#allocation8 + $0x720] sm:$0xf]  ;;  %v5644_v42 = vor.u32 %v6475_v38, %v5643_v37  ;;  %v6325_v0 = vld [vmem:[#allocation8 + $0x264] sm:$0xf] }
  0xe3   :  { %2816 = vmatpush.bf16.msrb.mxu1 %v5420_v25  ;;  %v5707_v25 = vld [vmem:[#allocation8 + $0x780] sm:$0xf]  ;;  %2839 = vmatpush.bf16.msrb.mxu3 %v5724_v22  ;;  %v5120_v22 = vor.u32 %v6341_v11, %v5117_v12  ;;  %v5660_v27 = vor.u32 %v6479_v23, %v5659_v20  ;;  %v6361_v4 = vld [vmem:[#allocation8 + $0x384] sm:$0xf]  ;;  %v5181_v12 = vld [vmem:[#allocation8 + $0x370] sm:$0xf0] }
  0xe4   :  { %v5708_v33 = vor.u32 %v6491_v26, %v5707_v25  ;;  %v4893_v25 = vld [vmem:[#allocation8 + $0x130] sm:$0xf0]  ;;  %v6357_v11 = vld [vmem:[#allocation8 + $0x364] sm:$0xf] }
  0xe5   :  { %2804 = vmatpush.bf16.msrb.mxu0 %v5276_v41  ;;  %v6261_v41 = vld [vmem:[#allocation8 + $0x64] sm:$0xf]  ;;  %v4896_v35 = vor.u32 %v6285_v24, %v4893_v25  ;;  %v5165_v23 = vld [vmem:[#allocation8 + $0x350] sm:$0xf0]  ;;  %v319_v24 = vperm.slane %v7024_v40, 5 }
  0xe6   :  { %v4800_v56 = vor.u32 %v6261_v41, %v4797_v43  ;;  %2830 = vmatpush.bf16.msrb.mxu2 %v5532_v59  ;;  %v6373_v43 = vld [vmem:[#allocation8 + $0x3e4] sm:$0xf] }
  0xe7   :  { %2817 = vmatpush.bf16.msrb.mxu1 %v5404_v45  ;;  %2840 = vmatpush.bf16.msrb.mxu3 %v5708_v33  ;;  %v6487_v45 = vld [vmem:[#allocation8 + $0x76c] sm:$0xf0]  ;;  %v6405_v25 = vld [vmem:[#allocation8 + $0x4e4] sm:$0xf] }
  0xe8   :  { %v5692_v48 = vor.u32 %v6487_v45, %v5691_v3 }
  0xe9   :  { %2805 = vmatpush.bf16.msrb.mxu0 %v5260_v57  ;;  %v1031_v55 = vpop.f32.mrf.mxu0  ;;  %v6257_v57 = vld [vmem:[#allocation8 + $0x44] sm:$0xf] }
  0xea   :  { %v1032_v46 = vadd.f32 %v1031_v55, %v316_v34  ;;  %v4784_v9 = vor.u32 %v6257_v57, %v4781_v58  ;;  %v4749_v34 = vld [vmem:[#allocation8 + $0x10] sm:$0xf0]  ;;  %v6329_v57 = vld [vmem:[#allocation8 + $0x284] sm:$0xf] }
  0xeb   :  { %2818 = vmatpush.bf16.msrb.mxu1 %v5388_v63  ;;  %v1044_v47 = vpop.f32.mrf.mxu1  ;;  %2841 = vmatpush.bf16.msrb.mxu3 %v5692_v48  ;;  %v6483_v63 = vld [vmem:[#allocation8 + $0x74c] sm:$0xf0]  ;;  %v4877_v55 = vld [vmem:[#allocation8 + $0x110] sm:$0xf0]  ;;  %v6333_v48 = vld [vmem:[#allocation8 + $0x2a4] sm:$0xf] }
  0xec   :  { %v1045_v53 = vadd.f32 %v1044_v47, %v1032_v46  ;;  %v4752_v46 = vor.u32 %v6249_v30, %v4749_v34  ;;  %v5088_v52 = vor.u32 %v6333_v48, %v5085_v51  ;;  %v5069_v58 = vld [vmem:[#allocation8 + $0x290] sm:$0xf0]  ;;  %v6313_v30 = vld [vmem:[#allocation8 + $0x204] sm:$0xf] }
  0xed   :  { %2850 = vmatpush.bf16.msra.mxu0 %v4864_v62  ;;  %v5675_v62 = vld [vmem:[#allocation8 + $0x740] sm:$0xf]  ;;  %v5072_v59 = vor.u32 %v6329_v57, %v5069_v58  ;;  %v5501_v48 = vld [vmem:[#allocation8 + $0x5f0] sm:$0xf0]  ;;  %v6345_v51 = vld [vmem:[#allocation8 + $0x304] sm:$0xf] }
  0xee   :  { %vm1180_vm2 = vcmp.gt.f32.partialorder %v1045_v53, 0.0  ;;  %v1188_v1 = vmul.f32 0.2, %v1045_v53  ;;  %v5676_v2 = vor.u32 %v6483_v63, %v5675_v62  ;;  %v5213_v62 = vld [vmem:[#allocation8 + $0x3b0] sm:$0xf0] }
  0xef   :  { %2863 = vmatpush.bf16.msra.mxu1 %v4992_v6  ;;  %v6443_v6 = vld [vmem:[#allocation8 + $0x60c] sm:$0xf0]  ;;  %v1057_v8 = vpop.f32.mrf.mxu2 }
  0xf0   :  { %v1196_v7 = vsel %vm1180_vm2, %v1045_v53, %v1188_v1  ;;  %v5516_v10 = vor.u32 %v6443_v6, %v5515_v5  ;;  %v1058_v14 = vadd.f32 %v1057_v8, %v317_v54  ;;  %2842 = vmatpush.bf16.msrb.mxu3 %v5676_v2  ;;  %v6369_v53 = vld [vmem:[#allocation8 + $0x3c4] sm:$0xf]  ;;  %v5229_v54 = vld [vmem:[#allocation8 + $0x3d0] sm:$0xf0]  ;;  %v318_v6 = vperm.slane %v7024_v40, 4 }
  0xf1   :  { %2851 = vmatpush.bf16.msra.mxu0 %v4848_v16  ;;  %v7036_v13 = vpack.c.bf16 %v1196_v7, %v1196_v7  ;;  %v1070_v15 = vpop.f32.mrf.mxu3  ;;  %v1033_v16 = vpop.f32.mrf.mxu0  ;;  %v5053_v1 = vld [vmem:[#allocation8 + $0x270] sm:$0xf0]  ;;  %v6321_v8 = vld [vmem:[#allocation8 + $0x244] sm:$0xf] }
  0xf2   :  { %v1071_v26 = vadd.f32 %v1070_v15, %v1058_v14  ;;  %2831 = vmatpush.bf16.msrb.mxu2 %v5516_v10  ;;  %v5056_v2 = vor.u32 %v6325_v0, %v5053_v1  ;;  %v5197_v5 = vld [vmem:[#allocation8 + $0x390] sm:$0xf0] }
  0xf3   :  { %2864 = vmatpush.bf16.msra.mxu1 %v4976_v21  ;;  %v1046_v21 = vpop.f32.mrf.mxu1  ;;  %2780 = vmatmul.bf16.vlgmr.msra.gmra.mxu2 %v7036_v13  ;;  %v5200_v7 = vor.u32 %v6361_v4, %v5197_v5  ;;  %v5485_v0 = vld [vmem:[#allocation8 + $0x5d0] sm:$0xf0] }
  0xf4   :  { %vm1181_vm3 = vcmp.gt.f32.partialorder %v1071_v26, 0.0  ;;  %v1189_v33 = vmul.f32 0.2, %v1071_v26  ;;  %2843 = vmatpush.bf16.msrb.mxu3 %v5660_v27  ;;  %v5325_v4 = vld [vmem:[#allocation8 + $0x490] sm:$0xf0] }
  0xf5   :  { %2852 = vmatpush.bf16.msra.mxu0 %v4832_v28  ;;  %v4768_v28 = vor.u32 %v6253_v17, %v4765_v18  ;;  %v5184_v17 = vor.u32 %v6357_v11, %v5181_v12  ;;  %v6317_v18 = vld [vmem:[#allocation8 + $0x224] sm:$0xf] }
  0xf6   :  { %2876 = vmatpush.bf16.msra.mxu2 %v5120_v22  ;;  %v1197_v41 = vsel %vm1181_vm3, %v1071_v26, %v1189_v33  ;;  %v6353_v22 = vld [vmem:[#allocation8 + $0x344] sm:$0xf]  ;;  %v5373_v26 = vld [vmem:[#allocation8 + $0x4f0] sm:$0xf0] }
  0xf7   :  { %2865 = vmatpush.bf16.msra.mxu1 %v4960_v32  ;;  %v5101_v32 = vld [vmem:[#allocation8 + $0x2d0] sm:$0xf0]  ;;  %v7039_v3 = vpack.c.bf16 %v1197_v41, %v1197_v41  ;;  %v1059_v45 = vpop.f32.mrf.mxu2  ;;  %v5376_v34 = vor.u32 %v6405_v25, %v5373_v26 }
  0xf8   :  { %v5104_v36 = vor.u32 %v6337_v31, %v5101_v32  ;;  %2844 = vmatpush.bf16.msrb.mxu3 %v5644_v42  ;;  %v5005_v31 = vld [vmem:[#allocation8 + $0x210] sm:$0xf0] }
  0xf9   :  { %2853 = vmatpush.bf16.msra.mxu0 %v4816_v39  ;;  %v6281_v39 = vld [vmem:[#allocation8 + $0x104] sm:$0xf]  ;;  %v1072_v49 = vpop.f32.mrf.mxu3  ;;  %2793 = vmatmul.bf16.vlgmr.msra.gmra.mxu3 %v7039_v3  ;;  %v5357_v41 = vld [vmem:[#allocation8 + $0x4d0] sm:$0xf0] }
  0xfa   :  { %2877 = vmatpush.bf16.msra.mxu2 %v5104_v36  ;;  %v4880_v50 = vor.u32 %v6281_v39, %v4877_v55  ;;  %v5008_v36 = vor.u32 %v6313_v30, %v5005_v31  ;;  %v6349_v55 = vld [vmem:[#allocation8 + $0x324] sm:$0xf]  ;;  %v321_v31 = vperm.slane %v7024_v40, 7 }
  0xfb   :  { %2866 = vmatpush.bf16.msra.mxu1 %v4944_v44  ;;  %v5245_v44 = vld [vmem:[#allocation8 + $0x3f0] sm:$0xf0] }
  0xfc   :  { %v5248_v47 = vor.u32 %v6373_v43, %v5245_v44  ;;  %v5149_v43 = vld [vmem:[#allocation8 + $0x330] sm:$0xf0] }
  0xfd   :  { %2854 = vmatpush.bf16.msra.mxu0 %v4800_v56  ;;  %v5232_v56 = vor.u32 %v6369_v53, %v5229_v54  ;;  %v5152_v45 = vor.u32 %v6349_v55, %v5149_v43  ;;  %v5341_v54 = vld [vmem:[#allocation8 + $0x4b0] sm:$0xf0] }
  0xfe   :  { %2889 = vmatpush.bf16.msra.mxu3 %v5248_v47  ;;  %2878 = vmatpush.bf16.msra.mxu2 %v5088_v52  ;;  %v6437_v47 = vld [vmem:[#allocation8 + $0x5e4] sm:$0xf]  ;;  %v5133_v52 = vld [vmem:[#allocation8 + $0x310] sm:$0xf0] }
  0xff   :  { %2867 = vmatpush.bf16.msra.mxu1 %v4928_v60  ;;  %v6365_v60 = vld [vmem:[#allocation8 + $0x3a4] sm:$0xf]  ;;  %v5504_v58 = vor.u32 %v6437_v47, %v5501_v48 }
 0x100   :  { %v5216_v63 = vor.u32 %v6365_v60, %v5213_v62 }
 0x101   :  { %2855 = vmatpush.bf16.msra.mxu0 %v4784_v9  ;;  %v5037_v9 = vld [vmem:[#allocation8 + $0x250] sm:$0xf0] }
 0x102   :  { %2890 = vmatpush.bf16.msra.mxu3 %v5232_v56  ;;  %2879 = vmatpush.bf16.msra.mxu2 %v5072_v59  ;;  %v5040_v10 = vor.u32 %v6321_v8, %v5037_v9  ;;  %v5136_v56 = vor.u32 %v6345_v51, %v5133_v52  ;;  %v5469_v8 = vld [vmem:[#allocation8 + $0x5b0] sm:$0xf0]  ;;  %v6389_v9 = vld [vmem:[#allocation8 + $0x464] sm:$0xf] }
 0x103   :  { %2868 = vmatpush.bf16.msra.mxu1 %v4912_v19  ;;  %v5021_v19 = vld [vmem:[#allocation8 + $0x230] sm:$0xf0] }
 0x104   :  { %v5024_v20 = vor.u32 %v6317_v18, %v5021_v19  ;;  %v320_v19 = vperm.slane %v7024_v40, 6 }
 0x105   :  { %2856 = vmatpush.bf16.msra.mxu0 %v4768_v28  ;;  %v5168_v28 = vor.u32 %v6353_v22, %v5165_v23  ;;  %v5437_v22 = vld [vmem:[#allocation8 + $0x570] sm:$0xf0]  ;;  %v6381_v23 = vld [vmem:[#allocation8 + $0x424] sm:$0xf] }
 0x106   :  { %2891 = vmatpush.bf16.msra.mxu3 %v5216_v63  ;;  %2880 = vmatpush.bf16.msra.mxu2 %v5056_v2  ;;  %v6433_v63 = vld [vmem:[#allocation8 + $0x5c4] sm:$0xf] }
 0x107   :  { %2869 = vmatpush.bf16.msra.mxu1 %v4896_v35  ;;  %v6401_v35 = vld [vmem:[#allocation8 + $0x4c4] sm:$0xf]  ;;  %v5488_v5 = vor.u32 %v6433_v63, %v5485_v0  ;;  %v5389_v0 = vld [vmem:[#allocation8 + $0x510] sm:$0xf0] }
 0x108   :  { %v5360_v49 = vor.u32 %v6401_v35, %v5357_v41  ;;  %v6393_v2 = vld [vmem:[#allocation8 + $0x484] sm:$0xf]  ;;  %v4867_v41 = vld [vmem:[#allocation8 + $0xe8] sm:$0xf] }
 0x109   :  { %2857 = vmatpush.bf16.msra.mxu0 %v4752_v46  ;;  %v1083_v14 = vpop.f32.mrf.mxu0  ;;  %v6377_v35 = vld [vmem:[#allocation8 + $0x404] sm:$0xf] }
 0x10a   :  { %v1084_v15 = vadd.f32 %v1083_v14, %v318_v6  ;;  %2892 = vmatpush.bf16.msra.mxu3 %v5200_v7  ;;  %2881 = vmatpush.bf16.msra.mxu2 %v5040_v10  ;;  %v5328_v6 = vor.u32 %v6393_v2, %v5325_v4  ;;  %v6429_v7 = vld [vmem:[#allocation8 + $0x5a4] sm:$0xf]  ;;  %v5309_v10 = vld [vmem:[#allocation8 + $0x470] sm:$0xf0] }
 0x10b   :  { %2870 = vmatpush.bf16.msra.mxu1 %v4880_v50  ;;  %v1096_v16 = vpop.f32.mrf.mxu1  ;;  %v6397_v50 = vld [vmem:[#allocation8 + $0x4a4] sm:$0xf]  ;;  %v5472_v11 = vor.u32 %v6429_v7, %v5469_v8  ;;  %v5312_v12 = vor.u32 %v6389_v9, %v5309_v10  ;;  %v5757_v4 = vld [vmem:[#allocation8 + $0x7f0] sm:$0xf0] }
 0x10c   :  { %v1097_v21 = vadd.f32 %v1096_v16, %v1084_v15  ;;  %v5344_v60 = vor.u32 %v6397_v50, %v5341_v54  ;;  %v6425_v14 = vld [vmem:[#allocation8 + $0x584] sm:$0xf]  ;;  %v5453_v15 = vld [vmem:[#allocation8 + $0x590] sm:$0xf0] }
 0x10d   :  { %v6385_v16 = vld [vmem:[#allocation8 + $0x444] sm:$0xf]  ;;  %v5456_v18 = vor.u32 %v6425_v14, %v5453_v15  ;;  %v5597_v10 = vld [vmem:[#allocation8 + $0x6b0] sm:$0xf0]  ;;  %v6272_v14 = vld [vmem:[#allocation8 + $0xb4] sm:$0xf0] }
 0x10e   :  { %vm1182_vm4 = vcmp.gt.f32.partialorder %v1097_v21, 0.0  ;;  %v1190_v27 = vmul.f32 0.2, %v1097_v21  ;;  %2893 = vmatpush.bf16.msra.mxu3 %v5184_v17  ;;  %2882 = vmatpush.bf16.msra.mxu2 %v5024_v20  ;;  %v5293_v17 = vld [vmem:[#allocation8 + $0x450] sm:$0xf0] }
 0x10f   :  { %v1109_v33 = vpop.f32.mrf.mxu2  ;;  %v5296_v20 = vor.u32 %v6385_v16, %v5293_v17  ;;  %v6465_v50 = vld [vmem:[#allocation8 + $0x6c4] sm:$0xf] }
 0x110   :  { %v1198_v32 = vsel %vm1182_vm4, %v1097_v21, %v1190_v27  ;;  %v1110_v38 = vadd.f32 %v1109_v33, %v319_v24  ;;  %v6421_v21 = vld [vmem:[#allocation8 + $0x564] sm:$0xf]  ;;  %v5277_v24 = vld [vmem:[#allocation8 + $0x430] sm:$0xf0] }
 0x111   :  { %v7044_v37 = vpack.c.bf16 %v1198_v32, %v1198_v32  ;;  %v1122_v39 = vpop.f32.mrf.mxu3  ;;  %v1085_v42 = vpop.f32.mrf.mxu0  ;;  %v5280_v30 = vor.u32 %v6381_v23, %v5277_v24  ;;  %v6417_v32 = vld [vmem:[#allocation8 + $0x544] sm:$0xf]  ;;  %v5421_v33 = vld [vmem:[#allocation8 + $0x550] sm:$0xf0] }
 0x112   :  { %2894 = vmatpush.bf16.msra.mxu3 %v5168_v28  ;;  %v1123_v46 = vadd.f32 %v1122_v39, %v1110_v38  ;;  %2883 = vmatpush.bf16.msra.mxu2 %v5008_v36  ;;  %v5440_v28 = vor.u32 %v6421_v21, %v5437_v22  ;;  %v5261_v36 = vld [vmem:[#allocation8 + $0x410] sm:$0xf0]  ;;  %v6469_v38 = vld [vmem:[#allocation8 + $0x6e4] sm:$0xf]  ;;  %v6280_v42 = vld [vmem:[#allocation8 + $0xf4] sm:$0xf0]  ;;  %v5424_v43 = vor.u32 %v6417_v32, %v5421_v33 }
 0x113   :  { %v1098_v44 = vpop.f32.mrf.mxu1  ;;  %2806 = vmatmul.bf16.vlgmr.msrb.gmra.mxu0 %v7044_v37  ;;  %v5629_v39 = vld [vmem:[#allocation8 + $0x6f0] sm:$0xf0]  ;;  %v6409_v63 = vld [vmem:[#allocation8 + $0x504] sm:$0xf]  ;;  %v6268_v32 = vld [vmem:[#allocation8 + $0x94] sm:$0xf0] }
 0x114   :  { %2902 = vmatpush.bf16.msrb.mxu0 %v5376_v34  ;;  %vm1183_vm5 = vcmp.gt.f32.partialorder %v1123_v46, 0.0  ;;  %v1191_v53 = vmul.f32 0.2, %v1123_v46  ;;  %v5264_v44 = vor.u32 %v6377_v35, %v5261_v36  ;;  %v5632_v48 = vor.u32 %v6469_v38, %v5629_v39  ;;  %v6461_v9 = vld [vmem:[#allocation8 + $0x6a4] sm:$0xf] }
 0x115   :  { %v5392_v15 = vor.u32 %v6409_v63, %v5389_v0  ;;  %v5600_v23 = vor.u32 %v6461_v9, %v5597_v10  ;;  %v6493_v35 = vld [vmem:[#allocation8 + $0x7a4] sm:$0xf]  ;;  %v5725_v39 = vld [vmem:[#allocation8 + $0x7b0] sm:$0xf0] }
 0x116   :  { %2895 = vmatpush.bf16.msra.mxu3 %v5152_v45  ;;  %v1199_v57 = vsel %vm1183_vm5, %v1123_v46, %v1191_v53  ;;  %v6413_v45 = vld [vmem:[#allocation8 + $0x524] sm:$0xf]  ;;  %v5405_v46 = vld [vmem:[#allocation8 + $0x530] sm:$0xf0]  ;;  %vm3284_vm5 = vcmask 1042434  }
 0x117   :  { %v7047_v59 = vpack.c.bf16 %v1199_v57, %v1199_v57  ;;  %v1111_v62 = vpop.f32.mrf.mxu2  ;;  %v4851_v57 = vld [vmem:[#allocation8 + $0xc8] sm:$0xf]  ;;  %v6485_v63 = vld [vmem:[#allocation8 + $0x764] sm:$0xf]  ;;  %v5533_v9 = vld [vmem:[#allocation8 + $0x630] sm:$0xf0] }
 0x118   :  { %2903 = vmatpush.bf16.msrb.mxu0 %v5360_v49  ;;  %v4868_v49 = vor.u32 %v6280_v42, %v4867_v41  ;;  %v5408_v62 = vor.u32 %v6413_v45, %v5405_v46  ;;  %v4963_v41 = vld [vmem:[#allocation8 + $0x1a8] sm:$0xf]  ;;  %v6304_v42 = vld [vmem:[#allocation8 + $0x1b4] sm:$0xf0]  ;;  %v5565_v45 = vld [vmem:[#allocation8 + $0x670] sm:$0xf0]  ;;  %v5728_v46 = vor.u32 %v6493_v35, %v5725_v39 }
 0x119   :  { %v1124_v1 = vpop.f32.mrf.mxu3  ;;  %2819 = vmatmul.bf16.vlgmr.msrb.gmra.mxu1 %v7047_v59  ;;  %v6288_v35 = vld [vmem:[#allocation8 + $0x134] sm:$0xf0] }
 0x11a   :  { %2896 = vmatpush.bf16.msra.mxu3 %v5136_v56  ;;  %2915 = vmatpush.bf16.msrb.mxu1 %v5504_v58  ;;  %v5613_v56 = vld [vmem:[#allocation8 + $0x6d0] sm:$0xf0]  ;;  %v6276_v58 = vld [vmem:[#allocation8 + $0xd4] sm:$0xf0]  ;;  %v6501_v1 = vld [vmem:[#allocation8 + $0x7e4] sm:$0xf] }
 0x11b   :  { %v5616_v7 = vor.u32 %v6465_v50, %v5613_v56  ;;  %v4852_v8 = vor.u32 %v6276_v58, %v4851_v57  ;;  %v5760_v17 = vor.u32 %v6501_v1, %v5757_v4  ;;  %v4947_v50 = vld [vmem:[#allocation8 + $0x188] sm:$0xf]  ;;  %v6260_v56 = vld [vmem:[#allocation8 + $0x54] sm:$0xf0]  ;;  %v6449_v57 = vld [vmem:[#allocation8 + $0x644] sm:$0xf] }
 0x11c   :  { %2904 = vmatpush.bf16.msrb.mxu0 %v5344_v60  ;;  %v5549_v58 = vld [vmem:[#allocation8 + $0x650] sm:$0xf0]  ;;  %v6296_v4 = vld [vmem:[#allocation8 + $0x174] sm:$0xf0] }
 0x11d   :  { %v5693_v1 = vld [vmem:[#allocation8 + $0x770] sm:$0xf0] }
 0x11e   :  { %2916 = vmatpush.bf16.msrb.mxu1 %v5488_v5  ;;  %v4995_v5 = vld [vmem:[#allocation8 + $0x1e8] sm:$0xf]  ;;  %v5696_v10 = vor.u32 %v6485_v63, %v5693_v1 }
 0x11f   :  { %v5091_v63 = vld [vmem:[#allocation8 + $0x2a8] sm:$0xf] }
 0x120   :  { %2905 = vmatpush.bf16.msrb.mxu0 %v5328_v6  ;;  %v6312_v6 = vld [vmem:[#allocation8 + $0x1f4] sm:$0xf0] }
 0x122   :  { %2917 = vmatpush.bf16.msrb.mxu1 %v5472_v11  ;;  %v4835_v11 = vld [vmem:[#allocation8 + $0xa8] sm:$0xf] }
 0x123   :  { %2858 = vmatmul.bf16.vlgmr.msra.gmra.mxu0 %v7028_v29  ;;  %v4836_v24 = vor.u32 %v6272_v14, %v4835_v11 }
 0x124   :  { %2906 = vmatpush.bf16.msrb.mxu0 %v5312_v12 }
 0x126   :  { %2918 = vmatpush.bf16.msrb.mxu1 %v5456_v18  ;;  %v4996_v18 = vor.u32 %v6312_v6, %v4995_v5  ;;  %v5552_v5 = vor.u32 %v6449_v57, %v5549_v58  ;;  %v4771_v6 = vld [vmem:[#allocation8 + $0x28] sm:$0xf]  ;;  %v6400_v58 = vld [vmem:[#allocation8 + $0x4b4] sm:$0xf0] }
 0x127   :  { %v5347_v57 = vld [vmem:[#allocation8 + $0x4a8] sm:$0xf] }
 0x128   :  { %2907 = vmatpush.bf16.msrb.mxu0 %v5296_v20  ;;  %v5741_v20 = vld [vmem:[#allocation8 + $0x7d0] sm:$0xf0] }
 0x129   :  { %v1135_v25 = vpop.f32.mrf.mxu0  ;;  %2871 = vmatmul.bf16.vlgmr.msra.gmra.mxu1 %v7031_v61 }
 0x12a   :  { %v1136_v26 = vadd.f32 %v1135_v25, %v320_v19  ;;  %2919 = vmatpush.bf16.msrb.mxu1 %v5440_v28  ;;  %v6497_v19 = vld [vmem:[#allocation8 + $0x7c4] sm:$0xf]  ;;  %v4979_v25 = vld [vmem:[#allocation8 + $0x1c8] sm:$0xf] }
 0x12b   :  { %v1148_v27 = vpop.f32.mrf.mxu1  ;;  %v5744_v33 = vor.u32 %v6497_v19, %v5741_v20  ;;  %v6441_v19 = vld [vmem:[#allocation8 + $0x604] sm:$0xf]  ;;  %v4755_v20 = vld [vmem:[#allocation8 + $0x8] sm:$0xf] }
 0x12c   :  { %v1149_v34 = vadd.f32 %v1148_v27, %v1136_v26  ;;  %2908 = vmatpush.bf16.msrb.mxu0 %v5280_v30  ;;  %v6308_v26 = vld [vmem:[#allocation8 + $0x1d4] sm:$0xf0]  ;;  %v6457_v27 = vld [vmem:[#allocation8 + $0x684] sm:$0xf]  ;;  %v5581_v30 = vld [vmem:[#allocation8 + $0x690] sm:$0xf0] }
 0x12d   :  { %v5584_v36 = vor.u32 %v6457_v27, %v5581_v30  ;;  %v6344_v30 = vld [vmem:[#allocation8 + $0x2f4] sm:$0xf0] }
 0x12e   :  { %vm1184_vm6 = vcmp.gt.f32.partialorder %v1149_v34, 0.0  ;;  %v1192_v55 = vmul.f32 0.2, %v1149_v34  ;;  %2920 = vmatpush.bf16.msrb.mxu1 %v5424_v43  ;;  %v6264_v43 = vld [vmem:[#allocation8 + $0x74] sm:$0xf0] }
 0x12f   :  { %v1161_v47 = vpop.f32.mrf.mxu2 }
 0x130   :  { %v1200_v40 = vsel %vm1184_vm6, %v1149_v34, %v1192_v55  ;;  %v1162_v52 = vadd.f32 %v1161_v47, %v321_v31  ;;  %2909 = vmatpush.bf16.msrb.mxu0 %v5264_v44  ;;  %v4819_v31 = vld [vmem:[#allocation8 + $0x88] sm:$0xf]  ;;  %v4980_v34 = vor.u32 %v6308_v26, %v4979_v25  ;;  %v6453_v44 = vld [vmem:[#allocation8 + $0x664] sm:$0xf]  ;;  %v6408_v25 = vld [vmem:[#allocation8 + $0x4f4] sm:$0xf0] }
 0x131   :  { %v7054_v51 = vpack.c.bf16 %v1200_v40, %v1200_v40  ;;  %v1174_v53 = vpop.f32.mrf.mxu3  ;;  %v1137_v54 = vpop.f32.mrf.mxu0  ;;  %v4820_v38 = vor.u32 %v6268_v32, %v4819_v31  ;;  %v4803_v55 = vld [vmem:[#allocation8 + $0x68] sm:$0xf]  ;;  %v4964_v40 = vor.u32 %v6304_v42, %v4963_v41  ;;  %v6489_v47 = vld [vmem:[#allocation8 + $0x784] sm:$0xf]  ;;  %vm3286_vm6 = vcmask 1041408  }
 0x132   :  { %v1175_v2 = vadd.f32 %v1174_v53, %v1162_v52  ;;  %2921 = vmatpush.bf16.msrb.mxu1 %v5408_v62  ;;  %v6300_v52 = vld [vmem:[#allocation8 + $0x194] sm:$0xf0]  ;;  %v5568_v53 = vor.u32 %v6453_v44, %v5565_v45  ;;  %v4787_v54 = vld [vmem:[#allocation8 + $0x48] sm:$0xf]  ;;  %v6477_v31 = vld [vmem:[#allocation8 + $0x724] sm:$0xf] }
 0x133   :  { %v1150_v60 = vpop.f32.mrf.mxu1  ;;  %2832 = vmatmul.bf16.vlgmr.msrb.gmra.mxu2 %v7054_v51  ;;  %2910 = vmatmul.bf16.vlgmr.msrb.gmra.mxu0 %v7044_v37  ;;  %v4948_v62 = vor.u32 %v6300_v52, %v4947_v50  ;;  %v4788_v0 = vor.u32 %v6260_v56, %v4787_v54  ;;  %v5107_v41 = vld [vmem:[#allocation8 + $0x2c8] sm:$0xf]  ;;  %v6340_v45 = vld [vmem:[#allocation8 + $0x2d4] sm:$0xf0] }
 0x134   :  { %2928 = vmatpush.bf16.msrb.mxu2 %v5632_v48  ;;  %2954 = vmatpush.bf16.msra.mxu0 %v4868_v49  ;;  %vm1185_vm7 = vcmp.gt.f32.partialorder %v1175_v2, 0.0  ;;  %v1193_v12 = vmul.f32 0.2, %v1175_v2  ;;  %v4804_v48 = vor.u32 %v6264_v43, %v4803_v55  ;;  %v5709_v49 = vld [vmem:[#allocation8 + $0x790] sm:$0xf0]  ;;  %v5108_v56 = vor.u32 %v6340_v45, %v5107_v41 }
 0x135   :  { %v5712_v60 = vor.u32 %v6489_v47, %v5709_v49  ;;  %v5363_v42 = vld [vmem:[#allocation8 + $0x4c8] sm:$0xf]  ;;  %v6404_v55 = vld [vmem:[#allocation8 + $0x4d4] sm:$0xf0] }
 0x136   :  { %v1201_v16 = vsel %vm1185_vm7, %v1175_v2, %v1193_v12  ;;  %2922 = vmatpush.bf16.msrb.mxu1 %v5392_v15  ;;  %v4931_v2 = vld [vmem:[#allocation8 + $0x168] sm:$0xf]  ;;  %v6481_v12 = vld [vmem:[#allocation8 + $0x744] sm:$0xf]  ;;  %v5677_v15 = vld [vmem:[#allocation8 + $0x750] sm:$0xf0]  ;;  %v5364_v50 = vor.u32 %v6404_v55, %v5363_v42 }
 0x137   :  { %v7058_v21 = vpack.c.bf16 %v1201_v16, %v1201_v16  ;;  %v1163_v22 = vpop.f32.mrf.mxu2  ;;  %v4932_v11 = vor.u32 %v6296_v4, %v4931_v2  ;;  %v4915_v16 = vld [vmem:[#allocation8 + $0x148] sm:$0xf]  ;;  %v5680_v26 = vor.u32 %v6481_v12, %v5677_v15  ;;  %v6376_v52 = vld [vmem:[#allocation8 + $0x3f4] sm:$0xf0] }
 0x138   :  { %2929 = vmatpush.bf16.msrb.mxu2 %v5616_v7  ;;  %2955 = vmatpush.bf16.msra.mxu0 %v4852_v8  ;;  %v6256_v7 = vld [vmem:[#allocation8 + $0x34] sm:$0xf0]  ;;  %v6445_v8 = vld [vmem:[#allocation8 + $0x624] sm:$0xf]  ;;  %v4883_v47 = vld [vmem:[#allocation8 + $0x108] sm:$0xf] }
 0x139   :  { %v1176_v28 = vpop.f32.mrf.mxu3  ;;  %2845 = vmatmul.bf16.vlgmr.msrb.gmra.mxu3 %v7058_v21  ;;  %2923 = vmatmul.bf16.vlgmr.msrb.gmra.mxu1 %v7047_v59  ;;  %v4772_v14 = vor.u32 %v6256_v7, %v4771_v6  ;;  %v6252_v22 = vld [vmem:[#allocation8 + $0x14] sm:$0xf0]  ;;  %v5251_v49 = vld [vmem:[#allocation8 + $0x3e8] sm:$0xf] }
 0x13a   :  { %2941 = vmatpush.bf16.msrb.mxu3 %v5760_v17  ;;  %2967 = vmatpush.bf16.msra.mxu1 %v4996_v18  ;;  %v6292_v17 = vld [vmem:[#allocation8 + $0x154] sm:$0xf0]  ;;  %v5536_v18 = vor.u32 %v6445_v8, %v5533_v9  ;;  %v5123_v28 = vld [vmem:[#allocation8 + $0x2e8] sm:$0xf]  ;;  %v4756_v32 = vor.u32 %v6252_v22, %v4755_v20  ;;  %v5252_v1 = vor.u32 %v6376_v52, %v5251_v49 }
 0x13b   :  { %v4916_v27 = vor.u32 %v6292_v17, %v4915_v16  ;;  %v5124_v39 = vor.u32 %v6344_v30, %v5123_v28  ;;  %v6440_v54 = vld [vmem:[#allocation8 + $0x5f4] sm:$0xf0]  ;;  %v5235_v4 = vld [vmem:[#allocation8 + $0x3c8] sm:$0xf] }
 0x13c   :  { %2930 = vmatpush.bf16.msrb.mxu2 %v5600_v23  ;;  %2956 = vmatpush.bf16.msra.mxu0 %v4836_v24  ;;  %v5517_v23 = vld [vmem:[#allocation8 + $0x610] sm:$0xf0]  ;;  %v5379_v24 = vld [vmem:[#allocation8 + $0x4e8] sm:$0xf]  ;;  %v6372_v6 = vld [vmem:[#allocation8 + $0x3d4] sm:$0xf0] }
 0x13d   :  { %v5491_v7 = vld [vmem:[#allocation8 + $0x5c8] sm:$0xf]  ;;  %v6436_v8 = vld [vmem:[#allocation8 + $0x5d4] sm:$0xf0]  ;;  %v5236_v15 = vor.u32 %v6372_v6, %v5235_v4 }
 0x13e   :  { %2942 = vmatpush.bf16.msrb.mxu3 %v5744_v33  ;;  %2968 = vmatpush.bf16.msra.mxu1 %v4980_v34  ;;  %v5661_v33 = vld [vmem:[#allocation8 + $0x730] sm:$0xf0]  ;;  %v4899_v34 = vld [vmem:[#allocation8 + $0x128] sm:$0xf]  ;;  %v5492_v16 = vor.u32 %v6436_v8, %v5491_v7  ;;  %v6432_v22 = vld [vmem:[#allocation8 + $0x5b4] sm:$0xf0] }
 0x13f   :  { %v5664_v43 = vor.u32 %v6477_v31, %v5661_v33  ;;  %v4900_v44 = vor.u32 %v6288_v35, %v4899_v34  ;;  %v5075_v12 = vld [vmem:[#allocation8 + $0x288] sm:$0xf]  ;;  %v6328_v28 = vld [vmem:[#allocation8 + $0x274] sm:$0xf0] }
 0x140   :  { %2931 = vmatpush.bf16.msrb.mxu2 %v5584_v36  ;;  %2957 = vmatpush.bf16.msra.mxu0 %v4820_v38  ;;  %v5520_v36 = vor.u32 %v6441_v19, %v5517_v23  ;;  %v5380_v38 = vor.u32 %v6408_v25, %v5379_v24  ;;  %v5219_v17 = vld [vmem:[#allocation8 + $0x3a8] sm:$0xf]  ;;  %v6368_v19 = vld [vmem:[#allocation8 + $0x3b4] sm:$0xf0] }
 0x141   :  { %v5475_v20 = vld [vmem:[#allocation8 + $0x5a8] sm:$0xf]  ;;  %v6392_v25 = vld [vmem:[#allocation8 + $0x474] sm:$0xf0]  ;;  %v5220_v30 = vor.u32 %v6368_v19, %v5219_v17 }
 0x142   :  { %2943 = vmatpush.bf16.msrb.mxu3 %v5728_v46  ;;  %2969 = vmatpush.bf16.msra.mxu1 %v4964_v40  ;;  %v6473_v46 = vld [vmem:[#allocation8 + $0x704] sm:$0xf]  ;;  %v5645_v40 = vld [vmem:[#allocation8 + $0x710] sm:$0xf0]  ;;  %v5315_v24 = vld [vmem:[#allocation8 + $0x468] sm:$0xf]  ;;  %v5476_v31 = vor.u32 %v6432_v22, %v5475_v20 }
 0x143   :  { %2884 = vmatmul.bf16.vlgmr.msra.gmra.mxu2 %v7036_v13  ;;  %v5316_v33 = vor.u32 %v6392_v25, %v5315_v24  ;;  %v6364_v34 = vld [vmem:[#allocation8 + $0x394] sm:$0xf0]  ;;  %v5459_v35 = vld [vmem:[#allocation8 + $0x588] sm:$0xf] }
 0x144   :  { %2958 = vmatpush.bf16.msra.mxu0 %v4804_v48  ;;  %2932 = vmatpush.bf16.msrb.mxu2 %v5568_v53  ;;  %v6284_v48 = vld [vmem:[#allocation8 + $0x114] sm:$0xf0]  ;;  %v5507_v53 = vld [vmem:[#allocation8 + $0x5e8] sm:$0xf] }
 0x145   :  { %v5508_v2 = vor.u32 %v6440_v54, %v5507_v53  ;;  %v6388_v41 = vld [vmem:[#allocation8 + $0x454] sm:$0xf0]  ;;  %v5043_v42 = vld [vmem:[#allocation8 + $0x248] sm:$0xf] }
 0x146   :  { %2944 = vmatpush.bf16.msrb.mxu3 %v5712_v60  ;;  %2970 = vmatpush.bf16.msra.mxu1 %v4948_v62  ;;  %v5648_v60 = vor.u32 %v6473_v46, %v5645_v40  ;;  %v4884_v62 = vor.u32 %v6284_v48, %v4883_v47  ;;  %v6324_v55 = vld [vmem:[#allocation8 + $0x254] sm:$0xf0]  ;;  %v5187_v45 = vld [vmem:[#allocation8 + $0x368] sm:$0xf] }
 0x147   :  { %v6360_v47 = vld [vmem:[#allocation8 + $0x374] sm:$0xf0]  ;;  %v5443_v48 = vld [vmem:[#allocation8 + $0x568] sm:$0xf]  ;;  %v5044_v52 = vor.u32 %v6324_v55, %v5043_v42  ;;  %v6310_v55 = vld [vmem:[#allocation8 + $0x1ec] sm:$0xf] }
 0x148   :  { %2959 = vmatpush.bf16.msra.mxu0 %v4788_v0  ;;  %2933 = vmatpush.bf16.msrb.mxu2 %v5552_v5  ;;  %v6336_v0 = vld [vmem:[#allocation8 + $0x2b4] sm:$0xf0]  ;;  %v5348_v5 = vor.u32 %v6400_v58, %v5347_v57  ;;  %v5283_v53 = vld [vmem:[#allocation8 + $0x428] sm:$0xf] }
 0x149   :  { %2897 = vmatmul.bf16.vlgmr.msra.gmra.mxu3 %v7039_v3  ;;  %v5092_v9 = vor.u32 %v6336_v0, %v5091_v63  ;;  %v6424_v49 = vld [vmem:[#allocation8 + $0x574] sm:$0xf0]  ;;  %v5027_v57 = vld [vmem:[#allocation8 + $0x228] sm:$0xf] }
 0x14a   :  { %2945 = vmatpush.bf16.msrb.mxu3 %v5696_v10  ;;  %2971 = vmatpush.bf16.msra.mxu1 %v4932_v11  ;;  %v5331_v10 = vld [vmem:[#allocation8 + $0x488] sm:$0xf]  ;;  %v6396_v11 = vld [vmem:[#allocation8 + $0x494] sm:$0xf0] }
 0x14b   :  { %v6384_v54 = vld [vmem:[#allocation8 + $0x434] sm:$0xf0]  ;;  %v5171_v63 = vld [vmem:[#allocation8 + $0x348] sm:$0xf] }
 0x14c   :  { %2960 = vmatpush.bf16.msra.mxu0 %v4772_v14  ;;  %2934 = vmatpush.bf16.msrb.mxu2 %v5536_v18  ;;  %v6332_v14 = vld [vmem:[#allocation8 + $0x294] sm:$0xf0]  ;;  %v5332_v18 = vor.u32 %v6396_v11, %v5331_v10  ;;  %v5284_v0 = vor.u32 %v6384_v54, %v5283_v53  ;;  %v5011_v6 = vld [vmem:[#allocation8 + $0x208] sm:$0xf]  ;;  %v6278_v10 = vld [vmem:[#allocation8 + $0xec] sm:$0xf] }
 0x14d   :  { %v5076_v23 = vor.u32 %v6332_v14, %v5075_v12  ;;  %v6320_v58 = vld [vmem:[#allocation8 + $0x234] sm:$0xf0]  ;;  %v5267_v7 = vld [vmem:[#allocation8 + $0x408] sm:$0xf]  ;;  %v4869_v11 = vld [vmem:[#allocation8 + $0xf8] sm:$0xf0] }
 0x14e   :  { %2946 = vmatpush.bf16.msrb.mxu3 %v5680_v26  ;;  %2972 = vmatpush.bf16.msra.mxu1 %v4916_v27  ;;  %v5059_v27 = vld [vmem:[#allocation8 + $0x268] sm:$0xf]  ;;  %v6420_v4 = vld [vmem:[#allocation8 + $0x554] sm:$0xf0]  ;;  %v4872_v25 = vor.u32 %v6278_v10, %v4869_v11  ;;  %v4965_v10 = vld [vmem:[#allocation8 + $0x1b8] sm:$0xf0] }
 0x14f   :  { %v6380_v8 = vld [vmem:[#allocation8 + $0x414] sm:$0xf0]  ;;  %v5155_v17 = vld [vmem:[#allocation8 + $0x328] sm:$0xf]  ;;  %v6262_v11 = vld [vmem:[#allocation8 + $0x6c] sm:$0xf] }
 0x150   :  { %2961 = vmatpush.bf16.msra.mxu0 %v4756_v32  ;;  %2935 = vmatpush.bf16.msrb.mxu2 %v5520_v36  ;;  %v2755_v26 = vpop.f32.mrf.mxu0  ;;  %v5203_v32 = vld [vmem:[#allocation8 + $0x388] sm:$0xf]  ;;  %v6428_v36 = vld [vmem:[#allocation8 + $0x594] sm:$0xf0]  ;;  %v5268_v19 = vor.u32 %v6380_v8, %v5267_v7 }
 0x151   :  { %v6352_v20 = vld [vmem:[#allocation8 + $0x334] sm:$0xf0]  ;;  %v5411_v22 = vld [vmem:[#allocation8 + $0x528] sm:$0xf] }
 0x152   :  { %2947 = vmatpush.bf16.msrb.mxu3 %v5664_v43  ;;  %2973 = vmatpush.bf16.msra.mxu1 %v4900_v44  ;;  %v5204_v43 = vor.u32 %v6364_v34, %v5203_v32  ;;  %v5460_v44 = vor.u32 %v6428_v36, %v5459_v35  ;;  %v5139_v34 = vld [vmem:[#allocation8 + $0x308] sm:$0xf]  ;;  %v6348_v35 = vld [vmem:[#allocation8 + $0x314] sm:$0xf0] }
 0x153   :  { %2962 = vmatmul.bf16.vlgmr.msra.gmra.mxu0 %v7028_v29  ;;  %2936 = vmatmul.bf16.vlgmr.msrb.gmra.mxu2 %v7054_v51  ;;  %v5395_v36 = vld [vmem:[#allocation8 + $0x508] sm:$0xf]  ;;  %v6504_v42 = vld [vmem:[#allocation8 + $0x7f4] sm:$0xf0] }
 0x154   :  { %3006 = vmatpush.bf16.msrb.mxu0 %v5380_v38  ;;  %2980 = vmatpush.bf16.msra.mxu2 %v5124_v39  ;;  %v5060_v38 = vor.u32 %v6328_v28, %v5059_v27  ;;  %v5299_v39 = vld [vmem:[#allocation8 + $0x448] sm:$0xf]  ;;  %v6274_v28 = vld [vmem:[#allocation8 + $0xcc] sm:$0xf]  ;;  %v6464_v53 = vld [vmem:[#allocation8 + $0x6b4] sm:$0xf0] }
 0x155   :  { %v5300_v40 = vor.u32 %v6388_v41, %v5299_v39  ;;  %v5619_v27 = vld [vmem:[#allocation8 + $0x6c8] sm:$0xf]  ;;  %v6496_v8 = vld [vmem:[#allocation8 + $0x7b4] sm:$0xf0] }
 0x156   :  { %2948 = vmatpush.bf16.msrb.mxu3 %v5648_v60  ;;  %2974 = vmatpush.bf16.msra.mxu1 %v4884_v62  ;;  %v2768_v46 = vpop.f32.mrf.mxu1  ;;  %v5188_v60 = vor.u32 %v6360_v47, %v5187_v45  ;;  %v5444_v62 = vor.u32 %v6424_v49, %v5443_v48  ;;  %v5763_v39 = vld [vmem:[#allocation8 + $0x7e8] sm:$0xf]  ;;  %v6270_v45 = vld [vmem:[#allocation8 + $0xac] sm:$0xf] }
 0x157   :  { %v5764_v48 = vor.u32 %v6504_v42, %v5763_v39  ;;  %v5747_v54 = vld [vmem:[#allocation8 + $0x7c8] sm:$0xf]  ;;  %v6294_v39 = vld [vmem:[#allocation8 + $0x16c] sm:$0xf] }
 0x158   :  { %3007 = vmatpush.bf16.msrb.mxu0 %v5364_v50  ;;  %2981 = vmatpush.bf16.msra.mxu2 %v5108_v56  ;;  %v7068_v50 = vadd.f32 %v2768_v46, %v2755_v26  ;;  %v2757_v56 = vpop.f32.mrf.mxu0  ;;  %v4837_v46 = vld [vmem:[#allocation8 + $0xb8] sm:$0xf0]  ;;  %v6254_v42 = vld [vmem:[#allocation8 + $0x2c] sm:$0xf] }
 0x159   :  { %2975 = vmatmul.bf16.vlgmr.msra.gmra.mxu1 %v7031_v61  ;;  %2949 = vmatmul.bf16.vlgmr.msrb.gmra.mxu3 %v7058_v21  ;;  %v4840_v56 = vor.u32 %v6270_v45, %v4837_v46  ;;  %v5539_v45 = vld [vmem:[#allocation8 + $0x628] sm:$0xf]  ;;  %v6448_v46 = vld [vmem:[#allocation8 + $0x634] sm:$0xf0] }
 0x15a   :  { %2993 = vmatpush.bf16.msra.mxu3 %v5252_v1  ;;  %3019 = vmatpush.bf16.msrb.mxu1 %v5508_v2  ;;  %v6356_v1 = vld [vmem:[#allocation8 + $0x354] sm:$0xf0]  ;;  %v5427_v2 = vld [vmem:[#allocation8 + $0x548] sm:$0xf] }
 0x15b   :  { %v5172_v12 = vor.u32 %v6356_v1, %v5171_v63  ;;  %v5428_v14 = vor.u32 %v6420_v4, %v5427_v2  ;;  %v4821_v63 = vld [vmem:[#allocation8 + $0x98] sm:$0xf0]  ;;  %v5587_v4 = vld [vmem:[#allocation8 + $0x688] sm:$0xf] }
 0x15c   :  { %3008 = vmatpush.bf16.msrb.mxu0 %v5348_v5  ;;  %2982 = vmatpush.bf16.msra.mxu2 %v5092_v9  ;;  %v5028_v5 = vor.u32 %v6320_v58, %v5027_v57  ;;  %v6316_v9 = vld [vmem:[#allocation8 + $0x214] sm:$0xf0]  ;;  %v6306_v58 = vld [vmem:[#allocation8 + $0x1cc] sm:$0xf] }
 0x15d   :  { %v5012_v24 = vor.u32 %v6316_v9, %v5011_v6  ;;  %v6500_v57 = vld [vmem:[#allocation8 + $0x7d4] sm:$0xf0]  ;;  %v5731_v6 = vld [vmem:[#allocation8 + $0x7a8] sm:$0xf]  ;;  %v6302_v9 = vld [vmem:[#allocation8 + $0x1ac] sm:$0xf] }
 0x15e   :  { %2994 = vmatpush.bf16.msra.mxu3 %v5236_v15  ;;  %3020 = vmatpush.bf16.msrb.mxu1 %v5492_v16  ;;  %v5635_v15 = vld [vmem:[#allocation8 + $0x6e8] sm:$0xf]  ;;  %v6472_v16 = vld [vmem:[#allocation8 + $0x6f4] sm:$0xf0]  ;;  %v5748_v1 = vor.u32 %v6500_v57, %v5747_v54  ;;  %v4757_v57 = vld [vmem:[#allocation8 + $0x18] sm:$0xf0] }
 0x15f   :  { %v5636_v26 = vor.u32 %v6472_v16, %v5635_v15  ;;  %v5732_v15 = vor.u32 %v6496_v8, %v5731_v6  ;;  %v4968_v16 = vor.u32 %v6302_v9, %v4965_v10  ;;  %v5667_v8 = vld [vmem:[#allocation8 + $0x728] sm:$0xf]  ;;  %v6480_v9 = vld [vmem:[#allocation8 + $0x734] sm:$0xf0] }
 0x160   :  { %3009 = vmatpush.bf16.msrb.mxu0 %v5332_v18  ;;  %2983 = vmatpush.bf16.msra.mxu2 %v5076_v23  ;;  %v2770_v18 = vpop.f32.mrf.mxu1  ;;  %v6416_v23 = vld [vmem:[#allocation8 + $0x534] sm:$0xf0] }
 0x161   :  { %v5412_v32 = vor.u32 %v6416_v23, %v5411_v22  ;;  %v6456_v18 = vld [vmem:[#allocation8 + $0x674] sm:$0xf0]  ;;  %v6298_v23 = vld [vmem:[#allocation8 + $0x18c] sm:$0xf] }
 0x162   :  { %2995 = vmatpush.bf16.msra.mxu3 %v5220_v30  ;;  %3021 = vmatpush.bf16.msrb.mxu1 %v5476_v31  ;;  %v4853_v30 = vld [vmem:[#allocation8 + $0xd8] sm:$0xf0]  ;;  %v5156_v31 = vor.u32 %v6352_v20, %v5155_v17  ;;  %v5571_v17 = vld [vmem:[#allocation8 + $0x668] sm:$0xf]  ;;  %v6492_v22 = vld [vmem:[#allocation8 + $0x794] sm:$0xf0] }
 0x163   :  { %v4856_v41 = vor.u32 %v6274_v28, %v4853_v30  ;;  %v5572_v30 = vor.u32 %v6456_v18, %v5571_v17  ;;  %v5668_v18 = vor.u32 %v6480_v9, %v5667_v8  ;;  %v5061_v8 = vld [vmem:[#allocation8 + $0x278] sm:$0xf0] }
 0x164   :  { %3010 = vmatpush.bf16.msrb.mxu0 %v5316_v33  ;;  %2984 = vmatpush.bf16.msra.mxu2 %v5060_v38  ;;  %v6468_v33 = vld [vmem:[#allocation8 + $0x6d4] sm:$0xf0] }
 0x165   :  { %v6412_v38 = vld [vmem:[#allocation8 + $0x514] sm:$0xf0] }
 0x166   :  { %2996 = vmatpush.bf16.msra.mxu3 %v5204_v43  ;;  %3022 = vmatpush.bf16.msrb.mxu1 %v5460_v44  ;;  %v4997_v43 = vld [vmem:[#allocation8 + $0x1f8] sm:$0xf0]  ;;  %v5620_v44 = vor.u32 %v6468_v33, %v5619_v27  ;;  %v5396_v47 = vor.u32 %v6412_v38, %v5395_v36  ;;  %v5555_v33 = vld [vmem:[#allocation8 + $0x648] sm:$0xf]  ;;  %v6488_v38 = vld [vmem:[#allocation8 + $0x774] sm:$0xf0] }
 0x167   :  { %v5000_v49 = vor.u32 %v6310_v55, %v4997_v43  ;;  %v4789_v27 = vld [vmem:[#allocation8 + $0x58] sm:$0xf0] }
 0x168   :  { %3011 = vmatpush.bf16.msrb.mxu0 %v5300_v40  ;;  %2985 = vmatpush.bf16.msra.mxu2 %v5044_v52  ;;  %v5140_v40 = vor.u32 %v6348_v35, %v5139_v34  ;;  %v5603_v52 = vld [vmem:[#allocation8 + $0x6a8] sm:$0xf]  ;;  %v6452_v34 = vld [vmem:[#allocation8 + $0x654] sm:$0xf0]  ;;  %v4773_v55 = vld [vmem:[#allocation8 + $0x38] sm:$0xf0] }
 0x169   :  { %v5699_v35 = vld [vmem:[#allocation8 + $0x768] sm:$0xf]  ;;  %v5556_v43 = vor.u32 %v6452_v34, %v5555_v33  ;;  %v5509_v33 = vld [vmem:[#allocation8 + $0x5f8] sm:$0xf0]  ;;  %v6398_v34 = vld [vmem:[#allocation8 + $0x4ac] sm:$0xf] }
 0x16a   :  { %2997 = vmatpush.bf16.msra.mxu3 %v5188_v60  ;;  %3023 = vmatpush.bf16.msrb.mxu1 %v5444_v62  ;;  %v4981_v60 = vld [vmem:[#allocation8 + $0x1d8] sm:$0xf0]  ;;  %v6266_v62 = vld [vmem:[#allocation8 + $0x8c] sm:$0xf] }
 0x16b   :  { %v4984_v2 = vor.u32 %v6306_v58, %v4981_v60  ;;  %v4824_v7 = vor.u32 %v6266_v62, %v4821_v63  ;;  %v5540_v60 = vor.u32 %v6448_v46, %v5539_v45  ;;  %v6406_v62 = vld [vmem:[#allocation8 + $0x4ec] sm:$0xf]  ;;  %v5381_v63 = vld [vmem:[#allocation8 + $0x4f8] sm:$0xf0] }
 0x16c   :  { %3012 = vmatpush.bf16.msrb.mxu0 %v5284_v0  ;;  %2986 = vmatpush.bf16.msra.mxu2 %v5028_v5  ;;  %v5604_v0 = vor.u32 %v6464_v53, %v5603_v52  ;;  %v6460_v5 = vld [vmem:[#allocation8 + $0x694] sm:$0xf0]  ;;  %v6290_v52 = vld [vmem:[#allocation8 + $0x14c] sm:$0xf]  ;;  %v4917_v53 = vld [vmem:[#allocation8 + $0x158] sm:$0xf0]  ;;  %v5384_v10 = vor.u32 %v6406_v62, %v5381_v63 }
 0x16d   :  { %v5237_v45 = vld [vmem:[#allocation8 + $0x3d8] sm:$0xf0]  ;;  %v6434_v46 = vld [vmem:[#allocation8 + $0x5cc] sm:$0xf] }
 0x16e   :  { %2998 = vmatpush.bf16.msra.mxu3 %v5172_v12  ;;  %3024 = vmatpush.bf16.msrb.mxu1 %v5428_v14  ;;  %v4805_v12 = vld [vmem:[#allocation8 + $0x78] sm:$0xf0]  ;;  %v5588_v14 = vor.u32 %v6460_v5, %v5587_v4  ;;  %v6444_v4 = vld [vmem:[#allocation8 + $0x614] sm:$0xf0]  ;;  %v6342_v5 = vld [vmem:[#allocation8 + $0x2ec] sm:$0xf] }
 0x16f   :  { %v4808_v20 = vor.u32 %v6262_v11, %v4805_v12  ;;  %v6286_v11 = vld [vmem:[#allocation8 + $0x12c] sm:$0xf]  ;;  %v4901_v12 = vld [vmem:[#allocation8 + $0x138] sm:$0xf0] }
 0x170   :  { %3013 = vmatpush.bf16.msrb.mxu0 %v5268_v19  ;;  %2987 = vmatpush.bf16.msra.mxu2 %v5012_v24  ;;  %v5715_v19 = vld [vmem:[#allocation8 + $0x788] sm:$0xf]  ;;  %v4949_v24 = vld [vmem:[#allocation8 + $0x198] sm:$0xf0]  ;;  %v6430_v63 = vld [vmem:[#allocation8 + $0x5ac] sm:$0xf] }
 0x171   :  { %v5221_v62 = vld [vmem:[#allocation8 + $0x3b8] sm:$0xf0] }
 0x172   :  { %2999 = vmatpush.bf16.msra.mxu3 %v5156_v31  ;;  %3025 = vmatpush.bf16.msrb.mxu1 %v5412_v32  ;;  %v5716_v31 = vor.u32 %v6492_v22, %v5715_v19  ;;  %v4952_v32 = vor.u32 %v6298_v23, %v4949_v24  ;;  %v6338_v19 = vld [vmem:[#allocation8 + $0x2cc] sm:$0xf]  ;;  %v5651_v22 = vld [vmem:[#allocation8 + $0x708] sm:$0xf]  ;;  %v4904_v23 = vor.u32 %v6286_v11, %v4901_v12  ;;  %v6476_v24 = vld [vmem:[#allocation8 + $0x714] sm:$0xf0] }
 0x173   :  { %2988 = vmatmul.bf16.vlgmr.msra.gmra.mxu2 %v7036_v13  ;;  %3014 = vmatmul.bf16.vlgmr.msrb.gmra.mxu0 %v7044_v37  ;;  %v6362_v11 = vld [vmem:[#allocation8 + $0x38c] sm:$0xf]  ;;  %v5205_v12 = vld [vmem:[#allocation8 + $0x398] sm:$0xf0] }
 0x174   :  { %3058 = vmatpush.bf16.msra.mxu0 %v4872_v25  ;;  %3032 = vmatpush.bf16.msrb.mxu2 %v5636_v26  ;;  %v6258_v26 = vld [vmem:[#allocation8 + $0x4c] sm:$0xf] }
 0x175   :  { %v4792_v36 = vor.u32 %v6258_v26, %v4789_v27  ;;  %v4885_v26 = vld [vmem:[#allocation8 + $0x118] sm:$0xf0] }
 0x176   :  { %3000 = vmatpush.bf16.msra.mxu3 %v5140_v40  ;;  %3026 = vmatpush.bf16.msrb.mxu1 %v5396_v47  ;;  %v2781_v25 = vpop.f32.mrf.mxu2  ;;  %v5683_v40 = vld [vmem:[#allocation8 + $0x748] sm:$0xf] }
 0x177   :  { %v2782_v28 = vadd.f32 %v2781_v25, %v7068_v50  ;;  %v5700_v50 = vor.u32 %v6488_v38, %v5699_v35  ;;  %v6282_v25 = vld [vmem:[#allocation8 + $0x10c] sm:$0xf]  ;;  %v5349_v35 = vld [vmem:[#allocation8 + $0x4b8] sm:$0xf0]  ;;  %v5652_v38 = vor.u32 %v6476_v24, %v5651_v22 }
 0x178   :  { %3059 = vmatpush.bf16.msra.mxu0 %v4856_v41  ;;  %3033 = vmatpush.bf16.msrb.mxu2 %v5620_v44  ;;  %v4933_v41 = vld [vmem:[#allocation8 + $0x178] sm:$0xf0] }
 0x179   :  { %3001 = vmatmul.bf16.vlgmr.msra.gmra.mxu3 %v7039_v3  ;;  %3027 = vmatmul.bf16.vlgmr.msrb.gmra.mxu1 %v7047_v59  ;;  %v4936_v44 = vor.u32 %v6294_v39, %v4933_v41  ;;  %v4888_v39 = vor.u32 %v6282_v25, %v4885_v26  ;;  %v6358_v26 = vld [vmem:[#allocation8 + $0x36c] sm:$0xf] }
 0x17a   :  { %3045 = vmatpush.bf16.msrb.mxu3 %v5764_v48  ;;  %3071 = vmatpush.bf16.msra.mxu1 %v5000_v49  ;;  %v4776_v48 = vor.u32 %v6254_v42, %v4773_v55  ;;  %v6484_v49 = vld [vmem:[#allocation8 + $0x754] sm:$0xf0]  ;;  %v6334_v42 = vld [vmem:[#allocation8 + $0x2ac] sm:$0xf]  ;;  %v5093_v55 = vld [vmem:[#allocation8 + $0x2b8] sm:$0xf0] }
 0x17c   :  { %3060 = vmatpush.bf16.msra.mxu0 %v4840_v56  ;;  %3034 = vmatpush.bf16.msrb.mxu2 %v5604_v0  ;;  %v2794_v47 = vpop.f32.mrf.mxu3  ;;  %v6250_v56 = vld [vmem:[#allocation8 + $0xc] sm:$0xf]  ;;  %v5684_v0 = vor.u32 %v6484_v49, %v5683_v40  ;;  %v5493_v40 = vld [vmem:[#allocation8 + $0x5d8] sm:$0xf0]  ;;  %v5096_v49 = vor.u32 %v6334_v42, %v5093_v55 }
 0x17d   :  { %v7075_v54 = vadd.f32 %v2794_v47, %v2782_v28  ;;  %v4760_v6 = vor.u32 %v6250_v56, %v4757_v57  ;;  %v6394_v47 = vld [vmem:[#allocation8 + $0x48c] sm:$0xf]  ;;  %v5496_v57 = vor.u32 %v6434_v46, %v5493_v40  ;;  %v5173_v42 = vld [vmem:[#allocation8 + $0x358] sm:$0xf0] }
 0x17e   :  { %3046 = vmatpush.bf16.msrb.mxu3 %v5748_v1  ;;  %3072 = vmatpush.bf16.msra.mxu1 %v4984_v2  ;;  %v2783_v58 = vpop.f32.mrf.mxu2  ;;  %v4920_v1 = vor.u32 %v6290_v52, %v4917_v53  ;;  %v5523_v2 = vld [vmem:[#allocation8 + $0x608] sm:$0xf]  ;;  %v6330_v52 = vld [vmem:[#allocation8 + $0x28c] sm:$0xf]  ;;  %v5077_v53 = vld [vmem:[#allocation8 + $0x298] sm:$0xf0] }
 0x17f   :  { %v6418_v55 = vld [vmem:[#allocation8 + $0x54c] sm:$0xf] }
 0x180   :  { %3061 = vmatpush.bf16.msra.mxu0 %v4824_v7  ;;  %3035 = vmatpush.bf16.msrb.mxu2 %v5588_v14  ;;  %v5125_v7 = vld [vmem:[#allocation8 + $0x2f8] sm:$0xf0]  ;;  %v5524_v14 = vor.u32 %v6444_v4, %v5523_v2  ;;  %v6390_v2 = vld [vmem:[#allocation8 + $0x46c] sm:$0xf] }
 0x181   :  { %v5128_v17 = vor.u32 %v6342_v5, %v5125_v7  ;;  %v5317_v4 = vld [vmem:[#allocation8 + $0x478] sm:$0xf0]  ;;  %v5080_v5 = vor.u32 %v6330_v52, %v5077_v53  ;;  %v6326_v7 = vld [vmem:[#allocation8 + $0x26c] sm:$0xf] }
 0x182   :  { %3047 = vmatpush.bf16.msrb.mxu3 %v5732_v15  ;;  %3073 = vmatpush.bf16.msra.mxu1 %v4968_v16  ;;  %v6402_v15 = vld [vmem:[#allocation8 + $0x4cc] sm:$0xf]  ;;  %v5365_v16 = vld [vmem:[#allocation8 + $0x4d8] sm:$0xf0] }
 0x183   :  { %v5368_v28 = vor.u32 %v6402_v15, %v5365_v16  ;;  %v5461_v15 = vld [vmem:[#allocation8 + $0x598] sm:$0xf0] }
 0x184   :  { %3062 = vmatpush.bf16.msra.mxu0 %v4808_v20  ;;  %3036 = vmatpush.bf16.msrb.mxu2 %v5572_v30  ;;  %v5109_v20 = vld [vmem:[#allocation8 + $0x2d8] sm:$0xf0]  ;;  %v2796_v27 = vpop.f32.mrf.mxu3  ;;  %v6374_v30 = vld [vmem:[#allocation8 + $0x3ec] sm:$0xf] }
 0x185   :  { %v5301_v16 = vld [vmem:[#allocation8 + $0x458] sm:$0xf0] }
 0x186   :  { %3048 = vmatpush.bf16.msrb.mxu3 %v5716_v31  ;;  %3074 = vmatpush.bf16.msra.mxu1 %v4952_v32  ;;  %v5253_v31 = vld [vmem:[#allocation8 + $0x3f8] sm:$0xf0]  ;;  %v6438_v32 = vld [vmem:[#allocation8 + $0x5ec] sm:$0xf] }
 0x187   :  { %v5256_v41 = vor.u32 %v6374_v30, %v5253_v31  ;;  %v5189_v27 = vld [vmem:[#allocation8 + $0x378] sm:$0xf0]  ;;  %v6382_v31 = vld [vmem:[#allocation8 + $0x42c] sm:$0xf] }
 0x188   :  { %3063 = vmatpush.bf16.msra.mxu0 %v4792_v36  ;;  %3037 = vmatpush.bf16.msrb.mxu2 %v5556_v43  ;;  %v5112_v36 = vor.u32 %v6338_v19, %v5109_v20  ;;  %v5512_v43 = vor.u32 %v6438_v32, %v5509_v33  ;;  %v6322_v19 = vld [vmem:[#allocation8 + $0x24c] sm:$0xf]  ;;  %v5045_v20 = vld [vmem:[#allocation8 + $0x258] sm:$0xf0] }
 0x189   :  { %v5445_v30 = vld [vmem:[#allocation8 + $0x578] sm:$0xf0]  ;;  %v5048_v33 = vor.u32 %v6322_v19, %v5045_v20  ;;  %v6498_v20 = vld [vmem:[#allocation8 + $0x7cc] sm:$0xf] }
 0x18a   :  { %3049 = vmatpush.bf16.msrb.mxu3 %v5700_v50  ;;  %3075 = vmatpush.bf16.msra.mxu1 %v4936_v44  ;;  %v5352_v50 = vor.u32 %v6398_v34, %v5349_v35  ;;  %v6370_v44 = vld [vmem:[#allocation8 + $0x3cc] sm:$0xf]  ;;  %v5285_v32 = vld [vmem:[#allocation8 + $0x438] sm:$0xf0]  ;;  %v5192_v34 = vor.u32 %v6358_v26, %v5189_v27 }
 0x18b   :  { %v6318_v35 = vld [vmem:[#allocation8 + $0x22c] sm:$0xf]  ;;  %v5605_v19 = vld [vmem:[#allocation8 + $0x6b8] sm:$0xf0] }
 0x18c   :  { %3064 = vmatpush.bf16.msra.mxu0 %v4776_v48  ;;  %3038 = vmatpush.bf16.msrb.mxu2 %v5540_v60  ;;  %v5333_v48 = vld [vmem:[#allocation8 + $0x498] sm:$0xf0]  ;;  %v6366_v60 = vld [vmem:[#allocation8 + $0x3ac] sm:$0xf] }
 0x18d   :  { %v5336_v58 = vor.u32 %v6394_v47, %v5333_v48  ;;  %v6314_v47 = vld [vmem:[#allocation8 + $0x20c] sm:$0xf]  ;;  %v5013_v48 = vld [vmem:[#allocation8 + $0x218] sm:$0xf0] }
 0x18e   :  { %3050 = vmatpush.bf16.msrb.mxu3 %v5684_v0  ;;  %3076 = vmatpush.bf16.msra.mxu1 %v4920_v1  ;;  %v5477_v1 = vld [vmem:[#allocation8 + $0x5b8] sm:$0xf0]  ;;  %v6458_v26 = vld [vmem:[#allocation8 + $0x68c] sm:$0xf] }
 0x18f   :  { %v5480_v9 = vor.u32 %v6430_v63, %v5477_v1  ;;  %v5016_v63 = vor.u32 %v6314_v47, %v5013_v48  ;;  %v5589_v27 = vld [vmem:[#allocation8 + $0x698] sm:$0xf0]  ;;  %v6482_v48 = vld [vmem:[#allocation8 + $0x74c] sm:$0xf] }
 0x190   :  { %3065 = vmatpush.bf16.msra.mxu0 %v4760_v6  ;;  %3039 = vmatpush.bf16.msrb.mxu2 %v5524_v14  ;;  %v2807_v56 = vpop.f32.mrf.mxu0  ;;  %v5224_v6 = vor.u32 %v6366_v60, %v5221_v62  ;;  %v6426_v14 = vld [vmem:[#allocation8 + $0x58c] sm:$0xf]  ;;  %v5413_v62 = vld [vmem:[#allocation8 + $0x538] sm:$0xf0] }
 0x191   :  { %v2808_v0 = vadd.f32 %v2807_v56, %v7075_v54  ;;  %v6386_v54 = vld [vmem:[#allocation8 + $0x44c] sm:$0xf]  ;;  %v5464_v24 = vor.u32 %v6426_v14, %v5461_v15  ;;  %v5637_v56 = vld [vmem:[#allocation8 + $0x6f8] sm:$0xf0] }
 0x192   :  { %3051 = vmatpush.bf16.msrb.mxu3 %v5668_v18  ;;  %3077 = vmatpush.bf16.msra.mxu1 %v4904_v23  ;;  %v5208_v18 = vor.u32 %v6362_v11, %v5205_v12  ;;  %v5304_v25 = vor.u32 %v6386_v54, %v5301_v16  ;;  %v6414_v60 = vld [vmem:[#allocation8 + $0x52c] sm:$0xf]  ;;  %v5765_v11 = vld [vmem:[#allocation8 + $0x7f8] sm:$0xf0] }
 0x193   :  { %3066 = vmatmul.bf16.vlgmr.msra.gmra.mxu0 %v7028_v29  ;;  %3040 = vmatmul.bf16.vlgmr.msrb.gmra.mxu2 %v7054_v51  ;;  %v5240_v29 = vor.u32 %v6370_v44, %v5237_v45  ;;  %v5269_v44 = vld [vmem:[#allocation8 + $0x418] sm:$0xf0] }
 0x194   :  { %3110 = vmatpush.bf16.msrb.mxu0 %v5384_v10  ;;  %3084 = vmatpush.bf16.msra.mxu2 %v5128_v17  ;;  %v5320_v10 = vor.u32 %v6390_v2, %v5317_v4  ;;  %v5064_v17 = vor.u32 %v6326_v7, %v5061_v8  ;;  %v6466_v2 = vld [vmem:[#allocation8 + $0x6cc] sm:$0xf]  ;;  %v5621_v4 = vld [vmem:[#allocation8 + $0x6d8] sm:$0xf0] }
 0x195   :  { %v5141_v7 = vld [vmem:[#allocation8 + $0x318] sm:$0xf0]  ;;  %v6410_v8 = vld [vmem:[#allocation8 + $0x50c] sm:$0xf]  ;;  %v5624_v14 = vor.u32 %v6466_v2, %v5621_v4 }
 0x196   :  { %3052 = vmatpush.bf16.msrb.mxu3 %v5652_v38  ;;  %3078 = vmatpush.bf16.msra.mxu1 %v4888_v39  ;;  %v5288_v39 = vor.u32 %v6382_v31, %v5285_v32  ;;  %v5592_v31 = vor.u32 %v6458_v26, %v5589_v27  ;;  %v5541_v47 = vld [vmem:[#allocation8 + $0x638] sm:$0xf0] }
 0x198   :  { %3111 = vmatpush.bf16.msrb.mxu0 %v5368_v28  ;;  %3085 = vmatpush.bf16.msra.mxu2 %v5112_v36  ;;  %v2809_v23 = vpop.f32.mrf.mxu0  ;;  %v6422_v28 = vld [vmem:[#allocation8 + $0x56c] sm:$0xf]  ;;  %v5029_v36 = vld [vmem:[#allocation8 + $0x238] sm:$0xf0] }
 0x199   :  { %3053 = vmatmul.bf16.vlgmr.msrb.gmra.mxu3 %v7058_v21  ;;  %3079 = vmatmul.bf16.vlgmr.msra.gmra.mxu1 %v7031_v61  ;;  %v2820_v61 = vpop.f32.mrf.mxu1  ;;  %v5448_v38 = vor.u32 %v6422_v28, %v5445_v30  ;;  %v5032_v45 = vor.u32 %v6318_v35, %v5029_v36  ;;  %v5749_v23 = vld [vmem:[#allocation8 + $0x7d8] sm:$0xf0]  ;;  %v6494_v28 = vld [vmem:[#allocation8 + $0x7ac] sm:$0xf] }
 0x19a   :  { %3097 = vmatpush.bf16.msra.mxu3 %v5256_v41  ;;  %3123 = vmatpush.bf16.msrb.mxu1 %v5512_v43  ;;  %v7082_v22 = vadd.f32 %v2820_v61, %v2808_v0  ;;  %v6354_v41 = vld [vmem:[#allocation8 + $0x34c] sm:$0xf]  ;;  %v5429_v43 = vld [vmem:[#allocation8 + $0x558] sm:$0xf0] }
 0x19b   :  { %v5176_v40 = vor.u32 %v6354_v41, %v5173_v42  ;;  %v5432_v52 = vor.u32 %v6418_v55, %v5429_v43  ;;  %v5733_v30 = vld [vmem:[#allocation8 + $0x7b8] sm:$0xf0]  ;;  %v6490_v35 = vld [vmem:[#allocation8 + $0x78c] sm:$0xf] }
 0x19c   :  { %3112 = vmatpush.bf16.msrb.mxu0 %v5352_v50  ;;  %3086 = vmatpush.bf16.msra.mxu2 %v5096_v49  ;;  %v6378_v50 = vld [vmem:[#allocation8 + $0x40c] sm:$0xf]  ;;  %v5736_v32 = vor.u32 %v6494_v28, %v5733_v30  ;;  %v5717_v36 = vld [vmem:[#allocation8 + $0x798] sm:$0xf0] }
 0x19d   :  { %v6470_v49 = vld [vmem:[#allocation8 + $0x6ec] sm:$0xf]  ;;  %v5272_v53 = vor.u32 %v6378_v50, %v5269_v44  ;;  %v5701_v43 = vld [vmem:[#allocation8 + $0x778] sm:$0xf0] }
 0x19e   :  { %3098 = vmatpush.bf16.msra.mxu3 %v5240_v29  ;;  %3124 = vmatpush.bf16.msrb.mxu1 %v5496_v57  ;;  %v6350_v57 = vld [vmem:[#allocation8 + $0x32c] sm:$0xf]  ;;  %v5640_v0 = vor.u32 %v6470_v49, %v5637_v56  ;;  %v5685_v49 = vld [vmem:[#allocation8 + $0x758] sm:$0xf0] }
 0x19f   :  { %v6450_v42 = vld [vmem:[#allocation8 + $0x64c] sm:$0xf]  ;;  %v5688_v56 = vor.u32 %v6482_v48, %v5685_v49 }
 0x1a0   :  { %3113 = vmatpush.bf16.msrb.mxu0 %v5336_v58  ;;  %3087 = vmatpush.bf16.msra.mxu2 %v5080_v5  ;;  %v2859_v29 = vpop.f32.mrf.mxu0  ;;  %v5157_v58 = vld [vmem:[#allocation8 + $0x338] sm:$0xf0]  ;;  %v5416_v5 = vor.u32 %v6414_v60, %v5413_v62  ;;  %v6486_v55 = vld [vmem:[#allocation8 + $0x76c] sm:$0xf] }
 0x1a1   :  { %v2822_v46 = vpop.f32.mrf.mxu1  ;;  %v5160_v1 = vor.u32 %v6350_v57, %v5157_v58  ;;  %v6442_v57 = vld [vmem:[#allocation8 + $0x60c] sm:$0xf]  ;;  %v5525_v58 = vld [vmem:[#allocation8 + $0x618] sm:$0xf0] }
 0x1a2   :  { %3099 = vmatpush.bf16.msra.mxu3 %v5224_v6  ;;  %3125 = vmatpush.bf16.msrb.mxu1 %v5480_v9  ;;  %v6346_v6 = vld [vmem:[#allocation8 + $0x30c] sm:$0xf]  ;;  %v5397_v9 = vld [vmem:[#allocation8 + $0x518] sm:$0xf0]  ;;  %v5704_v46 = vor.u32 %v6486_v55, %v5701_v43 }
 0x1a3   :  { %v5144_v15 = vor.u32 %v6346_v6, %v5141_v7  ;;  %v6478_v60 = vld [vmem:[#allocation8 + $0x72c] sm:$0xf]  ;;  %v5669_v62 = vld [vmem:[#allocation8 + $0x738] sm:$0xf0] }
 0x1a4   :  { %3114 = vmatpush.bf16.msrb.mxu0 %v5320_v10  ;;  %3088 = vmatpush.bf16.msra.mxu2 %v5064_v17  ;;  %v6502_v10 = vld [vmem:[#allocation8 + $0x7ec] sm:$0xf]  ;;  %v5400_v17 = vor.u32 %v6410_v8, %v5397_v9  ;;  %v5672_v4 = vor.u32 %v6478_v60, %v5669_v62  ;;  %v5653_v6 = vld [vmem:[#allocation8 + $0x718] sm:$0xf0] }
 0x1a5   :  { %v5768_v61 = vor.u32 %v6502_v10, %v5765_v11 }
 0x1a6   :  { %3100 = vmatpush.bf16.msra.mxu3 %v5208_v18  ;;  %3126 = vmatpush.bf16.msrb.mxu1 %v5464_v24  ;;  %v6462_v18 = vld [vmem:[#allocation8 + $0x6ac] sm:$0xf] }
 0x1a7   :  { %v5608_v24 = vor.u32 %v6462_v18, %v5605_v19 }
 0x1a8   :  { %3115 = vmatpush.bf16.msrb.mxu0 %v5304_v25  ;;  %3089 = vmatpush.bf16.msra.mxu2 %v5048_v33  ;;  %v2861_v16 = vpop.f32.mrf.mxu0  ;;  %v5752_v25 = vor.u32 %v6498_v20, %v5749_v23  ;;  %v6454_v33 = vld [vmem:[#allocation8 + $0x66c] sm:$0xf] }
 0x1a9   :  { %v2872_v12 = vpop.f32.mrf.mxu1 }
 0x1aa   :  { %3101 = vmatpush.bf16.msra.mxu3 %v5192_v34  ;;  %3127 = vmatpush.bf16.msrb.mxu1 %v5448_v38  ;;  %v7084_v54 = vadd.f32 %v2872_v12, %v2859_v29  ;;  %v5573_v34 = vld [vmem:[#allocation8 + $0x678] sm:$0xf0] }
 0x1ac   :  { %3116 = vmatpush.bf16.msrb.mxu0 %v5288_v39  ;;  %3090 = vmatpush.bf16.msra.mxu2 %v5032_v45  ;;  %v5576_v39 = vor.u32 %v6454_v33, %v5573_v34 }
 0x1ae   :  { %3102 = vmatpush.bf16.msra.mxu3 %v5176_v40  ;;  %3128 = vmatpush.bf16.msrb.mxu1 %v5432_v52  ;;  %v6446_v40 = vld [vmem:[#allocation8 + $0x62c] sm:$0xf] }
 0x1b0   :  { %3117 = vmatpush.bf16.msrb.mxu0 %v5272_v53  ;;  %3091 = vmatpush.bf16.msra.mxu2 %v5016_v63  ;;  %v5544_v53 = vor.u32 %v6446_v40, %v5541_v47 }
 0x1b2   :  { %3103 = vmatpush.bf16.msra.mxu3 %v5160_v1  ;;  %3129 = vmatpush.bf16.msrb.mxu1 %v5416_v5  ;;  %v6474_v5 = vld [vmem:[#allocation8 + $0x70c] sm:$0xf] }
 0x1b3   :  { %3118 = vmatmul.bf16.vlgmr.msrb.gmra.mxu0 %v7044_v37  ;;  %3092 = vmatmul.bf16.vlgmr.msra.gmra.mxu2 %v7036_v13  ;;  %v2874_v37 = vpop.f32.mrf.mxu1  ;;  %v7090_v13 = vpop.f32.mrf.mxu0  ;;  %v5656_v11 = vor.u32 %v6474_v5, %v5653_v6 }
 0x1b4   :  { %3136 = vmatpush.bf16.msrb.mxu2 %v5640_v0  ;;  %v5528_v0 = vor.u32 %v6442_v57, %v5525_v58 }
 0x1b6   :  { %3104 = vmatpush.bf16.msra.mxu3 %v5144_v15  ;;  %3130 = vmatpush.bf16.msrb.mxu1 %v5400_v17  ;;  %v2833_v38 = vpop.f32.mrf.mxu2 }
 0x1b7   :  { %v2834_v41 = vadd.f32 %v2833_v38, %v7082_v22 }
 0x1b8   :  { %3137 = vmatpush.bf16.msrb.mxu2 %v5624_v14 }
 0x1b9   :  { %3105 = vmatmul.bf16.vlgmr.msra.gmra.mxu3 %v7039_v3  ;;  %3131 = vmatmul.bf16.vlgmr.msrb.gmra.mxu1 %v7047_v59  ;;  %v5720_v3 = vor.u32 %v6490_v35, %v5717_v36  ;;  %v5557_v59 = vld [vmem:[#allocation8 + $0x658] sm:$0xf0] }
 0x1ba   :  { %3149 = vmatpush.bf16.msrb.mxu3 %v5768_v61  ;;  %v5560_v44 = vor.u32 %v6450_v42, %v5557_v59 }
 0x1bb   :  { %v2924_v50 = vpop.f32.mrf.mxu1  ;;  %v2913_v45 = vpop.f32.mrf.mxu0 }
 0x1bc   :  { %3138 = vmatpush.bf16.msrb.mxu2 %v5608_v24  ;;  %v2846_v29 = vpop.f32.mrf.mxu3 }
 0x1bd   :  { %v7093_v52 = vadd.f32 %v2846_v29, %v2834_v41 }
 0x1be   :  { %3150 = vmatpush.bf16.msrb.mxu3 %v5752_v25  ;;  %v2835_v22 = vpop.f32.mrf.mxu2 }
 0x1bf   :  { %v3162_v1 = vrot.slane %v7093_v52, 4  ;;  %v3190_v2 = vmul.f32 %v7093_v52, %v7093_v52 }
 0x1c0   :  { %3139 = vmatpush.bf16.msrb.mxu2 %v5592_v31 }
 0x1c1   :  { %v3163_v8 = vadd.f32 %v3162_v1, %v7093_v52  ;;  %v3194_v9 = vrot.slane %v3190_v2, 4 }
 0x1c2   :  { %3151 = vmatpush.bf16.msrb.mxu3 %v5736_v32 }
 0x1c3   :  { %v2926_v63 = vpop.f32.mrf.mxu1  ;;  %v3164_v14 = vrot.slane %v3163_v8, 2  ;;  %v3195_v15 = vadd.f32 %v3194_v9, %v3190_v2 }
 0x1c4   :  { %3140 = vmatpush.bf16.msrb.mxu2 %v5576_v39  ;;  %v2848_v7 = vpop.f32.mrf.mxu3 }
 0x1c5   :  { %v3165_v61 = vadd.f32 %v3164_v14, %v3163_v8  ;;  %v3196_v18 = vrot.slane %v3195_v15, 2 }
 0x1c6   :  { %3152 = vmatpush.bf16.msrb.mxu3 %v5720_v3  ;;  %v2885_v10 = vpop.f32.mrf.mxu2 }
 0x1c7   :  { %v2886_v12 = vadd.f32 %v2885_v10, %v7084_v54  ;;  %v3166_v25 = vrot.slane %v3165_v61, 1  ;;  %v3197_v26 = vadd.f32 %v3196_v18, %v3195_v15 }
 0x1c8   :  { %3141 = vmatpush.bf16.msrb.mxu2 %v5560_v44 }
 0x1c9   :  { %v3167_v54 = vadd.f32 %v3166_v25, %v3165_v61  ;;  %v3198_v28 = vrot.slane %v3197_v26, 1 }
 0x1ca   :  { %3153 = vmatpush.bf16.msrb.mxu3 %v5704_v46 }
 0x1cb   :  { %v7103_v33 = vmul.f32 0.125, %v3167_v54 }
 0x1cc   :  { %3142 = vmatpush.bf16.msrb.mxu2 %v5544_v53  ;;  %v2898_v16 = vpop.f32.mrf.mxu3 }
 0x1cd   :  { %v2899_v17 = vadd.f32 %v2898_v16, %v2886_v12 }
 0x1ce   :  { %3154 = vmatpush.bf16.msrb.mxu3 %v5688_v56  ;;  %v2887_v19 = vpop.f32.mrf.mxu2 }
 0x1cf   :  { %v2912_v20 = vadd.f32 %v7090_v13, %v2899_v17  ;;  %v3222_v13 = vmul.f32 %v7103_v33, %v7103_v33 }
 0x1d0   :  { %3143 = vmatpush.bf16.msrb.mxu2 %v5528_v0  ;;  %v2963_v23 = vpop.f32.mrf.mxu0 }
 0x1d1   :  { %v2925_v24 = vadd.f32 %v2924_v50, %v2912_v20 }
 0x1d2   :  { %3155 = vmatpush.bf16.msrb.mxu3 %v5672_v4 }
 0x1d3   :  { %3144 = vmatmul.bf16.vlgmr.msrb.gmra.mxu2 %v7054_v51 }
 0x1d4   :  { %v2900_v27 = vpop.f32.mrf.mxu3 }
 0x1d6   :  { %3156 = vmatpush.bf16.msrb.mxu3 %v5656_v11  ;;  %v2976_v51 = vpop.f32.mrf.mxu1  ;;  %v2937_v30 = vpop.f32.mrf.mxu2 }
 0x1d7   :  { %v2977_v37 = vadd.f32 %v2976_v51, %v2963_v23  ;;  %v2938_v31 = vadd.f32 %v2937_v30, %v2925_v24 }
 0x1d8   :  { %v2965_v32 = vpop.f32.mrf.mxu0 }
 0x1d9   :  { %3157 = vmatmul.bf16.vlgmr.msrb.gmra.mxu3 %v7058_v21  ;;  %v3199_v21 = vadd.f32 %v3198_v28, %v3197_v26 }
 0x1db   :  { %v3218_v35 = vmul.f32 0.125, %v3199_v21 }
 0x1dc   :  { %v2950_v34 = vpop.f32.mrf.mxu3 }
 0x1dd   :  { %v7107_v36 = vadd.f32 %v2950_v34, %v2938_v31  ;;  %v3226_v42 = vsub.f32 %v3218_v35, %v3222_v13 }
 0x1de   :  { %v2978_v38 = vpop.f32.mrf.mxu1  ;;  %v2939_v39 = vpop.f32.mrf.mxu2 }
 0x1df   :  { %v3168_v41 = vrot.slane %v7107_v36, 4  ;;  %v3191_v3 = vmul.f32 %v7107_v36, %v7107_v36  ;;  %v3231_v45 = vadd.f32 1e-05, %v3226_v42 }
 0x1e1   :  { %v3169_v59 = vadd.f32 %v3168_v41, %v7107_v36  ;;  %v3200_v55 = vrot.slane %v3191_v3, 4  ;;  %6612 = vrsqrt.f32 %v3231_v45  ;;  %vm3241_vm12 = vweird.f32 %v3231_v45 }
 0x1e3   :  { %v3170_v43 = vrot.slane %v3169_v59, 2  ;;  %v3201_v50 = vadd.f32 %v3200_v55, %v3191_v3 }
 0x1e4   :  { %v2952_v44 = vpop.f32.mrf.mxu3 }
 0x1e5   :  { %v3171_v46 = vadd.f32 %v3170_v43, %v3169_v59  ;;  %v3202_v40 = vrot.slane %v3201_v50, 2 }
 0x1e7   :  { %v3172_v47 = vrot.slane %v3171_v46, 1  ;;  %v3203_v48 = vadd.f32 %v3202_v40, %v3201_v50  ;;  %v6613_v60 = vpop.eup %6612 }
 0x1e8   :  { %v3236_v0 = vmul.f32 %v6613_v60, %v3231_v45  ;;  %vm3242_vm9 = vweird.f32 %v6613_v60 }
 0x1e9   :  { %v3173_v49 = vadd.f32 %v3172_v47, %v3171_v46  ;;  %v3204_v29 = vrot.slane %v3203_v48, 1  ;;  %vm3243_vm14 = vmor %vm3241_vm12, %vm3242_vm9 }
 0x1ea   :  { %v3237_v6 = vmul.f32 %v6613_v60, %v3236_v0 }
 0x1eb   :  { %v7113_v22 = vmul.f32 0.125, %v3173_v49  ;;  %v3205_v53 = vadd.f32 %v3204_v29, %v3203_v48 }
 0x1ec   :  { %v3238_v10 = vmul.f32 0.5, %v3237_v6  ;;  %v5891_v6 = vld [vmem:[#allocation11 + $0xf0] sm:$0xf] }
 0x1ed   :  { %v3219_v57 = vmul.f32 0.125, %v3205_v53  ;;  %v3223_v58 = vmul.f32 %v7113_v22, %v7113_v22 }
 0x1ee   :  { %v3239_v61 = vsub.f32 1.5, %v3238_v10  ;;  %v5955_v10 = vld [vmem:[#allocation11 + $0x170] sm:$0xf] }
 0x1ef   :  { %v3227_v62 = vsub.f32 %v3219_v57, %v3223_v58 }
 0x1f0   :  { %v3015_v56 = vpop.f32.mrf.mxu0  ;;  %v3240_v23 = vmul.f32 %v6613_v60, %v3239_v61 }
 0x1f1   :  { %v3232_v63 = vadd.f32 1e-05, %v3227_v62 }
 0x1f2   :  { %v3244_v27 = vsel %vm3243_vm14, %v6613_v60, %v3240_v23 }
 0x1f3   :  { %6614 = vrsqrt.f32 %v3232_v63  ;;  %vm3251_vm10 = vweird.f32 %v3232_v63 }
 0x1f6   :  { %v2989_v1 = vpop.f32.mrf.mxu2  ;;  %v3028_v2 = vpop.f32.mrf.mxu1 }
 0x1f7   :  { %v2990_v4 = vadd.f32 %v2989_v1, %v2977_v37 }
 0x1f8   :  { %v3017_v5 = vpop.f32.mrf.mxu0 }
 0x1f9   :  { %v6615_v8 = vpop.eup %6614  ;;  %v6520_v5 = vld [vmem:[#allocation11 + $0x74] sm:$0xf0] }
 0x1fa   :  { %v3246_v11 = vmul.f32 %v6615_v8, %v3232_v63  ;;  %vm3252_vm8 = vweird.f32 %v6615_v8 }
 0x1fb   :  { %vm3253_vm11 = vmor %vm3251_vm10, %vm3252_vm8 }
 0x1fc   :  { %v3002_v7 = vpop.f32.mrf.mxu3  ;;  %v3247_v16 = vmul.f32 %v6615_v8, %v3246_v11  ;;  %v6552_v11 = vld [vmem:[#allocation11 + $0x174] sm:$0xf0] }
 0x1fd   :  { %v3003_v9 = vadd.f32 %v3002_v7, %v2990_v4  ;;  %v5827_v4 = vld [vmem:[#allocation11 + $0x70] sm:$0xf] }
 0x1fe   :  { %v2991_v12 = vpop.f32.mrf.mxu2  ;;  %v3030_v14 = vpop.f32.mrf.mxu1  ;;  %v3248_v18 = vmul.f32 0.5, %v3247_v16  ;;  %v6568_v16 = vld [vmem:[#allocation11 + $0x1f4] sm:$0xf0] }
 0x1ff   :  { %v3016_v15 = vadd.f32 %v3015_v56, %v3003_v9  ;;  %v6536_v9 = vld [vmem:[#allocation11 + $0xf4] sm:$0xf0]  ;;  %v5956_v14 = vor.u32 %v6552_v11, %v5955_v10 }
 0x200   :  { %v3249_v19 = vsub.f32 1.5, %v3248_v18  ;;  %v5892_v12 = vor.u32 %v6536_v9, %v5891_v6  ;;  %v5819_v18 = vld [vmem:[#allocation11 + $0x60] sm:$0xf]  ;;  %v5859_v9 = vld [vmem:[#allocation11 + $0xb0] sm:$0xf] }
 0x201   :  { %v3029_v17 = vadd.f32 %v3028_v2, %v3016_v15  ;;  %v6019_v15 = vld [vmem:[#allocation11 + $0x1f0] sm:$0xf]  ;;  %3759 = vmatpush.bf16.msra.mxu2 %v5956_v14 }
 0x202   :  { %v3250_v24 = vmul.f32 %v6615_v8, %v3249_v19  ;;  %v6020_v61 = vor.u32 %v6568_v16, %v6019_v15  ;;  %3746 = vmatpush.bf16.msra.mxu1 %v5892_v12  ;;  %v6518_v19 = vld [vmem:[#allocation11 + $0x64] sm:$0xf0]  ;;  %v6528_v15 = vld [vmem:[#allocation11 + $0xb4] sm:$0xf0]  ;;  %v5923_v16 = vld [vmem:[#allocation11 + $0x130] sm:$0xf] }
 0x204   :  { %v3004_v20 = vpop.f32.mrf.mxu3  ;;  %v3254_v25 = vsel %vm3253_vm11, %v6615_v8, %v3250_v24  ;;  %v5828_v8 = vor.u32 %v6520_v5, %v5827_v4  ;;  %3772 = vmatpush.bf16.msra.mxu3 %v6020_v61  ;;  %v5820_v24 = vor.u32 %v6518_v19, %v5819_v18  ;;  %v5860_v61 = vor.u32 %v6528_v15, %v5859_v9  ;;  %v6544_v18 = vld [vmem:[#allocation11 + $0x134] sm:$0xf0]  ;;  %v5987_v19 = vld [vmem:[#allocation11 + $0x1b0] sm:$0xf] }
 0x205   :  { %v3279_v26 = vrot.slane %v3254_v25, 7  ;;  %v5883_v20 = vld [vmem:[#allocation11 + $0xe0] sm:$0xf]  ;;  %v6534_v25 = vld [vmem:[#allocation11 + $0xe4] sm:$0xf0] }
 0x206   :  { %3733 = vmatpush.bf16.msra.mxu0 %v5828_v8  ;;  %v6512_v8 = vld [vmem:[#allocation11 + $0x34] sm:$0xf0] }
 0x207   :  { %v7118_v54 = vsel %vm3282_vm13, %v3244_v27, %v3279_v26  ;;  %v5947_v26 = vld [vmem:[#allocation11 + $0x160] sm:$0xf]  ;;  %v6550_v27 = vld [vmem:[#allocation11 + $0x164] sm:$0xf0] }
 0x20a   :  { %3734 = vmatpush.bf16.msra.mxu0 %v5820_v24 }
 0x210   :  { %v3067_v28 = vpop.f32.mrf.mxu0 }
 0x216   :  { %v3041_v51 = vpop.f32.mrf.mxu2  ;;  %v3080_v30 = vpop.f32.mrf.mxu1 }
 0x217   :  { %v3042_v34 = vadd.f32 %v3041_v51, %v3029_v17  ;;  %v3081_v0 = vadd.f32 %v3080_v30, %v3067_v28  ;;  %v5884_v28 = vor.u32 %v6534_v25, %v5883_v20  ;;  %v5948_v51 = vor.u32 %v6550_v27, %v5947_v26  ;;  %v6011_v30 = vld [vmem:[#allocation11 + $0x1e0] sm:$0xf]  ;;  %v6560_v20 = vld [vmem:[#allocation11 + $0x1b4] sm:$0xf0] }
 0x218   :  { %v3069_v37 = vpop.f32.mrf.mxu0  ;;  %v5924_v25 = vor.u32 %v6544_v18, %v5923_v16  ;;  %v5988_v26 = vor.u32 %v6560_v20, %v5987_v19  ;;  %v6538_v16 = vld [vmem:[#allocation11 + $0x104] sm:$0xf0] }
 0x219   :  { %v6566_v37 = vld [vmem:[#allocation11 + $0x1e4] sm:$0xf0]  ;;  %3747 = vmatpush.bf16.msra.mxu1 %v5884_v28  ;;  %3760 = vmatpush.bf16.msra.mxu2 %v5948_v51  ;;  %v5787_v28 = vld [vmem:[#allocation11 + $0x20] sm:$0xf] }
 0x21a   :  { %v6510_v51 = vld [vmem:[#allocation11 + $0x24] sm:$0xf0] }
 0x21b   :  { %v6554_v18 = vld [vmem:[#allocation11 + $0x184] sm:$0xf0] }
 0x21c   :  { %v3054_v31 = vpop.f32.mrf.mxu3 }
 0x21d   :  { %v7120_v13 = vadd.f32 %v3054_v31, %v3042_v34  ;;  %v6516_v34 = vld [vmem:[#allocation11 + $0x54] sm:$0xf0] }
 0x21e   :  { %v3043_v32 = vpop.f32.mrf.mxu2  ;;  %v3082_v21 = vpop.f32.mrf.mxu1 }
 0x21f   :  { %v3174_v38 = vrot.slane %v7120_v13, 4  ;;  %v3192_v39 = vmul.f32 %v7120_v13, %v7120_v13  ;;  %v6012_v32 = vor.u32 %v6566_v37, %v6011_v30  ;;  %v5811_v21 = vld [vmem:[#allocation11 + $0x50] sm:$0xf]  ;;  %v5851_v30 = vld [vmem:[#allocation11 + $0xa0] sm:$0xf] }
 0x221   :  { %v3175_v41 = vadd.f32 %v3174_v38, %v7120_v13  ;;  %v3206_v3 = vrot.slane %v3192_v39, 4  ;;  %3773 = vmatpush.bf16.msra.mxu3 %v6012_v32 }
 0x223   :  { %v3176_v59 = vrot.slane %v3175_v41, 2  ;;  %v3207_v55 = vadd.f32 %v3206_v3, %v3192_v39  ;;  %v5812_v39 = vor.u32 %v6516_v34, %v5811_v21  ;;  %v5939_v3 = vld [vmem:[#allocation11 + $0x150] sm:$0xf]  ;;  %v5788_v21 = vor.u32 %v6510_v51, %v5787_v28  ;;  %v6526_v34 = vld [vmem:[#allocation11 + $0xa4] sm:$0xf0] }
 0x224   :  { %v3056_v35 = vpop.f32.mrf.mxu3  ;;  %v5893_v28 = vld [vmem:[#allocation11 + $0xf8] sm:$0xf0]  ;;  %v6551_v51 = vld [vmem:[#allocation11 + $0x174] sm:$0xf] }
 0x225   :  { %v3177_v44 = vadd.f32 %v3176_v59, %v3175_v41  ;;  %v3208_v45 = vrot.slane %v3207_v55, 2  ;;  %v5875_v35 = vld [vmem:[#allocation11 + $0xd0] sm:$0xf]  ;;  %v6532_v41 = vld [vmem:[#allocation11 + $0xd4] sm:$0xf0]  ;;  %3735 = vmatpush.bf16.msra.mxu0 %v5812_v39 }
 0x226   :  { %v5876_v59 = vor.u32 %v6532_v41, %v5875_v35  ;;  %v5915_v35 = vld [vmem:[#allocation11 + $0x120] sm:$0xf]  ;;  %v6542_v39 = vld [vmem:[#allocation11 + $0x124] sm:$0xf0] }
 0x227   :  { %v3178_v40 = vrot.slane %v3177_v44, 1  ;;  %v3209_v47 = vadd.f32 %v3208_v45, %v3207_v55  ;;  %v5979_v41 = vld [vmem:[#allocation11 + $0x1a0] sm:$0xf] }
 0x228   :  { %3748 = vmatpush.bf16.msra.mxu1 %v5876_v59 }
 0x229   :  { %v3179_v53 = vadd.f32 %v3178_v40, %v3177_v44  ;;  %v3210_v56 = vrot.slane %v3209_v47, 1  ;;  %v6564_v44 = vld [vmem:[#allocation11 + $0x1d4] sm:$0xf0] }
 0x22b   :  { %v7126_v57 = vmul.f32 0.125, %v3179_v53  ;;  %v3211_v58 = vadd.f32 %v3210_v56, %v3209_v47  ;;  %v5803_v47 = vld [vmem:[#allocation11 + $0x40] sm:$0xf]  ;;  %v6530_v53 = vld [vmem:[#allocation11 + $0xc4] sm:$0xf0] }
 0x22c   :  { %v5931_v56 = vld [vmem:[#allocation11 + $0x140] sm:$0xf] }
 0x22d   :  { %v3220_v62 = vmul.f32 0.125, %v3211_v58  ;;  %v3224_v63 = vmul.f32 %v7126_v57, %v7126_v57  ;;  %v6546_v58 = vld [vmem:[#allocation11 + $0x144] sm:$0xf0] }
 0x22f   :  { %v3228_v1 = vsub.f32 %v3220_v62, %v3224_v63  ;;  %v5932_v63 = vor.u32 %v6546_v58, %v5931_v56  ;;  %v5907_v56 = vld [vmem:[#allocation11 + $0x110] sm:$0xf]  ;;  %v6540_v58 = vld [vmem:[#allocation11 + $0x114] sm:$0xf0] }
 0x230   :  { %v3119_v42 = vpop.f32.mrf.mxu0 }
 0x231   :  { %v7130_v17 = vadd.f32 1e-05, %v3228_v1  ;;  %v6562_v1 = vld [vmem:[#allocation11 + $0x1c4] sm:$0xf0] }
 0x233   :  { %6616 = vrsqrt.f32 %v7130_v17  ;;  %vm3261_vm0 = vweird.f32 %v7130_v17 }
 0x236   :  { %v3093_v43 = vpop.f32.mrf.mxu2  ;;  %v3132_v50 = vpop.f32.mrf.mxu1 }
 0x237   :  { %v3094_v2 = vadd.f32 %v3093_v43, %v3081_v0  ;;  %v6003_v43 = vld [vmem:[#allocation11 + $0x1d0] sm:$0xf]  ;;  %v5995_v0 = vld [vmem:[#allocation11 + $0x1c0] sm:$0xf] }
 0x238   :  { %v3121_v46 = vpop.f32.mrf.mxu0  ;;  %v5996_v6 = vor.u32 %v6562_v1, %v5995_v0  ;;  %v5908_v1 = vor.u32 %v6540_v58, %v5907_v56  ;;  %v6547_v56 = vld [vmem:[#allocation11 + $0x154] sm:$0xf]  ;;  %v5941_v58 = vld [vmem:[#allocation11 + $0x158] sm:$0xf0] }
 0x239   :  { %v6004_v46 = vor.u32 %v6564_v44, %v6003_v43  ;;  %v5779_v44 = vld [vmem:[#allocation11 + $0x10] sm:$0xf] }
 0x23b   :  { %3774 = vmatpush.bf16.msra.mxu3 %v6004_v46  ;;  %v5843_v46 = vld [vmem:[#allocation11 + $0x90] sm:$0xf] }
 0x23c   :  { %v3106_v48 = vpop.f32.mrf.mxu3 }
 0x23d   :  { %v3107_v7 = vadd.f32 %v3106_v48, %v3094_v2  ;;  %v6514_v48 = vld [vmem:[#allocation11 + $0x44] sm:$0xf0] }
 0x23e   :  { %v3095_v49 = vpop.f32.mrf.mxu2  ;;  %v3134_v29 = vpop.f32.mrf.mxu1 }
 0x23f   :  { %v3120_v23 = vadd.f32 %v3119_v42, %v3107_v7  ;;  %v6548_v42 = vld [vmem:[#allocation11 + $0x154] sm:$0xf0]  ;;  %v5867_v49 = vld [vmem:[#allocation11 + $0xc0] sm:$0xf]  ;;  %v5795_v7 = vld [vmem:[#allocation11 + $0x30] sm:$0xf]  ;;  %3775 = vmatpush.bf16.msra.mxu3 %v5996_v6 }
 0x240   :  { %v5940_v55 = vor.u32 %v6548_v42, %v5939_v3  ;;  %v5868_v62 = vor.u32 %v6530_v53, %v5867_v49  ;;  %v5796_v14 = vor.u32 %v6512_v8, %v5795_v7  ;;  %v6558_v3 = vld [vmem:[#allocation11 + $0x1a4] sm:$0xf0]  ;;  %v5835_v7 = vld [vmem:[#allocation11 + $0x80] sm:$0xf] }
 0x241   :  { %v3133_v38 = vadd.f32 %v3132_v50, %v3120_v23  ;;  %v5804_v50 = vor.u32 %v6514_v48, %v5803_v47  ;;  %v5980_v43 = vor.u32 %v6558_v3, %v5979_v41  ;;  %v6506_v6 = vld [vmem:[#allocation11 + $0x4] sm:$0xf0]  ;;  %v6533_v41 = vld [vmem:[#allocation11 + $0xe4] sm:$0xf] }
 0x242   :  { %3761 = vmatpush.bf16.msra.mxu2 %v5940_v55  ;;  %3749 = vmatpush.bf16.msra.mxu1 %v5868_v62  ;;  %v5916_v55 = vor.u32 %v6542_v39, %v5915_v35  ;;  %v5971_v62 = vld [vmem:[#allocation11 + $0x190] sm:$0xf]  ;;  %v5821_v39 = vld [vmem:[#allocation11 + $0x68] sm:$0xf0] }
 0x243   :  { %3736 = vmatpush.bf16.msra.mxu0 %v5804_v50  ;;  %3776 = vmatpush.bf16.msra.mxu3 %v5988_v26  ;;  %v6524_v50 = vld [vmem:[#allocation11 + $0x94] sm:$0xf0]  ;;  %v6535_v26 = vld [vmem:[#allocation11 + $0xf4] sm:$0xf] }
 0x244   :  { %v3108_v60 = vpop.f32.mrf.mxu3  ;;  %v5844_v53 = vor.u32 %v6524_v50, %v5843_v46  ;;  %v6013_v46 = vld [vmem:[#allocation11 + $0x1e8] sm:$0xf0] }
 0x245   :  { %v7135_v60 = vpop.eup %6616 }
 0x246   :  { %3762 = vmatpush.bf16.msra.mxu2 %v5932_v63  ;;  %v3256_v10 = vmul.f32 %v7135_v60, %v7130_v17  ;;  %3750 = vmatpush.bf16.msra.mxu1 %v5860_v61  ;;  %v5963_v61 = vld [vmem:[#allocation11 + $0x180] sm:$0xf]  ;;  %vm3262_vm15 = vweird.f32 %v7135_v60 }
 0x247   :  { %3737 = vmatpush.bf16.msra.mxu0 %v5796_v14  ;;  %3777 = vmatpush.bf16.msra.mxu3 %v5980_v43  ;;  %v5899_v14 = vld [vmem:[#allocation11 + $0x100] sm:$0xf]  ;;  %vm7159_vm1 = vmor %vm3261_vm0, %vm3262_vm15 }
 0x248   :  { %v3257_v37 = vmul.f32 %v7135_v60, %v3256_v10  ;;  %v5900_v20 = vor.u32 %v6538_v16, %v5899_v14  ;;  %v6545_v14 = vld [vmem:[#allocation11 + $0x144] sm:$0xf] }
 0x24a   :  { %3763 = vmatpush.bf16.msra.mxu2 %v5924_v25  ;;  %v5829_v25 = vld [vmem:[#allocation11 + $0x78] sm:$0xf0] }
 0x24b   :  { %3738 = vmatpush.bf16.msra.mxu0 %v5788_v21  ;;  %v6567_v21 = vld [vmem:[#allocation11 + $0x1f4] sm:$0xf] }
 0x24e   :  { %3764 = vmatpush.bf16.msra.mxu2 %v5916_v55  ;;  %v5949_v55 = vld [vmem:[#allocation11 + $0x168] sm:$0xf0] }
 0x252   :  { %3765 = vmatpush.bf16.msra.mxu2 %v5908_v1  ;;  %v5944_v1 = vor.u32 %v6547_v56, %v5941_v58  ;;  %v6523_v56 = vld [vmem:[#allocation11 + $0x94] sm:$0xf]  ;;  %v3230_v58 = vld [vmem:[#allocation10] sm:$0xf] }
 0x256   :  { %v3145_v31 = vpop.f32.mrf.mxu2  ;;  %3766 = vmatpush.bf16.msra.mxu2 %v5900_v20  ;;  %v5997_v20 = vld [vmem:[#allocation11 + $0x1c8] sm:$0xf0] }
 0x257   :  { %v3146_v45 = vadd.f32 %v3145_v31, %v3133_v38  ;;  %v5852_v38 = vor.u32 %v6526_v34, %v5851_v30  ;;  %v5957_v30 = vld [vmem:[#allocation11 + $0x178] sm:$0xf0] }
 0x258   :  { %v6021_v34 = vld [vmem:[#allocation11 + $0x1f8] sm:$0xf0] }
 0x259   :  { %3751 = vmatpush.bf16.msra.mxu1 %v5852_v38  ;;  %v6024_v35 = vor.u32 %v6567_v21, %v6021_v34  ;;  %v6517_v38 = vld [vmem:[#allocation11 + $0x64] sm:$0xf]  ;;  %v5925_v21 = vld [vmem:[#allocation11 + $0x138] sm:$0xf0]  ;;  %v6559_v34 = vld [vmem:[#allocation11 + $0x1b4] sm:$0xf] }
 0x25a   :  { %v5824_v3 = vor.u32 %v6517_v38, %v5821_v39 }
 0x25c   :  { %v3158_v40 = vpop.f32.mrf.mxu3 }
 0x25d   :  { %v7133_v29 = vadd.f32 %v3158_v40, %v3146_v45  ;;  %v6508_v45 = vld [vmem:[#allocation11 + $0x14] sm:$0xf0]  ;;  %v7144_v40 = vmul.f32 0.5, %v3257_v37  ;;  %3752 = vmatpush.bf16.msra.mxu1 %v5844_v53  ;;  %v5877_v53 = vld [vmem:[#allocation11 + $0xd8] sm:$0xf0] }
 0x25e   :  { %v3147_v5 = vpop.f32.mrf.mxu2  ;;  %v5780_v49 = vor.u32 %v6508_v45, %v5779_v44  ;;  %v6565_v45 = vld [vmem:[#allocation11 + $0x1e4] sm:$0xf] }
 0x25f   :  { %v3180_v2 = vrot.slane %v7133_v29, 4  ;;  %v3193_v4 = vmul.f32 %v7133_v29, %v7133_v29  ;;  %v5771_v5 = vld [vmem:[#allocation11] sm:$0xf]  ;;  %v3259_v8 = vsub.f32 1.5, %v7144_v40  ;;  %v6016_v40 = vor.u32 %v6565_v45, %v6013_v46  ;;  %v5917_v46 = vld [vmem:[#allocation11 + $0x128] sm:$0xf0] }
 0x260   :  { %3739 = vmatpush.bf16.msra.mxu0 %v5780_v49  ;;  %v6531_v49 = vld [vmem:[#allocation11 + $0xd4] sm:$0xf] }
 0x261   :  { %v3181_v11 = vadd.f32 %v3180_v2, %v7133_v29  ;;  %v3212_v12 = vrot.slane %v3193_v4, 4  ;;  %v6556_v2 = vld [vmem:[#allocation11 + $0x194] sm:$0xf0] }
 0x263   :  { %v3182_v23 = vrot.slane %v3181_v11, 2  ;;  %v3213_v24 = vadd.f32 %v3212_v12, %v3193_v4  ;;  %v5972_v4 = vor.u32 %v6556_v2, %v5971_v62  ;;  %v6522_v12 = vld [vmem:[#allocation11 + $0x84] sm:$0xf0]  ;;  %v3260_v62 = vmul.f32 %v7135_v60, %v3259_v8  ;;  %v6563_v2 = vld [vmem:[#allocation11 + $0x1d4] sm:$0xf] }
 0x264   :  { %v3160_v27 = vpop.f32.mrf.mxu3  ;;  %v5836_v15 = vor.u32 %v6522_v12, %v5835_v7  ;;  %v5805_v8 = vld [vmem:[#allocation11 + $0x48] sm:$0xf0] }
 0x265   :  { %v3183_v31 = vadd.f32 %v3182_v23, %v3181_v11  ;;  %v3214_v32 = vrot.slane %v3213_v24, 2  ;;  %v5772_v11 = vor.u32 %v6506_v6, %v5771_v5  ;;  %3778 = vmatpush.bf16.msra.mxu3 %v5972_v4  ;;  %v5964_v23 = vor.u32 %v6554_v18, %v5963_v61  ;;  %v6005_v4 = vld [vmem:[#allocation11 + $0x1d8] sm:$0xf0]  ;;  %v5869_v12 = vld [vmem:[#allocation11 + $0xc8] sm:$0xf0] }
 0x266   :  { %3753 = vmatpush.bf16.msra.mxu1 %v5836_v15  ;;  %v6008_v6 = vor.u32 %v6563_v2, %v6005_v4  ;;  %v5933_v15 = vld [vmem:[#allocation11 + $0x148] sm:$0xf0]  ;;  %v3264_v16 = vsel %vm7159_vm1, %v7135_v60, %v3260_v62  ;;  %v5861_v60 = vld [vmem:[#allocation11 + $0xb8] sm:$0xf0]  ;;  %v6539_v2 = vld [vmem:[#allocation11 + $0x114] sm:$0xf] }
 0x267   :  { %v3184_v42 = vrot.slane %v3183_v31, 1  ;;  %v3215_v59 = vadd.f32 %v3214_v32, %v3213_v24  ;;  %3740 = vmatpush.bf16.msra.mxu0 %v5772_v11  ;;  %v6519_v24 = vld [vmem:[#allocation11 + $0x74] sm:$0xf]  ;;  %v5960_v32 = vor.u32 %v6551_v51, %v5957_v30  ;;  %v5936_v18 = vor.u32 %v6545_v14, %v5933_v15  ;;  %v5909_v4 = vld [vmem:[#allocation11 + $0x118] sm:$0xf0] }
 0x268   :  { %v5832_v27 = vor.u32 %v6519_v24, %v5829_v25  ;;  %v6511_v25 = vld [vmem:[#allocation11 + $0x34] sm:$0xf]  ;;  %v5837_v15 = vld [vmem:[#allocation11 + $0x88] sm:$0xf0] }
 0x269   :  { %v3185_v47 = vadd.f32 %v3184_v42, %v3183_v31  ;;  %v3216_v48 = vrot.slane %v3215_v59, 1  ;;  %v5896_v31 = vor.u32 %v6535_v26, %v5893_v28  ;;  %3779 = vmatpush.bf16.msra.mxu3 %v5964_v23  ;;  %3811 = vmatpush.bf16.msrb.mxu2 %v5960_v32  ;;  %v5885_v42 = vld [vmem:[#allocation11 + $0xe8] sm:$0xf0]  ;;  %v5797_v26 = vld [vmem:[#allocation11 + $0x38] sm:$0xf0]  ;;  %v3280_v28 = vrot.slane %v3264_v16, 6 }
 0x26a   :  { %v5888_v43 = vor.u32 %v6533_v41, %v5885_v42  ;;  %v5800_v30 = vor.u32 %v6511_v25, %v5797_v26  ;;  %v6509_v42 = vld [vmem:[#allocation11 + $0x24] sm:$0xf] }
 0x26b   :  { %v7146_v63 = vmul.f32 0.125, %v3185_v47  ;;  %v3217_v0 = vadd.f32 %v3216_v48, %v3215_v59  ;;  %3785 = vmatpush.bf16.msrb.mxu0 %v5832_v27  ;;  %3798 = vmatpush.bf16.msrb.mxu1 %v5896_v31  ;;  %v6549_v59 = vld [vmem:[#allocation11 + $0x164] sm:$0xf]  ;;  %v6515_v47 = vld [vmem:[#allocation11 + $0x54] sm:$0xf] }
 0x26c   :  { %v5952_v44 = vor.u32 %v6549_v59, %v5949_v55  ;;  %v5813_v48 = vld [vmem:[#allocation11 + $0x58] sm:$0xf0]  ;;  %v6527_v27 = vld [vmem:[#allocation11 + $0xb4] sm:$0xf]  ;;  %v5789_v59 = vld [vmem:[#allocation11 + $0x28] sm:$0xf0] }
 0x26d   :  { %v3221_v9 = vmul.f32 0.125, %v3217_v0  ;;  %v3225_v10 = vmul.f32 %v7146_v63, %v7146_v63  ;;  %3824 = vmatpush.bf16.msrb.mxu3 %v6024_v35  ;;  %v5816_v50 = vor.u32 %v6515_v47, %v5813_v48  ;;  %v5880_v0 = vor.u32 %v6531_v49, %v5877_v53  ;;  %v6543_v31 = vld [vmem:[#allocation11 + $0x134] sm:$0xf]  ;;  %v5989_v35 = vld [vmem:[#allocation11 + $0x1b8] sm:$0xf0] }
 0x26e   :  { %3812 = vmatpush.bf16.msrb.mxu2 %v5952_v44  ;;  %v5864_v32 = vor.u32 %v6527_v27, %v5861_v60  ;;  %v5928_v41 = vor.u32 %v6543_v31, %v5925_v21  ;;  %v5853_v55 = vld [vmem:[#allocation11 + $0xa8] sm:$0xf0]  ;;  %v5792_v45 = vor.u32 %v6509_v42, %v5789_v59  ;;  %v5781_v53 = vld [vmem:[#allocation11 + $0x18] sm:$0xf0]  ;;  %v6537_v16 = vld [vmem:[#allocation11 + $0x104] sm:$0xf] }
 0x26f   :  { %v3229_v19 = vsub.f32 %v3221_v9, %v3225_v10  ;;  %3786 = vmatpush.bf16.msrb.mxu0 %v5824_v3  ;;  %3799 = vmatpush.bf16.msrb.mxu1 %v5888_v43  ;;  %v6513_v9 = vld [vmem:[#allocation11 + $0x44] sm:$0xf]  ;;  %v5992_v3 = vor.u32 %v6559_v34, %v5989_v35  ;;  %v5981_v47 = vld [vmem:[#allocation11 + $0x1a8] sm:$0xf0] }
 0x270   :  { %v6529_v10 = vld [vmem:[#allocation11 + $0xc4] sm:$0xf]  ;;  %v5808_v11 = vor.u32 %v6513_v9, %v5805_v8  ;;  %v5973_v9 = vld [vmem:[#allocation11 + $0x198] sm:$0xf0] }
 0x271   :  { %v7151_v37 = vadd.f32 1e-05, %v3229_v19  ;;  %3825 = vmatpush.bf16.msrb.mxu3 %v6016_v40  ;;  %v5872_v61 = vor.u32 %v6529_v10, %v5869_v12  ;;  %v6561_v19 = vld [vmem:[#allocation11 + $0x1c4] sm:$0xf] }
 0x272   :  { %3813 = vmatpush.bf16.msrb.mxu2 %v5944_v1  ;;  %v6000_v24 = vor.u32 %v6561_v19, %v5997_v20  ;;  %v6541_v43 = vld [vmem:[#allocation11 + $0x124] sm:$0xf]  ;;  %v5845_v1 = vld [vmem:[#allocation11 + $0x98] sm:$0xf0] }
 0x273   :  { %6618 = vrsqrt.f32 %v7151_v37  ;;  %3787 = vmatpush.bf16.msrb.mxu0 %v5816_v50  ;;  %3800 = vmatpush.bf16.msrb.mxu1 %v5880_v0  ;;  %vm3271_vm3 = vweird.f32 %v7151_v37  ;;  %v6557_v40 = vld [vmem:[#allocation11 + $0x1a4] sm:$0xf]  ;;  %v5920_v49 = vor.u32 %v6541_v43, %v5917_v46  ;;  %v6507_v50 = vld [vmem:[#allocation11 + $0x14] sm:$0xf]  ;;  %v5848_v14 = vor.u32 %v6523_v56, %v5845_v1 }
 0x274   :  { %v5984_v0 = vor.u32 %v6557_v40, %v5981_v47  ;;  %v5784_v8 = vor.u32 %v6507_v50, %v5781_v53  ;;  %v6505_v10 = vld [vmem:[#allocation11 + $0x4] sm:$0xf] }
 0x275   :  { %3826 = vmatpush.bf16.msrb.mxu3 %v6008_v6  ;;  %v6555_v6 = vld [vmem:[#allocation11 + $0x194] sm:$0xf] }
 0x276   :  { %3814 = vmatpush.bf16.msrb.mxu2 %v5936_v18  ;;  %v5976_v19 = vor.u32 %v6555_v6, %v5973_v9 }
 0x277   :  { %3788 = vmatpush.bf16.msrb.mxu0 %v5808_v11  ;;  %3801 = vmatpush.bf16.msrb.mxu1 %v5872_v61  ;;  %v6521_v11 = vld [vmem:[#allocation11 + $0x84] sm:$0xf]  ;;  %v5901_v61 = vld [vmem:[#allocation11 + $0x108] sm:$0xf0] }
 0x278   :  { %v5840_v26 = vor.u32 %v6521_v11, %v5837_v15  ;;  %v5904_v27 = vor.u32 %v6537_v16, %v5901_v61 }
 0x279   :  { %v7163_v7 = vpop.eup %6618  ;;  %3827 = vmatpush.bf16.msrb.mxu3 %v6000_v24  ;;  %v5965_v24 = vld [vmem:[#allocation11 + $0x188] sm:$0xf0] }
 0x27a   :  { %v3266_v17 = vmul.f32 %v7163_v7, %v7151_v37  ;;  %vm3272_vm2 = vweird.f32 %v7163_v7  ;;  %v6525_v37 = vld [vmem:[#allocation11 + $0xa4] sm:$0xf]  ;;  %3815 = vmatpush.bf16.msrb.mxu2 %v5928_v41 }
 0x27b   :  { %vm7175_vm4 = vmor %vm3271_vm3, %vm3272_vm2  ;;  %3789 = vmatpush.bf16.msrb.mxu0 %v5800_v30  ;;  %3802 = vmatpush.bf16.msrb.mxu1 %v5864_v32  ;;  %v5856_v48 = vor.u32 %v6525_v37, %v5853_v55 }
 0x27c   :  { %v3267_v23 = vmul.f32 %v7163_v7, %v3266_v17  ;;  %v5773_v17 = vld [vmem:[#allocation11 + $0x8] sm:$0xf0] }
 0x27d   :  { %3828 = vmatpush.bf16.msrb.mxu3 %v5992_v3  ;;  %v5776_v25 = vor.u32 %v6505_v10, %v5773_v17 }
 0x27e   :  { %v3268_v51 = vmul.f32 0.5, %v3267_v23  ;;  %3816 = vmatpush.bf16.msrb.mxu2 %v5920_v49  ;;  %v6553_v23 = vld [vmem:[#allocation11 + $0x184] sm:$0xf] }
 0x27f   :  { %3790 = vmatpush.bf16.msrb.mxu0 %v5792_v45  ;;  %3803 = vmatpush.bf16.msrb.mxu1 %v5856_v48  ;;  %v5968_v31 = vor.u32 %v6553_v23, %v5965_v24 }
 0x280   :  { %v3269_v38 = vsub.f32 1.5, %v3268_v51 }
 0x281   :  { %3829 = vmatpush.bf16.msrb.mxu3 %v5984_v0 }
 0x282   :  { %v3270_v44 = vmul.f32 %v7163_v7, %v3269_v38 }
 0x283   :  { %3791 = vmatpush.bf16.msrb.mxu0 %v5784_v8  ;;  %3804 = vmatpush.bf16.msrb.mxu1 %v5848_v14 }
 0x284   :  { %v3274_v62 = vsel %vm7175_vm4, %v7163_v7, %v3270_v44  ;;  %v5912_v7 = vor.u32 %v6539_v2, %v5909_v4 }
 0x285   :  { %v3281_v5 = vrot.slane %v3274_v62, 5  ;;  %3830 = vmatpush.bf16.msrb.mxu3 %v5976_v19 }
 0x286   :  { %3817 = vmatpush.bf16.msrb.mxu2 %v5912_v7 }
 0x287   :  { %v3285_v12 = vsel %vm3284_vm5, %v3280_v28, %v3281_v5  ;;  %3792 = vmatpush.bf16.msrb.mxu0 %v5776_v25  ;;  %3805 = vmatpush.bf16.msrb.mxu1 %v5840_v26 }
 0x288   :  { %v3287_v18 = vsel %vm3286_vm6, %v7118_v54, %v3285_v12 }
 0x289   :  { %v3289_v20 = vmul.f32 %v3287_v18, %v3230_v58  ;;  %3831 = vmatpush.bf16.msrb.mxu3 %v5968_v31 }
 0x28a   :  { %3818 = vmatpush.bf16.msrb.mxu2 %v5904_v27 }
 0x28b   :  { %v3292_v28 = vperm.slane %v3289_v20, 0  ;;  %v3293_v51 = vperm.slane %v3289_v20, 1  ;;  %v3294_v30 = vperm.slane %v3289_v20, 2  ;;  %v3295_v60 = vperm.slane %v3289_v20, 3 }
 0x28d   :  { %v3300_v32 = vmul.f32 %v3292_v28, %v7103_v33  ;;  %v3301_v54 = vmul.f32 %v3293_v51, %v7113_v22  ;;  %v3302_v21 = vmul.f32 %v3294_v30, %v7126_v57  ;;  %v3303_v34 = vmul.f32 %v3295_v60, %v7146_v63  ;;  %v3290_v33 = vld [vmem:[%s7241_s5] sm:$0xf] }
 0x28e   :  { %v3316_v35 = vmul.f32 %v3292_v28, %v7093_v52  ;;  %v3317_v38 = vmul.f32 %v3293_v51, %v7107_v36  ;;  %v3318_v39 = vmul.f32 %v3294_v30, %v7120_v13  ;;  %v3319_v13 = vmul.f32 %v3295_v60, %v7133_v29 }
 0x28f   :  { %v3308_v41 = vrot.slane %v3301_v54, 7  ;;  %v3309_v3 = vrot.slane %v3302_v21, 6  ;;  %v3310_v42 = vrot.slane %v3303_v34, 5 }
 0x291   :  { %v3311_v22 = vsel %vm3282_vm13, %v3300_v32, %v3308_v41  ;;  %v3312_v57 = vsel %vm3284_vm5, %v3309_v3, %v3310_v42 }
 0x292   :  { %v3313_v52 = vsel %vm3286_vm6, %v3311_v22, %v3312_v57  ;;  %v6575_v57 = vld [vmem:[#allocation14 + $0x30] sm:$0xff] }
 0x293   :  { %v3315_v36 = vsub.f32 %v3290_v33, %v3313_v52  ;;  %v6583_v52 = vld [vmem:[#allocation14 + $0x70] sm:$0xff] }
 0x295   :  { %v3324_v63 = vperm.slane %v3315_v36, 3  ;;  %v3321_v59 = vperm.slane %v3315_v36, 0  ;;  %v3322_v37 = vperm.slane %v3315_v36, 1  ;;  %v3323_v55 = vperm.slane %v3315_v36, 2 }
 0x297   :  { %v3332_v43 = vadd.f32 %v3324_v63, %v3319_v13  ;;  %v3329_v44 = vadd.f32 %v3321_v59, %v3316_v35  ;;  %v3330_v45 = vadd.f32 %v3322_v37, %v3317_v38  ;;  %v3331_v46 = vadd.f32 %v3323_v55, %v3318_v39  ;;  %v6576_v35 = vld [vmem:[#allocation14 + $0x38] sm:$0xff] }
 0x298   :  { %v6584_v38 = vld [vmem:[#allocation14 + $0x78] sm:$0xff] }
 0x299   :  { %v3340_v40 = vmul.f32 0.2, %v3332_v43  ;;  %vm3333_vm7 = vcmp.gt.f32.partialorder %v3329_v44, 0.0  ;;  %v3337_v47 = vmul.f32 0.2, %v3329_v44  ;;  %vm3334_vm8 = vcmp.gt.f32.partialorder %v3330_v45, 0.0 }
 0x29a   :  { %v3338_v48 = vmul.f32 0.2, %v3330_v45  ;;  %vm3335_vm9 = vcmp.gt.f32.partialorder %v3331_v46, 0.0  ;;  %v3339_v49 = vmul.f32 0.2, %v3331_v46  ;;  %vm3336_vm10 = vcmp.gt.f32.partialorder %v3332_v43, 0.0 }
 0x29b   :  { %v3341_v50 = vsel %vm3333_vm7, %v3329_v44, %v3337_v47  ;;  %v3344_v53 = vsel %vm3336_vm10, %v3332_v43, %v3340_v40  ;;  %v6574_v44 = vld [vmem:[#allocation14 + $0x28] sm:$0xff] }
 0x29c   :  { %v3345_v56 = vpack.c.bf16 %v3341_v50, %v3341_v50  ;;  %v3342_v29 = vsel %vm3334_vm8, %v3330_v45, %v3338_v48  ;;  %v3343_v58 = vsel %vm3335_vm9, %v3331_v46, %v3339_v49  ;;  %v3348_v62 = vpack.c.bf16 %v3344_v53, %v3344_v53  ;;  %v6582_v45 = vld [vmem:[#allocation14 + $0x68] sm:$0xff]  ;;  %v6573_v50 = vld [vmem:[#allocation14 + $0x20] sm:$0xff] }
 0x29d   :  { %v3346_v0 = vpack.c.bf16 %v3342_v29, %v3342_v29  ;;  %v3347_v1 = vpack.c.bf16 %v3343_v58, %v3343_v58  ;;  %v6581_v53 = vld [vmem:[#allocation14 + $0x60] sm:$0xff] }
 0x29e   :  { %3741 = vmatmul.bf16.vlgmr.msra.gmra.mxu0 %v3345_v56  ;;  %3780 = vmatmul.bf16.vlgmr.msra.gmra.mxu3 %v3348_v62 }
 0x29f   :  { %3754 = vmatmul.bf16.vlgmr.msra.gmra.mxu1 %v3346_v0  ;;  %3767 = vmatmul.bf16.vlgmr.msra.gmra.mxu2 %v3347_v1 }
 0x2a0   :  { %4059 = vmatpush.bf16.msra.mxu0 %v6576_v35  ;;  %4072 = vmatpush.bf16.msra.mxu1 %v6584_v38  ;;  %v3900_v38 = vld [vmem:[#allocation13] sm:$0x3] }
 0x2a4   :  { %4060 = vmatpush.bf16.msra.mxu0 %v6575_v57  ;;  %4073 = vmatpush.bf16.msra.mxu1 %v6583_v52 }
 0x2a8   :  { %4061 = vmatpush.bf16.msra.mxu0 %v6574_v44  ;;  %4074 = vmatpush.bf16.msra.mxu1 %v6582_v45  ;;  %v6592_v45 = vld [vmem:[#allocation16 + $0x38] sm:$0xff] }
 0x2a9   :  { %4198 = vmatpush.bf16.msra.mxu2 %v6592_v45 }
 0x2ac   :  { %4062 = vmatpush.bf16.msra.mxu0 %v6573_v50  ;;  %4075 = vmatpush.bf16.msra.mxu1 %v6581_v53  ;;  %v6589_v50 = vld [vmem:[#allocation16 + $0x20] sm:$0xff] }
 0x2ae   :  { %3793 = vmatmul.bf16.vlgmr.msrb.gmra.mxu0 %v3345_v56  ;;  %3832 = vmatmul.bf16.vlgmr.msrb.gmra.mxu3 %v3348_v62 }
 0x2af   :  { %3806 = vmatmul.bf16.vlgmr.msrb.gmra.mxu1 %v3346_v0  ;;  %3819 = vmatmul.bf16.vlgmr.msrb.gmra.mxu2 %v3347_v1  ;;  %v6572_v0 = vld [vmem:[#allocation14 + $0x18] sm:$0xff] }
 0x2b0   :  { %v6580_v1 = vld [vmem:[#allocation14 + $0x58] sm:$0xff]  ;;  %4063 = vmatpush.bf16.msra.mxu0 %v6572_v0 }
 0x2b1   :  { %4076 = vmatpush.bf16.msra.mxu1 %v6580_v1 }
 0x31b   :  { %v3742_v2 = vpop.f32.mrf.mxu0 }
 0x31c   :  { %v3755_v4 = vpop.f32.mrf.mxu1 }
 0x31d   :  { %v3756_v5 = vadd.f32 %v3755_v4, %v3742_v2 }
 0x321   :  { %v3781_v6 = vpop.f32.mrf.mxu3 }
 0x322   :  { %v3768_v9 = vpop.f32.mrf.mxu2 }
 0x323   :  { %v3769_v8 = vadd.f32 %v3768_v9, %v3756_v5  ;;  %v3744_v10 = vpop.f32.mrf.mxu0  ;;  %v6571_v9 = vld [vmem:[#allocation14 + $0x10] sm:$0xff] }
 0x324   :  { %v3757_v17 = vpop.f32.mrf.mxu1  ;;  %4064 = vmatpush.bf16.msra.mxu0 %v6571_v9  ;;  %v6587_v9 = vld [vmem:[#allocation16 + $0x10] sm:$0xff] }
 0x325   :  { %v7200_v11 = vadd.f32 %v3781_v6, %v3769_v8  ;;  %v6579_v8 = vld [vmem:[#allocation14 + $0x50] sm:$0xff] }
 0x326   :  { %4077 = vmatpush.bf16.msra.mxu1 %v6579_v8 }
 0x327   :  { %v3837_v12 = vrot.slane %v7200_v11, 4  ;;  %v3851_v14 = vmul.f32 %v7200_v11, %v7200_v11 }
 0x329   :  { %v3838_v7 = vadd.f32 %v3837_v12, %v7200_v11  ;;  %v3853_v15 = vrot.slane %v3851_v14, 4  ;;  %v3783_v16 = vpop.f32.mrf.mxu3  ;;  %v6570_v12 = vld [vmem:[#allocation14 + $0x8] sm:$0xff] }
 0x32a   :  { %v3770_v61 = vpop.f32.mrf.mxu2  ;;  %4065 = vmatpush.bf16.msra.mxu0 %v6570_v12  ;;  %v6577_v16 = vld [vmem:[#allocation14 + $0x40] sm:$0xff] }
 0x32b   :  { %v3839_v18 = vrot.slane %v3838_v7, 2  ;;  %v3854_v19 = vadd.f32 %v3853_v15, %v3851_v14  ;;  %v3794_v20 = vpop.f32.mrf.mxu0  ;;  %v6578_v14 = vld [vmem:[#allocation14 + $0x48] sm:$0xff]  ;;  %v6569_v15 = vld [vmem:[#allocation14] sm:$0xff] }
 0x32c   :  { %v3807_v23 = vpop.f32.mrf.mxu1  ;;  %4078 = vmatpush.bf16.msra.mxu1 %v6578_v14  ;;  %v6586_v14 = vld [vmem:[#allocation16 + $0x8] sm:$0xff] }
 0x32d   :  { %v3840_v24 = vadd.f32 %v3839_v18, %v3838_v7  ;;  %v3855_v25 = vrot.slane %v3854_v19, 2  ;;  %v3808_v30 = vadd.f32 %v3807_v23, %v3794_v20 }
 0x32e   :  { %4066 = vmatpush.bf16.msra.mxu0 %v6569_v15 }
 0x32f   :  { %v3841_v26 = vrot.slane %v3840_v24, 1  ;;  %v3856_v27 = vadd.f32 %v3855_v25, %v3854_v19 }
 0x330   :  { %4079 = vmatpush.bf16.msra.mxu1 %v6577_v16 }
 0x331   :  { %v3842_v28 = vadd.f32 %v3841_v26, %v3840_v24  ;;  %v3857_v51 = vrot.slane %v3856_v27, 1  ;;  %v3833_v60 = vpop.f32.mrf.mxu3 }
 0x332   :  { %v3820_v31 = vpop.f32.mrf.mxu2 }
 0x333   :  { %v7206_v32 = vmul.f32 0.125, %v3842_v28  ;;  %v3858_v54 = vadd.f32 %v3857_v51, %v3856_v27  ;;  %v3821_v21 = vadd.f32 %v3820_v31, %v3808_v30  ;;  %v3796_v34 = vpop.f32.mrf.mxu0  ;;  %v3871_v51 = vld [vmem:[%s7243_s7] sm:$0x3] }
 0x334   :  { %v3809_v39 = vpop.f32.mrf.mxu1 }
 0x335   :  { %v3865_v41 = vmul.f32 0.125, %v3858_v54  ;;  %v3867_v3 = vmul.f32 %v7206_v32, %v7206_v32  ;;  %v7210_v42 = vadd.f32 %v3833_v60, %v3821_v21 }
 0x337   :  { %v3843_v33 = vrot.slane %v7210_v42, 4  ;;  %v3852_v22 = vmul.f32 %v7210_v42, %v7210_v42  ;;  %v3869_v36 = vsub.f32 %v3865_v41, %v3867_v3 }
 0x339   :  { %v3844_v13 = vadd.f32 %v3843_v33, %v7210_v42  ;;  %v3859_v63 = vrot.slane %v3852_v22, 4  ;;  %v3835_v59 = vpop.f32.mrf.mxu3  ;;  %v3872_v46 = vadd.f32 1e-05, %v3869_v36 }
 0x33a   :  { %v3822_v37 = vpop.f32.mrf.mxu2 }
 0x33b   :  { %v3845_v55 = vrot.slane %v3844_v13, 2  ;;  %v3860_v43 = vadd.f32 %v3859_v63, %v3852_v22  ;;  %6620 = vrsqrt.f32 %v3872_v46  ;;  %vm3880_vm0 = vweird.f32 %v3872_v46 }
 0x33d   :  { %v3846_v40 = vadd.f32 %v3845_v55, %v3844_v13  ;;  %v3861_v47 = vrot.slane %v3860_v43, 2 }
 0x33f   :  { %v3847_v48 = vrot.slane %v3846_v40, 1  ;;  %v3862_v49 = vadd.f32 %v3861_v47, %v3860_v43 }
 0x341   :  { %v3848_v56 = vadd.f32 %v3847_v48, %v3846_v40  ;;  %v3863_v29 = vrot.slane %v3862_v49, 1  ;;  %v6621_v5 = vpop.eup %6620 }
 0x342   :  { %v3875_v17 = vmul.f32 %v6621_v5, %v3872_v46  ;;  %vm3881_vm12 = vweird.f32 %v6621_v5  ;;  %v6591_v46 = vld [vmem:[#allocation16 + $0x30] sm:$0xff] }
 0x343   :  { %v3850_v58 = vmul.f32 0.125, %v3848_v56  ;;  %v3864_v62 = vadd.f32 %v3863_v29, %v3862_v49  ;;  %vm3882_vm1 = vmor %vm3880_vm0, %vm3881_vm12  ;;  %4199 = vmatpush.bf16.msra.mxu2 %v6591_v46 }
 0x344   :  { %v3876_v7 = vmul.f32 %v6621_v5, %v3875_v17 }
 0x345   :  { %v3866_v2 = vmul.f32 0.125, %v3864_v62  ;;  %v3868_v4 = vmul.f32 %v3850_v58, %v3850_v58  ;;  %v6588_v62 = vld [vmem:[#allocation16 + $0x18] sm:$0xff] }
 0x346   :  { %v3877_v18 = vmul.f32 0.5, %v3876_v7 }
 0x347   :  { %v3870_v6 = vsub.f32 %v3866_v2, %v3868_v4 }
 0x348   :  { %v3878_v23 = vsub.f32 1.5, %v3877_v18 }
 0x349   :  { %v3873_v10 = vadd.f32 1e-05, %v3870_v6 }
 0x34a   :  { %v3879_v26 = vmul.f32 %v6621_v5, %v3878_v23 }
 0x34b   :  { %6622 = vrsqrt.f32 %v3873_v10  ;;  %vm3890_vm14 = vweird.f32 %v3873_v10 }
 0x34c   :  { %v3883_v60 = vsel %vm3882_vm1, %v6621_v5, %v3879_v26  ;;  %v4102_v26 = vld [vmem:[%s7246_s10] sm:$0x1] }
 0x351   :  { %v6623_v61 = vpop.eup %6622 }
 0x352   :  { %v3885_v19 = vmul.f32 %v6623_v61, %v3873_v10  ;;  %vm3891_vm11 = vweird.f32 %v6623_v61 }
 0x353   :  { %vm3892_vm15 = vmor %vm3890_vm14, %vm3891_vm11 }
 0x354   :  { %v3886_v20 = vmul.f32 %v6623_v61, %v3885_v19 }
 0x356   :  { %v3887_v24 = vmul.f32 0.5, %v3886_v20 }
 0x358   :  { %v3888_v25 = vsub.f32 1.5, %v3887_v24 }
 0x35a   :  { %v3889_v27 = vmul.f32 %v6623_v61, %v3888_v25 }
 0x35c   :  { %v3893_v28 = vsel %vm3892_vm15, %v6623_v61, %v3889_v27  ;;  %v6585_v61 = vld [vmem:[#allocation16] sm:$0xff] }
 0x35d   :  { %v3896_v30 = vrot.slane %v3893_v28, 7 }
 0x35f   :  { %v3897_v31 = vsel %vm3282_vm13, %v3883_v60, %v3896_v30  ;;  %v4115_v30 = vld [vmem:[%s7247_s11] sm:$0x1]  ;;  %s4219_s11 = sshll.u32 %s7250_s14, 4  ;;  %s4220_s11 = int_to_ptr.hbm [resolvable:$true] %s4219_s11 }
 0x360   :  { %v3899_v54 = vmul.f32 %v3897_v31, %v3871_v51 }
 0x362   :  { %v3902_v21 = vperm.slane %v3899_v54, 0  ;;  %v3903_v34 = vperm.slane %v3899_v54, 1 }
 0x364   :  { %v3907_v35 = vmul.f32 %v3903_v34, %v3850_v58  ;;  %v3906_v39 = vmul.f32 %v3902_v21, %v7206_v32  ;;  %v3914_v22 = vmul.f32 %v3902_v21, %v7200_v11  ;;  %v3915_v57 = vmul.f32 %v3903_v34, %v7210_v42  ;;  %v6590_v11 = vld [vmem:[#allocation16 + $0x28] sm:$0xff] }
 0x365   :  { %4200 = vmatpush.bf16.msra.mxu2 %v6590_v11 }
 0x366   :  { %v3910_v41 = vrot.slane %v3907_v35, 7 }
 0x368   :  { %v3911_v3 = vsel %vm3282_vm13, %v3906_v39, %v3910_v41 }
 0x369   :  { %v3913_v33 = vsub.f32 %v3900_v38, %v3911_v3  ;;  %4201 = vmatpush.bf16.msra.mxu2 %v6589_v50  ;;  %v6611_v3 = vld [vmem:[%s7249_s13] ss:$0 sm:$0xff] }
 0x36b   :  { %v3917_v52 = vperm.slane %v3913_v33, 0  ;;  %v3918_v36 = vperm.slane %v3913_v33, 1 }
 0x36d   :  { %v3922_v13 = vadd.f32 %v3918_v36, %v3915_v57  ;;  %v3921_v63 = vadd.f32 %v3917_v52, %v3914_v22  ;;  %4202 = vmatpush.bf16.msra.mxu2 %v6588_v62 }
 0x36f   :  { %v3926_v59 = vmul.f32 0.2, %v3922_v13  ;;  %vm3923_vm2 = vcmp.gt.f32.partialorder %v3921_v63, 0.0  ;;  %v3925_v37 = vmul.f32 0.2, %v3921_v63  ;;  %vm3924_vm3 = vcmp.gt.f32.partialorder %v3922_v13, 0.0 }
 0x371   :  { %v3927_v55 = vsel %vm3923_vm2, %v3921_v63, %v3925_v37  ;;  %v3928_v43 = vsel %vm3924_vm3, %v3922_v13, %v3926_v59  ;;  %4203 = vmatpush.bf16.msra.mxu2 %v6587_v9 }
 0x372   :  { %v3929_v44 = vpack.c.bf16 %v3927_v55, %v3927_v55  ;;  %v3930_v32 = vpack.c.bf16 %v3928_v43, %v3928_v43 }
 0x374   :  { %4067 = vmatmul.bf16.vlgmr.msra.gmra.mxu0 %v3929_v44  ;;  %4080 = vmatmul.bf16.vlgmr.msra.gmra.mxu1 %v3930_v32 }
 0x375   :  { %4204 = vmatpush.bf16.msra.mxu2 %v6586_v14 }
 0x379   :  { %4205 = vmatpush.bf16.msra.mxu2 %v6585_v61 }
 0x3f1   :  { %v4068_v42 = vpop.f32.mrf.mxu0  ;;  %v4081_v40 = vpop.f32.mrf.mxu1 }
 0x3f2   :  { %v4082_v47 = vadd.f32 %v4081_v40, %v4068_v42 }
 0x3f4   :  { %v4085_v48 = vrot.slane %v4082_v47, 4  ;;  %v4092_v49 = vmul.f32 %v4082_v47, %v4082_v47 }
 0x3f6   :  { %v4086_v53 = vadd.f32 %v4085_v48, %v4082_v47  ;;  %v4093_v56 = vrot.slane %v4092_v49, 4 }
 0x3f8   :  { %v4087_v29 = vrot.slane %v4086_v53, 2  ;;  %v4094_v58 = vadd.f32 %v4093_v56, %v4092_v49 }
 0x3f9   :  { %v4070_v0 = vpop.f32.mrf.mxu0  ;;  %v4083_v1 = vpop.f32.mrf.mxu1 }
 0x3fa   :  { %v4088_v2 = vadd.f32 %v4087_v29, %v4086_v53  ;;  %v4095_v4 = vrot.slane %v4094_v58, 2 }
 0x3fc   :  { %v4089_v5 = vrot.slane %v4088_v2, 1  ;;  %v4096_v6 = vadd.f32 %v4095_v4, %v4094_v58 }
 0x3fe   :  { %v4090_v8 = vadd.f32 %v4089_v5, %v4088_v2  ;;  %v4097_v10 = vrot.slane %v4096_v6, 1 }
 0x400   :  { %v4091_v17 = vmul.f32 0.125, %v4090_v8  ;;  %v4098_v12 = vadd.f32 %v4097_v10, %v4096_v6 }
 0x402   :  { %v4099_v7 = vmul.f32 0.125, %v4098_v12  ;;  %v4100_v15 = vmul.f32 %v4091_v17, %v4091_v17 }
 0x404   :  { %v4101_v16 = vsub.f32 %v4099_v7, %v4100_v15 }
 0x406   :  { %v4103_v18 = vadd.f32 1e-05, %v4101_v16 }
 0x408   :  { %6624 = vrsqrt.f32 %v4103_v18  ;;  %vm4110_vm4 = vweird.f32 %v4103_v18 }
 0x40e   :  { %v6625_v19 = vpop.eup %6624 }
 0x40f   :  { %v4105_v20 = vmul.f32 %v6625_v19, %v4103_v18  ;;  %vm4111_vm13 = vweird.f32 %v6625_v19 }
 0x410   :  { %vm4112_vm5 = vmor %vm4110_vm4, %vm4111_vm13 }
 0x411   :  { %v4106_v23 = vmul.f32 %v6625_v19, %v4105_v20 }
 0x413   :  { %v4107_v24 = vmul.f32 0.5, %v4106_v23 }
 0x415   :  { %v4108_v25 = vsub.f32 1.5, %v4107_v24 }
 0x417   :  { %v4109_v27 = vmul.f32 %v6625_v19, %v4108_v25 }
 0x419   :  { %v4113_v28 = vsel %vm4112_vm5, %v6625_v19, %v4109_v27 }
 0x41a   :  { %v4114_v51 = vmul.f32 %v4113_v28, %v4102_v26 }
 0x41c   :  { %v4116_v60 = vmul.f32 %v4114_v51, %v4091_v17  ;;  %v4119_v31 = vperm.slane %v4114_v51, 0 }
 0x41e   :  { %v4117_v54 = vsub.f32 %v4115_v30, %v4116_v60  ;;  %v4121_v21 = vmul.f32 %v4119_v31, %v4082_v47 }
 0x420   :  { %v4123_v34 = vperm.slane %v4117_v54, 0 }
 0x422   :  { %v4125_v35 = vadd.f32 %v4123_v34, %v4121_v21 }
 0x424   :  { %v4127_v38 = vmul.f32 0.2, %v4125_v35  ;;  %vm4126_vm6 = vcmp.gt.f32.partialorder %v4125_v35, 0.0 }
 0x426   :  { %v4128_v39 = vsel %vm4126_vm6, %v4125_v35, %v4127_v38 }
 0x427   :  { %v4129_v41 = vpack.c.bf16 %v4128_v39, %v4128_v39 }
 0x429   :  { %4206 = vmatmul.bf16.vlgmr.msra.gmra.mxu2 %v4129_v41 }
 0x4ac   :  { %v4207_v33 = vpop.f32.mrf.mxu2 }
 0x4ad   :  { %v4208_v22 = vadd.f32 %v6611_v3, %v4207_v33 }
 0x4af   :  { %4211 = vst [vmem:[#allocation17] sm:$0xff] %v4208_v22 }
 0x4b0   :  { %4222 = dma.vmem_to_hbm [thread:$0]  %s4218_s28, 128, %s4220_s11, [#allocation4]  }
 0x4b4   :  { %v4209_v57 = vpop.f32.mrf.mxu2 }
 0x4b5   :  { %6876 = dma.done.wait [#allocation4], 128  }
 0x4b6   :  { %6877 = vsyncadd [#allocation4], 4294967168 }
 0x4b7   :  { %4227 = vsyncpa [#allocation3], 1 }
 0x4b8   :  { %4228 = vsyncpa [#allocation6], 1 }
 0x4b9   :  { %4229 = vsyncpa [#allocation9], 1 }
 0x4ba   :  { %4230 = vsyncpa [#allocation12], 1 }
 0x4bb   :  { %4231 = vsyncpa [#allocation15], 1 }
 0x4bc   :  { %4232 = vsyncpa [#allocation4], 1 }

</bundles_post_ra>
